<compile_context>
chip_gen: v5e
topology: v5e:2x2
jax: 0.10.0
libtpu: 0.0.40
codegen_flags: <defaults>
</compile_context>

<pallas_src>
import functools

import jax
import jax.numpy as jnp
from jax.experimental import pallas as pl
from jax.experimental.pallas import tpu as pltpu


def points_pool_kernel(x_ref, w1_ref, w2_ref, w3_ref, vec_ref, out_ref, *, cdt):
    Vt, T, D = x_ref.shape
    M = Vt * T
    f32 = jnp.float32

    # x arrives f32 (no host-side cast pass); cast once for the MXU.
    xb = x_ref[...].astype(jnp.bfloat16)                       # (Vt,T,131)

    # mask = ~torch.isclose(max_D(x), 0)  ->  |vmax| > 1e-8 (atol; rtol*|0|=0).
    # Lane-reduce on the bf16 copy (halves XLU traffic); compare on the tiny result.
    vmax = jnp.max(xb, axis=-1, keepdims=True).astype(f32)     # (Vt,T,1)
    mask3 = (jnp.abs(vmax) > 1e-8).astype(cdt)                 # (Vt,T,1)
    # Per-voxel any/all of the point mask (tiny (Vt,1) sublane reductions) —
    # replaces the full (Vt,T,128) broadcast+max for the aggregated output half.
    mask_any = jnp.max(mask3, axis=1).astype(f32)              # (Vt,1)
    mask_all = jnp.min(mask3, axis=1).astype(f32)              # (Vt,1)

    vec = vec_ref[...]                                         # (8,128) f32
    b1, t1 = vec[0:1, :64], vec[1:2, :64]
    b2, t2 = vec[2:3, :64], vec[3:4, :64]
    b3, t3 = vec[4:5, :],   vec[5:6, :]

    w2 = w2_ref[...]                                           # (128,64) bf16
    w3 = w3_ref[...]                                           # (128,128) bf16
    w2_top, w2_bot = w2[:64, :], w2[64:, :]
    w3_top, w3_bot = w3[:64, :], w3[64:, :]

    # ---- VFE1: Linear(131,64)+ReLU with BN folded into (W', b'), plus shift --
    h1 = jnp.dot(xb.reshape(M, D), w1_ref[...],
                 preferred_element_type=f32)                   # (M,64) f32
    p1 = (jnp.maximum(h1 + b1, 0.0) + t1).astype(cdt)          # (M,64)
    agg1 = jnp.max(p1.reshape(Vt, T, 64), axis=1)              # (Vt,64)

    # ---- VFE2: input concat([p1, agg1_bcast]) * mask via split weights.
    # mask is a per-row 0/1 scalar, so (p*mask)@W == mask*(p@W): apply it once
    # after the add instead of masking both operands.
    h2 = jnp.dot(p1.astype(jnp.bfloat16), w2_top,
                 preferred_element_type=f32)                   # (M,64)
    a2 = jnp.dot(agg1.astype(jnp.bfloat16), w2_bot,
                 preferred_element_type=f32)                   # (Vt,64)
    h2 = (h2.astype(cdt).reshape(Vt, T, 64) + a2.astype(cdt)[:, None, :]) * mask3
    p2 = (jnp.maximum(h2.reshape(M, 64) + b2, 0.0) + t2).astype(cdt)
    agg2 = jnp.max(p2.reshape(Vt, T, 64), axis=1)              # (Vt,64)

    # ---- VFE3: Linear(128,128), same split-weight + single-mask trick -------
    h3 = jnp.dot(p2.astype(jnp.bfloat16), w3_top,
                 preferred_element_type=f32)                   # (M,128)
    a3 = jnp.dot(agg2.astype(jnp.bfloat16), w3_bot,
                 preferred_element_type=f32)                   # (Vt,128)
    h3 = (h3.astype(cdt).reshape(Vt, T, 128) + a3.astype(cdt)[:, None, :]) * mask3
    p3 = (jnp.maximum(h3.reshape(M, 128) + b3, 0.0) + t3).astype(cdt)
    p3v = p3.reshape(Vt, T, 128)

    # ---- voxelwise max over T of concat([p3, agg3_bcast]) * mask -------------
    agg3 = jnp.max(p3v, axis=1).astype(f32)                    # (Vt,128)
    out_lo = jnp.max(p3v * mask3, axis=1).astype(f32)          # (Vt,128)
    # max_T(agg3_bcast * mask) == agg3*any(mask) if agg3 >= 0 else agg3*all(mask)
    out_hi = jnp.where(agg3 >= 0.0, agg3 * mask_any, agg3 * mask_all)
    out_ref[:, :128] = out_lo                                  # two lane-dense
    out_ref[:, 128:] = out_hi                                  # 128-wide stores


def _tpu_config():
    """Per-generation defaults (tile size, VMEM budget, pointwise dtype)."""
    kind = ""
    try:
        kind = jax.devices()[0].device_kind.lower()
    except Exception:  # pragma: no cover - defensive
        pass
    if "v5e" in kind or "v5 lite" in kind or "v5lite" in kind:
        # 128 MiB VMEM, no bf16 VALU -> big tile, f32 pointwise.
        return dict(tile_v=512, vmem=96 * 1024 * 1024, cdt=jnp.float32, min_steps=2)
    if "v6" in kind:
        # 128 MiB VMEM, bf16 VALU.
        return dict(tile_v=512, vmem=96 * 1024 * 1024, cdt=jnp.bfloat16, min_steps=2)
    if "7x" in kind or "v7" in kind:
        # 64 MiB VMEM / 2 TCs -> smaller tile, >=2 steps per core, tighter budget.
        return dict(tile_v=256, vmem=40 * 1024 * 1024, cdt=jnp.bfloat16, min_steps=4)
    # Unknown generation: conservative.
    return dict(tile_v=256, vmem=64 * 1024 * 1024, cdt=jnp.float32, min_steps=2)


def points_pool(x, params, *, tile_v=None, compute_dtype=None, vmem_limit_bytes=None):
    """x: (B, K, T, 131) f32.  params = (w1, w2, w3, vecs) from pack_params()."""
    w1, w2, w3, vecs = params
    B, K, T, D = x.shape
    BK = B * K

    cfg = _tpu_config()
    if tile_v is None:
        tile_v = cfg["tile_v"]
    if compute_dtype is None:
        compute_dtype = cfg["cdt"]
    if vmem_limit_bytes is None:
        vmem_limit_bytes = cfg["vmem"]
    min_steps = cfg["min_steps"]

    # Keep >= min_steps grid steps when BK allows (double-buffering / 2 TCs on
    # v7x) and round to the 8-sublane granularity required by the output block.
    cap = max(8, 8 * pl.cdiv(pl.cdiv(BK, min_steps), 8))
    tile_v = int(max(8, (min(int(tile_v), cap) // 8) * 8))

    BK_pad = tile_v * pl.cdiv(BK, tile_v)
    xf = x.reshape(BK, T, D)                 # free reshape; f32 straight to DMA
    if BK_pad != BK:
        # Padded voxels are all-zero -> fully masked -> sliced off below.
        xf = jnp.pad(xf, ((0, BK_pad - BK), (0, 0), (0, 0)))

    kernel = functools.partial(points_pool_kernel, cdt=compute_dtype)
    out = pl.pallas_call(
        kernel,
        grid=(BK_pad // tile_v,),
        in_specs=[
            pl.BlockSpec((tile_v, T, D), lambda i: (i, 0, 0)),
            pl.BlockSpec(w1.shape, lambda i: (0, 0)),
            pl.BlockSpec(w2.shape, lambda i: (0, 0)),
            pl.BlockSpec(w3.shape, lambda i: (0, 0)),
            pl.BlockSpec(vecs.shape, lambda i: (0, 0)),
        ],
        out_specs=pl.BlockSpec((tile_v, 256), lambda i: (i, 0)),
        out_shape=jax.ShapeDtypeStruct((BK_pad, 256), jnp.float32),
        compiler_params=pltpu.CompilerParams(
            dimension_semantics=("parallel",),
            vmem_limit_bytes=int(vmem_limit_bytes)),
    )(xf, w1, w2, w3, vecs)
    return out[:BK].reshape(B, K, 256)


def init_params(key):
    """PyTorch-style Linear init; eval-mode BatchNorm2d with randomized running
    stats / affine so the BN fold is actually exercised (scale kept > 0)."""
    layer_dims = [(131, 64), (128, 64), (128, 128)]   # (in, units) per VFE layer
    eps = 1e-5
    raw = []
    for din, dout in layer_dims:
        key, k1, k2, k3, k4, k5, k6 = jax.random.split(key, 7)
        bound = 1.0 / (din ** 0.5)
        w = jax.random.uniform(k1, (din, dout), jnp.float32, -bound, bound)
        b = jax.random.uniform(k2, (1, dout), jnp.float32, -bound, bound)
        gamma = jax.random.uniform(k3, (dout,), jnp.float32, 0.5, 1.5)
        beta = jax.random.uniform(k4, (dout,), jnp.float32, -0.5, 0.5)
        rmean = jax.random.uniform(k5, (dout,), jnp.float32, -0.5, 0.5)
        rvar = jax.random.uniform(k6, (dout,), jnp.float32, 0.5, 1.5)
        scale = gamma / jnp.sqrt(rvar + eps)
        shift = beta - rmean * scale
        raw.append((w, b, scale, shift))
    return raw
    # TODO(synk): training-mode BatchNorm (batch statistics over B,K,T) is not
    # implemented; eval-mode folded affine is used instead.


def pack_params(raw):
    """Fold BN scale into W/b (requires scale > 0) and pack the per-layer
    vectors (b', shift) into a single (8,128) f32 tile."""
    ws, rows = [], []
    for (w, b, scale, shift) in raw:
        assert bool(jnp.all(scale > 0)), "BN fold requires positive scale"
        ws.append((w * scale[None, :]).astype(jnp.bfloat16))
        rows.append((b[0] * scale, shift))
    vecs = jnp.zeros((8, 128), jnp.float32)
    r = 0
    for bf, sh in rows:
        d = bf.shape[0]
        vecs = vecs.at[r, :d].set(bf)
        vecs = vecs.at[r + 1, :d].set(sh)
        r += 2
    return (ws[0], ws[1], ws[2], vecs)


def points_pool_ref(x, raw_params):
    """Pure-JAX f32 reference mirroring the PyTorch forward (BN eval mode)."""
    vmax = jnp.max(x, axis=3, keepdims=True)
    mask = (jnp.abs(vmax) > 1e-8).astype(jnp.float32)
    h = x
    for (w, b, scale, shift) in raw_params:
        t = jnp.maximum(jnp.einsum('bktd,du->bktu', h, w) + b[0], 0.0)
        p = t * scale + shift
        agg = jnp.max(p, axis=2, keepdims=True)
        cat = jnp.concatenate([p, jnp.broadcast_to(agg, p.shape)], axis=-1)
        h = cat * mask
    return jnp.max(h, axis=2)


if __name__ == "__main__":
    key = jax.random.PRNGKey(0)
    kx, kp = jax.random.split(key)

    # Small shapes: 2 batches, 10 voxels, 16 points, 131 features.
    # BK=20 -> small tile with a padded tail tile (exercises the padding path).
    B, K, T, D = 2, 10, 16, 131
    x = jax.random.normal(kx, (B, K, T, D), jnp.float32)
    # zero out the second half of the points so the isclose-mask path is exercised
    x = x.at[:, :, T // 2:, :].set(0.0)

    raw = init_params(kp)
    params = pack_params(raw)

    out = jax.block_until_ready(points_pool(x, params))
    ref = points_pool_ref(x, raw)

    assert out.shape == (B, K, 256), out.shape
    # bf16 matmul operands (and bf16 pointwise on v6e/v7x) vs an f32 reference:
    # check the max error against the overall activation scale.
    max_err = float(jnp.max(jnp.abs(out - ref)))
    ref_scale = float(jnp.max(jnp.abs(ref)))
    assert max_err <= 2e-2 * max(1.0, ref_scale), \
        f"max abs err {max_err} (ref scale {ref_scale})"

    print("KERNEL_OK")
</pallas_src>

<mosaic_0001>
module attributes {stable_mosaic.version = 11 : i64} {
  func.func @points_pool_kernel(%arg0: i32, %arg1: memref<16x16x131xf32, #tpu.memory_space<vmem>>, %arg2: memref<131x64xbf16, #tpu.memory_space<vmem>>, %arg3: memref<128x64xbf16, #tpu.memory_space<vmem>>, %arg4: memref<128x128xbf16, #tpu.memory_space<vmem>>, %arg5: memref<8x128xf32, #tpu.memory_space<vmem>>, %arg6: memref<16x256xf32, #tpu.memory_space<vmem>>) attributes {dimension_semantics = [#tpu.dimension_semantics<parallel>], iteration_bounds = array<i64: 2>, scalar_prefetch = 0 : i64, scratch_operands = 0 : i64, tpu.core_type = #tpu.core_type<tc>, window_params = [{transform_indices = @transform_0, window_bounds = array<i64: 16, 16, 131>}, {pipeline_mode = #tpu.pipeline_mode<synchronous>, transform_indices = @transform_1, window_bounds = array<i64: 131, 64>}, {pipeline_mode = #tpu.pipeline_mode<synchronous>, transform_indices = @transform_2, window_bounds = array<i64: 128, 64>}, {pipeline_mode = #tpu.pipeline_mode<synchronous>, transform_indices = @transform_3, window_bounds = array<i64: 128, 128>}, {pipeline_mode = #tpu.pipeline_mode<synchronous>, transform_indices = @transform_4, window_bounds = array<i64: 8, 128>}, {transform_indices = @transform_5, window_bounds = array<i64: 16, 256>}]} {
    %c0 = arith.constant 0 : index
    %c0_0 = arith.constant 0 : index
    %c0_1 = arith.constant 0 : index
    %0 = vector.load %arg1[%c0, %c0_0, %c0_1] : memref<16x16x131xf32, #tpu.memory_space<vmem>>, vector<16x16x131xf32>
    %1 = arith.truncf %0 : vector<16x16x131xf32> to vector<16x16x131xbf16>
    %cst = arith.constant dense<0xFF80> : vector<16x16xbf16>
    %2 = vector.multi_reduction <maximumf>, %1, %cst [2] : vector<16x16x131xbf16> to vector<16x16xbf16>
    %3 = vector.shape_cast %2 : vector<16x16xbf16> to vector<16x16x1xbf16>
    %4 = arith.extf %3 : vector<16x16x1xbf16> to vector<16x16x1xf32>
    %5 = math.absf %4 : vector<16x16x1xf32>
    %cst_2 = arith.constant 9.99999993E-9 : f32
    %6 = vector.broadcast %cst_2 : f32 to vector<16x16x1xf32>
    %7 = arith.cmpf ogt, %5, %6 : vector<16x16x1xf32>
    %8 = arith.extui %7 : vector<16x16x1xi1> to vector<16x16x1xi32>
    %9 = arith.sitofp %8 : vector<16x16x1xi32> to vector<16x16x1xf32>
    %cst_3 = arith.constant dense<0xFF800000> : vector<16x1xf32>
    %10 = vector.multi_reduction <maximumf>, %9, %cst_3 [1] : vector<16x16x1xf32> to vector<16x1xf32>
    %cst_4 = arith.constant dense<0x7F800000> : vector<16x1xf32>
    %11 = vector.multi_reduction <minimumf>, %9, %cst_4 [1] : vector<16x16x1xf32> to vector<16x1xf32>
    %c0_5 = arith.constant 0 : index
    %c0_6 = arith.constant 0 : index
    %12 = vector.load %arg5[%c0_5, %c0_6] : memref<8x128xf32, #tpu.memory_space<vmem>>, vector<8x128xf32>
    %13 = vector.extract_strided_slice %12 {offsets = [0, 0], sizes = [1, 64], strides = [1, 1]} : vector<8x128xf32> to vector<1x64xf32>
    %14 = vector.extract_strided_slice %12 {offsets = [1, 0], sizes = [1, 64], strides = [1, 1]} : vector<8x128xf32> to vector<1x64xf32>
    %15 = vector.extract_strided_slice %12 {offsets = [2, 0], sizes = [1, 64], strides = [1, 1]} : vector<8x128xf32> to vector<1x64xf32>
    %16 = vector.extract_strided_slice %12 {offsets = [3, 0], sizes = [1, 64], strides = [1, 1]} : vector<8x128xf32> to vector<1x64xf32>
    %17 = vector.extract_strided_slice %12 {offsets = [4, 0], sizes = [1, 128], strides = [1, 1]} : vector<8x128xf32> to vector<1x128xf32>
    %18 = vector.extract_strided_slice %12 {offsets = [5, 0], sizes = [1, 128], strides = [1, 1]} : vector<8x128xf32> to vector<1x128xf32>
    %c0_7 = arith.constant 0 : index
    %c0_8 = arith.constant 0 : index
    %19 = vector.load %arg3[%c0_7, %c0_8] : memref<128x64xbf16, #tpu.memory_space<vmem>>, vector<128x64xbf16>
    %c0_9 = arith.constant 0 : index
    %c0_10 = arith.constant 0 : index
    %20 = vector.load %arg4[%c0_9, %c0_10] : memref<128x128xbf16, #tpu.memory_space<vmem>>, vector<128x128xbf16>
    %21 = vector.extract_strided_slice %19 {offsets = [0, 0], sizes = [64, 64], strides = [1, 1]} : vector<128x64xbf16> to vector<64x64xbf16>
    %22 = vector.extract_strided_slice %19 {offsets = [64, 0], sizes = [64, 64], strides = [1, 1]} : vector<128x64xbf16> to vector<64x64xbf16>
    %23 = vector.extract_strided_slice %20 {offsets = [0, 0], sizes = [64, 128], strides = [1, 1]} : vector<128x128xbf16> to vector<64x128xbf16>
    %24 = vector.extract_strided_slice %20 {offsets = [64, 0], sizes = [64, 128], strides = [1, 1]} : vector<128x128xbf16> to vector<64x128xbf16>
    %25 = vector.shape_cast %1 : vector<16x16x131xbf16> to vector<256x131xbf16>
    %c0_11 = arith.constant 0 : index
    %c0_12 = arith.constant 0 : index
    %26 = vector.load %arg2[%c0_11, %c0_12] : memref<131x64xbf16, #tpu.memory_space<vmem>>, vector<131x64xbf16>
    %cst_13 = arith.constant dense<0.000000e+00> : vector<256x64xf32>
    %27 = tpu.matmul %25, %26, %cst_13 {dimension_numbers = #tpu.dot_dimension_numbers<[1], [0], [0], [1], [0, 0, 1, 1], [], []>} : vector<256x131xbf16>, vector<131x64xbf16>, vector<256x64xf32> -> vector<256x64xf32>
    %28 = vector.broadcast %13 : vector<1x64xf32> to vector<256x64xf32>
    %29 = arith.addf %27, %28 : vector<256x64xf32>
    %cst_14 = arith.constant 0.000000e+00 : f32
    %30 = vector.broadcast %cst_14 : f32 to vector<256x64xf32>
    %31 = arith.maximumf %29, %30 : vector<256x64xf32>
    %32 = vector.broadcast %14 : vector<1x64xf32> to vector<256x64xf32>
    %33 = arith.addf %31, %32 : vector<256x64xf32>
    %34 = vector.shape_cast %33 : vector<256x64xf32> to vector<16x16x64xf32>
    %cst_15 = arith.constant dense<0xFF800000> : vector<16x64xf32>
    %35 = vector.multi_reduction <maximumf>, %34, %cst_15 [1] : vector<16x16x64xf32> to vector<16x64xf32>
    %36 = arith.truncf %33 : vector<256x64xf32> to vector<256x64xbf16>
    %cst_16 = arith.constant dense<0.000000e+00> : vector<256x64xf32>
    %37 = tpu.matmul %36, %21, %cst_16 {dimension_numbers = #tpu.dot_dimension_numbers<[1], [0], [0], [1], [0, 0, 1, 1], [], []>} : vector<256x64xbf16>, vector<64x64xbf16>, vector<256x64xf32> -> vector<256x64xf32>
    %38 = arith.truncf %35 : vector<16x64xf32> to vector<16x64xbf16>
    %cst_17 = arith.constant dense<0.000000e+00> : vector<16x64xf32>
    %39 = tpu.matmul %38, %22, %cst_17 {dimension_numbers = #tpu.dot_dimension_numbers<[1], [0], [0], [1], [0, 0, 1, 1], [], []>} : vector<16x64xbf16>, vector<64x64xbf16>, vector<16x64xf32> -> vector<16x64xf32>
    %40 = vector.shape_cast %37 : vector<256x64xf32> to vector<16x16x64xf32>
    %41 = vector.shape_cast %39 : vector<16x64xf32> to vector<16x1x64xf32>
    %42 = vector.broadcast %41 : vector<16x1x64xf32> to vector<16x16x64xf32>
    %43 = arith.addf %40, %42 : vector<16x16x64xf32>
    %44 = vector.broadcast %9 : vector<16x16x1xf32> to vector<16x16x64xf32>
    %45 = arith.mulf %43, %44 : vector<16x16x64xf32>
    %46 = vector.shape_cast %45 : vector<16x16x64xf32> to vector<256x64xf32>
    %47 = vector.broadcast %15 : vector<1x64xf32> to vector<256x64xf32>
    %48 = arith.addf %46, %47 : vector<256x64xf32>
    %cst_18 = arith.constant 0.000000e+00 : f32
    %49 = vector.broadcast %cst_18 : f32 to vector<256x64xf32>
    %50 = arith.maximumf %48, %49 : vector<256x64xf32>
    %51 = vector.broadcast %16 : vector<1x64xf32> to vector<256x64xf32>
    %52 = arith.addf %50, %51 : vector<256x64xf32>
    %53 = vector.shape_cast %52 : vector<256x64xf32> to vector<16x16x64xf32>
    %cst_19 = arith.constant dense<0xFF800000> : vector<16x64xf32>
    %54 = vector.multi_reduction <maximumf>, %53, %cst_19 [1] : vector<16x16x64xf32> to vector<16x64xf32>
    %55 = arith.truncf %52 : vector<256x64xf32> to vector<256x64xbf16>
    %cst_20 = arith.constant dense<0.000000e+00> : vector<256x128xf32>
    %56 = tpu.matmul %55, %23, %cst_20 {dimension_numbers = #tpu.dot_dimension_numbers<[1], [0], [0], [1], [0, 0, 1, 1], [], []>} : vector<256x64xbf16>, vector<64x128xbf16>, vector<256x128xf32> -> vector<256x128xf32>
    %57 = arith.truncf %54 : vector<16x64xf32> to vector<16x64xbf16>
    %cst_21 = arith.constant dense<0.000000e+00> : vector<16x128xf32>
    %58 = tpu.matmul %57, %24, %cst_21 {dimension_numbers = #tpu.dot_dimension_numbers<[1], [0], [0], [1], [0, 0, 1, 1], [], []>} : vector<16x64xbf16>, vector<64x128xbf16>, vector<16x128xf32> -> vector<16x128xf32>
    %59 = vector.shape_cast %56 : vector<256x128xf32> to vector<16x16x128xf32>
    %60 = vector.shape_cast %58 : vector<16x128xf32> to vector<16x1x128xf32>
    %61 = vector.broadcast %60 : vector<16x1x128xf32> to vector<16x16x128xf32>
    %62 = arith.addf %59, %61 : vector<16x16x128xf32>
    %63 = vector.broadcast %9 : vector<16x16x1xf32> to vector<16x16x128xf32>
    %64 = arith.mulf %62, %63 : vector<16x16x128xf32>
    %65 = vector.shape_cast %64 : vector<16x16x128xf32> to vector<256x128xf32>
    %66 = vector.broadcast %17 : vector<1x128xf32> to vector<256x128xf32>
    %67 = arith.addf %65, %66 : vector<256x128xf32>
    %cst_22 = arith.constant 0.000000e+00 : f32
    %68 = vector.broadcast %cst_22 : f32 to vector<256x128xf32>
    %69 = arith.maximumf %67, %68 : vector<256x128xf32>
    %70 = vector.broadcast %18 : vector<1x128xf32> to vector<256x128xf32>
    %71 = arith.addf %69, %70 : vector<256x128xf32>
    %72 = vector.shape_cast %71 : vector<256x128xf32> to vector<16x16x128xf32>
    %cst_23 = arith.constant dense<0xFF800000> : vector<16x128xf32>
    %73 = vector.multi_reduction <maximumf>, %72, %cst_23 [1] : vector<16x16x128xf32> to vector<16x128xf32>
    %74 = vector.broadcast %9 : vector<16x16x1xf32> to vector<16x16x128xf32>
    %75 = arith.mulf %72, %74 : vector<16x16x128xf32>
    %cst_24 = arith.constant dense<0xFF800000> : vector<16x128xf32>
    %76 = vector.multi_reduction <maximumf>, %75, %cst_24 [1] : vector<16x16x128xf32> to vector<16x128xf32>
    %cst_25 = arith.constant 0.000000e+00 : f32
    %77 = vector.broadcast %cst_25 : f32 to vector<16x128xf32>
    %78 = arith.cmpf oge, %73, %77 : vector<16x128xf32>
    %79 = vector.broadcast %10 : vector<16x1xf32> to vector<16x128xf32>
    %80 = arith.mulf %73, %79 : vector<16x128xf32>
    %81 = vector.broadcast %11 : vector<16x1xf32> to vector<16x128xf32>
    %82 = arith.mulf %73, %81 : vector<16x128xf32>
    %83 = arith.select %78, %80, %82 : vector<16x128xi1>, vector<16x128xf32>
    %c0_26 = arith.constant 0 : index
    %c0_27 = arith.constant 0 : index
    %84 = vector.load %arg6[%c0_26, %c0_27] : memref<16x256xf32, #tpu.memory_space<vmem>>, vector<16x128xf32>
    tpu.vector_store %arg6[%c0_26, %c0_27], %76 {strides = array<i32>} : memref<16x256xf32, #tpu.memory_space<vmem>>, vector<16x128xf32>,
    %c0_28 = arith.constant 0 : index
    %c128 = arith.constant 128 : index
    %85 = vector.load %arg6[%c0_28, %c128] : memref<16x256xf32, #tpu.memory_space<vmem>>, vector<16x128xf32>
    tpu.vector_store %arg6[%c0_28, %c128], %83 {strides = array<i32>} : memref<16x256xf32, #tpu.memory_space<vmem>>, vector<16x128xf32>,
    return
  }
  func.func @transform_0(%arg0: i32) -> (i32, i32, i32) {
    %c0_i32 = arith.constant 0 : i32
    %c0_i32_0 = arith.constant 0 : i32
    %c0_i32_1 = arith.constant 0 : i32
    return %arg0, %c0_i32, %c0_i32_0 : i32, i32, i32
  }
  func.func @transform_1(%arg0: i32) -> (i32, i32) {
    %c0_i32 = arith.constant 0 : i32
    %c0_i32_0 = arith.constant 0 : i32
    %c0_i32_1 = arith.constant 0 : i32
    return %c0_i32, %c0_i32_0 : i32, i32
  }
  func.func @transform_2(%arg0: i32) -> (i32, i32) {
    %c0_i32 = arith.constant 0 : i32
    %c0_i32_0 = arith.constant 0 : i32
    %c0_i32_1 = arith.constant 0 : i32
    return %c0_i32, %c0_i32_0 : i32, i32
  }
  func.func @transform_3(%arg0: i32) -> (i32, i32) {
    %c0_i32 = arith.constant 0 : i32
    %c0_i32_0 = arith.constant 0 : i32
    %c0_i32_1 = arith.constant 0 : i32
    return %c0_i32, %c0_i32_0 : i32, i32
  }
  func.func @transform_4(%arg0: i32) -> (i32, i32) {
    %c0_i32 = arith.constant 0 : i32
    %c0_i32_0 = arith.constant 0 : i32
    %c0_i32_1 = arith.constant 0 : i32
    return %c0_i32, %c0_i32_0 : i32, i32
  }
  func.func @transform_5(%arg0: i32) -> (i32, i32) {
    %c0_i32 = arith.constant 0 : i32
    %c0_i32_0 = arith.constant 0 : i32
    return %arg0, %c0_i32 : i32, i32
  }
}

</mosaic_0001>

<bundles_post_ra>
// kernel: tpu_custom_call.1
= control target key start
LH: loop header
LB: loop body
LE: loop exit
PB: predicated region body
PF: predicated region fallthrough
CT: control target
= control target key end

     0   :  { %10 = vsyncpa [#allocation3], 0  ;;  %s5402_s0 = inlined_call_operand.hbm [shape: f32[32,16,131], index: 0, kind: input, shape index: {}]   ;;  %s5403_s1 = inlined_call_operand.vmem [shape: bf16[131,64], index: 1, kind: input, shape index: {}]   ;;  %s5404_s2 = inlined_call_operand.vmem [shape: bf16[128,64], index: 2, kind: input, shape index: {}]   ;;  %s5405_s3 = inlined_call_operand.vmem [shape: bf16[128,128], index: 3, kind: input, shape index: {}]   ;;  %s5406_s4 = inlined_call_operand.vmem [shape: f32[8,128], index: 4, kind: input, shape index: {}]   ;;  %s5407_s5 = inlined_call_operand.hbm [shape: f32[32,256], index: 5, kind: output, shape index: {}]  }
   0x1   :  { %12 = vsyncpa [#allocation3 + $0x1], 0 }
   0x2   :  { %13 = vsyncpa [#allocation4], 0 }
   0x3   :  { %15 = vsyncpa [#allocation4 + $0x1], 0  ;;  %s3663_s18 = smov 0   ;;  %s3665_s19 = smov 0  }
   0x4   :  { %s3667_s20 = smov 0   ;;  %s3669_s21 = smov 0  }
   0x5 LB: > { %s3684_s22 = sadd.s32 4294967295, %s3625_s21   ;;  %s3254_s23 = sadd.s32 4294967294, %s3625_s21   ;;  %s3625_s21 = sphi %s3669_s21, %s5632_s21   ;;  %s3621_s20 = sphi %s3667_s20, %s5631_s20   ;;  %s3617_s19 = sphi %s3665_s19, %s5630_s19   ;;  %s3613_s18 = sphi %s3663_s18, %s5629_s18  }
   0x6   : > { %s3688_s24 = sadd.s32 1, %s3625_s21   ;;  %s28_s25 = sadd.s32 1, %s3621_s20 }
   0x7   : > { %s25_s26 = ssub.s32 %s3625_s21, %s3688_s24  ;;  %p35_p0 = scmp.ne.s32.totalorder %s3621_s20, %s3617_s19 }
   0x8   : > { %p26_p1 = scmp.eq.s32.totalorder %s25_s26, 0  ;;  %p36_p2 = scmp.eq.s32.totalorder %s3625_s21, 0 }
   0x9   : > { %p41_p3 = scmp.ne.s32.totalorder %s3617_s19, %s3613_s18  ;;  %p42_p4 = scmp.eq.s32.totalorder %s3684_s22, 0 }
   0xa   : > { %s3700_s27 = scalar_select %p26_p1, %s3621_s20, %s28_s25  }
   0xb   : > { %p3702_p5 = por %p36_p2, %p35_p0  ;;  %p3706_p6 = por %p42_p4, %p41_p3 }
   0xc   : > { %p149_p7 = scmp.eq.s32.totalorder %s3684_s22, 1  ;;  %p155_p8 = scmp.eq.s32.totalorder %s3254_s23, 1 }
   0xd   : > { %p3488_p10 = scmp.lt.s32.totalorder %s3625_s21, 2  ;;  %s187_s7 = sand.u32 1, %s3621_s20  }
   0xe   : > { %p3713_p11 = por %p149_p7, %p35_p0  ;;  %p3717_p12 = por %p155_p8, %p41_p3 }
   0xf   : > { %s3449_s8 = sshll.u32 %s3625_s21, 9  ;;  %s3257_s9 = sshll.u32 %s187_s7, 9 }
  0x10   : > { %s197_s12 = scalar_lea.hbm %s5402_s0, %s3449_s8  ;;  %s191_s14 = scalar_lea.vmem [#allocation2], %s3257_s9 }
  0x11   : > { %s198_s13 = sshll.u32 %s197_s12, 4  ;;  %s200_s15 = sshll.u32 %s191_s14, 4  ;;  %s199_s13 = int_to_ptr.hbm [resolvable:$true] %s198_s13  ;;  %s201_s15 = int_to_ptr.vmem [resolvable:$true] %s200_s15 }
  0x12   : > { %p3728_p13 = pnand %p3488_p10, %p3702_p5  ;;  %p3261_p0 = scmp.ge.s32.totalorder %s3625_s21, 1 }
  0x13   : > { %p208_p1 = scmp.lt.s32.totalorder %s3625_s21, 3  ;;  %s188_s17 = scalar_lea.sflag [#allocation3], %s187_s7 }
  0x14   : > { %s3529_s23 = sshra.s32 %s199_s13, 4  ;;  %p3533_p3 = pneg %p3728_p13  ;;  %s3530_s23 = int_to_ptr.hbm [resolvable:$true] %s3529_s23 }
  0x15   : > { %s3531_s25 = scalar_lea.hbm %s3530_s23, 512  ;;  %s3536_s28 = scalar_lea.hbm %s5402_s0, 1024 }
  0x16   : > { %p3532_p2 = scmp.ne.s32.totalorder %s3530_s23, %s3531_s25  ;;  %p3537_p5 = scmp.lt.s32.totalorder %s3530_s23, %s5402_s0 }
  0x17   : > { %p3538_p8 = scmp.lt.s32.totalorder %s3536_s28, %s3531_s25 }
  0x18   : > { %p3534_p4 = pnand %p3533_p3, %p3532_p2 }
  0x19   : > { %p3539_p10 = por %p3538_p8, %p3537_p5 }
  0x1a   : > { %p3535_p7 = pneg %p3534_p4 }
  0x1c   : > { %p3540_p9 = pnand %p3539_p10, %p3535_p7 }
  0x1e   : > { %3543 = shalt.err (!%p3540_p9)
}
  0x1f   : > { %s3627_s7 = smov 256   ;;  %s3628_s11 = smov 16  }
  0x20   : > { %3483 = dma.hbm_to_vmem [thread:$0]  (!%p3728_p13), %s199_s13, 8192, %s201_s15, %s188_s17, %s3627_s7, %s3627_s7, %s3628_s11  }
  0x21   : > { %p209_p2 = pnand %p3261_p0, %p208_p1 }
  0x23   : > { %212 = sbr.rel (%p209_p2) target bundleno = 1082 (0x43a), region = 40 }
  0x28   : > { %s3749_s12 = sand.u32 1, %s3617_s19  }
  0x29   : > { %s3262_s14 = sshll.u32 %s3749_s12, 9  ;;  %s215_s23 = scalar_lea.sflag [#allocation3], %s3749_s12 }
  0x2a   : > { %s3753_s25 = scalar_lea.vmem [#allocation2], %s3262_s14 }
  0x2b   : > { %3604 = dma.done.wait (%p3706_p6), %s215_s23, 8192  }
  0x2c   : > { %3606 = vsyncadd (%p3706_p6), %s215_s23, 4294959104  ;;  %vm1248_vm0 = vcmask 1040384   ;;  %v3473_v0 = vld [vmem:[%s5403_s1 + $0x38] sm:$0xff]  ;;  %vm1249_vm1 = vcmask 1041408   ;;  %v3629_v1 = vmov 65535   ;;  %v3472_v3 = vld [vmem:[%s5403_s1 + $0x30] sm:$0xff] }
  0x2d   : > { %v1250_v2 = vsel %vm1248_vm0, 4294967295, %v3629_v1  ;;  %1255 = vmatpush.bf16.msra.mxu0 %v3473_v0  ;;  %v1003_v4 = vld [vmem:[%s5403_s1 + $0x40] sm:$0x3]  ;;  %v250_v7 = vld [vmem:[%s3753_s25 + $0x8] sm:$0xff]  ;;  %v251_v8 = vld [vmem:[%s3753_s25 + $0x10] sm:$0xff]  ;;  %vm409_vm2 = vcmask 23552  }
  0x2e   : > { %v249_v5 = vld [vmem:[%s3753_s25] sm:$0xff]  ;;  %v1182_v6 = vunpack.c.l.b16 %v1003_v4  ;;  %v252_v9 = vld [vmem:[%s3753_s25 + $0x18] sm:$0xff]  ;;  %v1251_v10 = vsel %vm1249_vm1, %v1250_v2, 0  ;;  %v3471_v14 = vld [vmem:[%s5403_s1 + $0x28] sm:$0xff]  ;;  %vm1498_vm3 = vcmask 523264   ;;  %vm1868_vm4 = vcmask 1041409  }
  0x2f   : > { %v3772_v11 = vpack.c.bf16 %v250_v7, %v249_v5  ;;  %v3774_v12 = vpack.c.bf16 %v252_v9, %v251_v8  ;;  %v3470_v19 = vld [vmem:[%s5403_s1 + $0x20] sm:$0xff]  ;;  %v254_v21 = vld [vmem:[%s3753_s25 + $0x28] sm:$0xff]  ;;  %v255_v22 = vld [vmem:[%s3753_s25 + $0x30] sm:$0xff]  ;;  %vm1870_vm5 = vcmask 1042434   ;;  %vm1872_vm6 = vcmask 1043459   ;;  %s3263_s7 = sshll.u32 %s3749_s12, 5 }
  0x30   : > { %v1191_v13 = vpack.c.b16 %v1182_v6, %v1182_v6  ;;  %v253_v20 = vld [vmem:[%s3753_s25 + $0x20] sm:$0xff]  ;;  %v256_v23 = vld [vmem:[%s3753_s25 + $0x38] sm:$0xff]  ;;  %v3468_v27 = vld [vmem:[%s5403_s1 + $0x10] sm:$0xff]  ;;  %vm1874_vm7 = vcmask 1044484   ;;  %vm1876_vm8 = vcmask 1045509   ;;  %vm5413_vm9 = vcmask 1046534  }
  0x31   : > { %1256 = vmatpush.bf16.msra.mxu0 %v3472_v3  ;;  %v1038_v15 = vunpack.c.h.b16 %v3772_v11  ;;  %v1040_v16 = vunpack.c.h.b16 %v3774_v12  ;;  %v3469_v24 = vld [vmem:[%s5403_s1 + $0x18] sm:$0xff]  ;;  %v3792_v25 = vpack.c.bf16 %v254_v21, %v253_v20  ;;  %v3794_v26 = vpack.c.bf16 %v256_v23, %v255_v22  ;;  %v3467_v30 = vld [vmem:[%s5403_s1 + $0x8] sm:$0xff]  ;;  %v3466_v34 = vld [vmem:[%s5403_s1] sm:$0xff]  ;;  %s5252_s11 = scalar_lea.vmem [#allocation5], %s3263_s7  ;;  %s3475_s14 = sshll.u32 %s3684_s22, 5 }
  0x32   : > { %v1253_v17 = vand.u32 %v1251_v10, %v1191_v13  ;;  %v1037_v32 = vunpack.c.l.b16 %v3772_v11  ;;  %v1039_v33 = vunpack.c.l.b16 %v3774_v12  ;;  %v257_v35 = vld [vmem:[%s3753_s25 + $0x40] sm:$0xff]  ;;  %v258_v37 = vld [vmem:[%s3753_s25 + $0x48] sm:$0xff]  ;;  %v259_v38 = vld [vmem:[%s3753_s25 + $0x50] sm:$0xff]  ;;  %vm5412_vm10 = vcmask 1047559   ;;  %s3177_s13 = scalar_lea.hbm %s5407_s5, %s3475_s14  ;;  %s3178_s22 = sshll.u32 %s5252_s11, 4  ;;  %s3179_s22 = int_to_ptr.vmem [resolvable:$true] %s3178_s22 }
  0x33   : > { %v1102_v18 = vpack.c.b16 %v1040_v16, %v1038_v15  ;;  %v1042_v28 = vunpack.c.h.b16 %v3792_v25  ;;  %v1044_v29 = vunpack.c.h.b16 %v3794_v26  ;;  %v260_v39 = vld [vmem:[%s3753_s25 + $0x58] sm:$0xff]  ;;  %v3814_v40 = vpack.c.bf16 %v258_v37, %v257_v35  ;;  %v261_v47 = vld [vmem:[%s3753_s25 + $0x60] sm:$0xff]  ;;  %v262_v49 = vld [vmem:[%s3753_s25 + $0x68] sm:$0xff]  ;;  %s3180_s15 = sshll.u32 %s3177_s13, 4  ;;  %s3165_s16 = scalar_lea.sflag [#allocation4], %s3749_s12  ;;  %s3181_s15 = int_to_ptr.hbm [resolvable:$true] %s3180_s15 }
  0x34   : > { %1351 = vmatpush.bf16.msra.mxu1 %v1253_v17  ;;  %v1101_v36 = vpack.c.b16 %v1039_v33, %v1037_v32  ;;  %v3816_v41 = vpack.c.bf16 %v260_v39, %v259_v38  ;;  %v1041_v45 = vunpack.c.l.b16 %v3792_v25  ;;  %v1043_v46 = vunpack.c.l.b16 %v3794_v26  ;;  %v263_v50 = vld [vmem:[%s3753_s25 + $0x70] sm:$0xff]  ;;  %v264_v51 = vld [vmem:[%s3753_s25 + $0x78] sm:$0xff]  ;;  %v265_v59 = vld [vmem:[%s3753_s25 + $0x80] sm:$0xff]  ;;  %s3573_s17 = sshra.s32 %s3181_s15, 4  ;;  %s3579_s28 = scalar_lea.hbm %s5407_s5, 64  ;;  %s3574_s17 = int_to_ptr.hbm [resolvable:$true] %s3573_s17 }
  0x35   : > { %1257 = vmatpush.bf16.msra.mxu0 %v3471_v14  ;;  %v1104_v31 = vpack.c.b16 %v1044_v29, %v1042_v28  ;;  %v1046_v42 = vunpack.c.h.b16 %v3814_v40  ;;  %v3827_v52 = vpack.c.bf16 %v262_v49, %v261_v47  ;;  %v3829_v53 = vpack.c.bf16 %v264_v51, %v263_v50  ;;  %v266_v61 = vld [vmem:[%s3753_s25 + $0x88] sm:$0xff]  ;;  %v267_v62 = vld [vmem:[%s3753_s25 + $0x90] sm:$0xff]  ;;  %v268_v63 = vld [vmem:[%s3753_s25 + $0x98] sm:$0xff]  ;;  %s3575_s26 = scalar_lea.hbm %s3574_s17, 32  ;;  %p3580_p0 = scmp.lt.s32.totalorder %s3574_s17, %s5407_s5 }
  0x36   : > { %v1048_v43 = vunpack.c.h.b16 %v3816_v41  ;;  %v1103_v48 = vpack.c.b16 %v1043_v46, %v1041_v45  ;;  %v1045_v57 = vunpack.c.l.b16 %v3814_v40  ;;  %v1047_v58 = vunpack.c.l.b16 %v3816_v41  ;;  %v269_v7 = vld [vmem:[%s3753_s25 + $0xa0] sm:$0xff]  ;;  %v270_v9 = vld [vmem:[%s3753_s25 + $0xa8] sm:$0xff]  ;;  %v271_v10 = vld [vmem:[%s3753_s25 + $0xb0] sm:$0xff]  ;;  %p3576_p6 = scmp.ne.s32.totalorder %s3574_s17, %s3575_s26  ;;  %p3581_p1 = scmp.lt.s32.totalorder %s3579_s28, %s3575_s26 }
  0x37   : > { %3328 = vmatmul.msk.bf16.vlgmr.msra.gmra.mxu1 %vm409_vm2, %v1102_v18  ;;  %v1050_v54 = vunpack.c.h.b16 %v3827_v52  ;;  %v1052_v55 = vunpack.c.h.b16 %v3829_v53  ;;  %v3840_v0 = vpack.c.bf16 %v266_v61, %v265_v59  ;;  %v3842_v1 = vpack.c.bf16 %v268_v63, %v267_v62  ;;  %v272_v13 = vld [vmem:[%s3753_s25 + $0xb8] sm:$0xff]  ;;  %v273_v21 = vld [vmem:[%s3753_s25 + $0xc0] sm:$0xff]  ;;  %v274_v23 = vld [vmem:[%s3753_s25 + $0xc8] sm:$0xff] }
  0x38   : > { %v1106_v44 = vpack.c.b16 %v1048_v43, %v1046_v42  ;;  %v1105_v60 = vpack.c.b16 %v1047_v58, %v1045_v57  ;;  %v1049_v5 = vunpack.c.l.b16 %v3827_v52  ;;  %v1051_v6 = vunpack.c.l.b16 %v3829_v53  ;;  %v277_v35 = vld [vmem:[%s3753_s25 + $0xe0] sm:$0xff]  ;;  %v278_v37 = vld [vmem:[%s3753_s25 + $0xe8] sm:$0xff]  ;;  %v279_v38 = vld [vmem:[%s3753_s25 + $0xf0] sm:$0xff]  ;;  %p3577_p9 = pnand %p3576_p6, %p3713_p11  ;;  %p3582_p3 = por %p3581_p1, %p3580_p0 }
  0x39   : > { %1258 = vmatpush.bf16.msra.mxu0 %v3470_v19  ;;  %v1108_v56 = vpack.c.b16 %v1052_v55, %v1050_v54  ;;  %v1054_v2 = vunpack.c.h.b16 %v3840_v0  ;;  %v1056_v3 = vunpack.c.h.b16 %v3842_v1  ;;  %v3853_v14 = vpack.c.bf16 %v270_v9, %v269_v7  ;;  %v280_v39 = vld [vmem:[%s3753_s25 + $0xf8] sm:$0xff]  ;;  %v281_v49 = vld [vmem:[%s3753_s25 + $0x100] sm:$0xff]  ;;  %v282_v51 = vld [vmem:[%s3753_s25 + $0x108] sm:$0xff] }
  0x3a   : > { %v1107_v8 = vpack.c.b16 %v1051_v6, %v1049_v5  ;;  %v3855_v15 = vpack.c.bf16 %v272_v13, %v271_v10  ;;  %v1053_v19 = vunpack.c.l.b16 %v3840_v0  ;;  %v1055_v20 = vunpack.c.l.b16 %v3842_v1  ;;  %v283_v54 = vld [vmem:[%s3753_s25 + $0x110] sm:$0xff]  ;;  %v284_v55 = vld [vmem:[%s3753_s25 + $0x118] sm:$0xff]  ;;  %v3451_v63 = vld [vmem:[%s5404_s2 + $0x8] sm:$0xff]  ;;  %p3578_p13 = pneg %p3577_p9 }
  0x3b   : > { %v1110_v4 = vpack.c.b16 %v1056_v3, %v1054_v2  ;;  %v1058_v16 = vunpack.c.h.b16 %v3853_v14  ;;  %v3866_v28 = vpack.c.bf16 %v274_v23, %v273_v21  ;;  %v1057_v33 = vunpack.c.l.b16 %v3853_v14  ;;  %v3453_v58 = vld [vmem:[%s5404_s2 + $0x18] sm:$0xff]  ;;  %v3452_v61 = vld [vmem:[%s5404_s2 + $0x10] sm:$0xff]  ;;  %v285_v5 = vld [vmem:[%s3753_s25 + $0x120] sm:$0xff] }
  0x3c   : > { %v1060_v17 = vunpack.c.h.b16 %v3855_v15  ;;  %v1109_v22 = vpack.c.b16 %v1055_v20, %v1053_v19  ;;  %v3879_v42 = vpack.c.bf16 %v278_v37, %v277_v35  ;;  %v3881_v43 = vpack.c.bf16 %v280_v39, %v279_v38  ;;  %1735 = vmatpush.bf16.msra.mxu2 %v3453_v58  ;;  %v3450_v6 = vld [vmem:[%s5404_s2] sm:$0xff]  ;;  %v287_v9 = vld [vmem:[%s3753_s25 + $0x130] sm:$0xff]  ;;  %v288_v10 = vld [vmem:[%s3753_s25 + $0x138] sm:$0xff]  ;;  %p3583_p4 = pnand %p3582_p3, %p3578_p13 }
  0x3d   : > { %1259 = vmatpush.bf16.msra.mxu0 %v3469_v24  ;;  %v275_v24 = vld [vmem:[%s3753_s25 + $0xd0] sm:$0xff]  ;;  %v1061_v47 = vunpack.c.l.b16 %v3866_v28  ;;  %v3894_v57 = vpack.c.bf16 %v284_v55, %v283_v54  ;;  %v954_v20 = vld [vmem:[%s5406_s4] sm:$0xff] }
  0x3e   : > { %v1112_v18 = vpack.c.b16 %v1060_v17, %v1058_v16  ;;  %v1068_v45 = vunpack.c.h.b16 %v3881_v43  ;;  %v1065_v2 = vunpack.c.l.b16 %v3879_v42  ;;  %v1067_v3 = vunpack.c.l.b16 %v3881_v43 }
  0x3f   : > { %v3919_v16 = vpack.c.bf16 %v288_v10, %v287_v9  ;;  %v1071_v23 = vunpack.c.l.b16 %v3894_v57 }
  0x40   : > { %1736 = vmatpush.bf16.msra.mxu2 %v3452_v61  ;;  %v1115_v7 = vpack.c.b16 %v1067_v3, %v1065_v2  ;;  %v294_v3 = vld [vmem:[%s3753_s25 + $0x168] sm:$0xff] }
  0x41   : > { %1260 = vmatpush.bf16.msra.mxu0 %v3468_v27  ;;  %v276_v27 = vld [vmem:[%s3753_s25 + $0xd8] sm:$0xff]  ;;  %v1076_v19 = vunpack.c.h.b16 %v3919_v16  ;;  %v1075_v58 = vunpack.c.l.b16 %v3919_v16 }
  0x42   : > { %v3868_v29 = vpack.c.bf16 %v276_v27, %v275_v24  ;;  %v3928_v27 = vperm.slane %v954_v20, 0 }
  0x44   : > { %1737 = vmatpush.bf16.msra.mxu2 %v3451_v63 }
  0x45   : > { %1261 = vmatpush.bf16.msra.mxu0 %v3467_v30  ;;  %v1062_v30 = vunpack.c.h.b16 %v3866_v28 }
  0x47   : > { %3329 = vmatmul.msk.bf16.gmra.mxu1 %vm409_vm2, %v1104_v31  ;;  %v1064_v31 = vunpack.c.h.b16 %v3868_v29 }
  0x48   : > { %1738 = vmatpush.bf16.msra.mxu2 %v3450_v6 }
  0x49   : > { %1262 = vmatpush.bf16.msra.mxu0 %v3466_v34  ;;  %v1114_v32 = vpack.c.b16 %v1064_v31, %v1062_v30  ;;  %v1059_v34 = vunpack.c.l.b16 %v3855_v15  ;;  %v289_v30 = vld [vmem:[%s3753_s25 + $0x140] sm:$0xff] }
  0x4c   : > { %1263 = vmatmul.bf16.vlgmr.msra.gmra.mxu0 %v1101_v36  ;;  %v1111_v36 = vpack.c.b16 %v1059_v34, %v1057_v33  ;;  %v291_v33 = vld [vmem:[%s3753_s25 + $0x150] sm:$0xff]  ;;  %v292_v34 = vld [vmem:[%s3753_s25 + $0x158] sm:$0xff] }
  0x4d   : > { %v3938_v38 = vpack.c.bf16 %v292_v34, %v291_v33 }
  0x57   : > { %3330 = vmatmul.msk.bf16.gmra.mxu1 %vm409_vm2, %v1106_v44  ;;  %v1066_v44 = vunpack.c.h.b16 %v3879_v42 }
  0x59   : > { %v1116_v46 = vpack.c.b16 %v1068_v45, %v1066_v44 }
  0x5c   : > { %1268 = vmatmul.bf16.gmra.mxu0 %v1103_v48  ;;  %v1063_v48 = vunpack.c.l.b16 %v3868_v29 }
  0x5e   : > { %v1113_v50 = vpack.c.b16 %v1063_v48, %v1061_v47 }
  0x67   : > { %3331 = vmatmul.msk.bf16.gmra.mxu1 %vm409_vm2, %v1108_v56  ;;  %v3892_v56 = vpack.c.bf16 %v282_v51, %v281_v49  ;;  %v3942_v49 = vperm.slane %v954_v20, 1 }
  0x69   : > { %v1070_v59 = vunpack.c.h.b16 %v3892_v56 }
  0x6c   : > { %1273 = vmatmul.bf16.gmra.mxu0 %v1105_v60  ;;  %v1072_v60 = vunpack.c.h.b16 %v3894_v57 }
  0x6e   : > { %v1118_v62 = vpack.c.b16 %v1072_v60, %v1070_v59 }
  0x77   : > { %3332 = vmatmul.msk.bf16.gmra.mxu1 %vm409_vm2, %v1110_v4 }
  0x7c   : > { %1278 = vmatmul.bf16.gmra.mxu0 %v1107_v8  ;;  %v286_v8 = vld [vmem:[%s3753_s25 + $0x128] sm:$0xff] }
  0x7d   : > { %v3917_v13 = vpack.c.bf16 %v286_v8, %v285_v5  ;;  %v296_v5 = vld [vmem:[%s3753_s25 + $0x178] sm:$0xff] }
  0x7f   : > { %v1073_v55 = vunpack.c.l.b16 %v3917_v13 }
  0x81   : > { %v1119_v63 = vpack.c.b16 %v1075_v58, %v1073_v55  ;;  %v298_v55 = vld [vmem:[%s3753_s25 + $0x188] sm:$0xff]  ;;  %v299_v58 = vld [vmem:[%s3753_s25 + $0x190] sm:$0xff] }
  0x87   : > { %3333 = vmatmul.msk.bf16.gmra.mxu1 %vm409_vm2, %v1112_v18  ;;  %v1074_v18 = vunpack.c.h.b16 %v3917_v13 }
  0x89   : > { %v1120_v21 = vpack.c.b16 %v1076_v19, %v1074_v18 }
  0x8c   : > { %1283 = vmatmul.bf16.gmra.mxu0 %v1109_v22  ;;  %v1069_v22 = vunpack.c.l.b16 %v3892_v56 }
  0x8e   : > { %v1117_v31 = vpack.c.b16 %v1071_v23, %v1069_v22 }
  0x97   : > { %3334 = vmatmul.msk.bf16.gmra.mxu1 %vm409_vm2, %v1114_v32  ;;  %v290_v32 = vld [vmem:[%s3753_s25 + $0x148] sm:$0xff] }
  0x98   : > { %v3936_v37 = vpack.c.bf16 %v290_v32, %v289_v30 }
  0x9a   : > { %v1078_v45 = vunpack.c.h.b16 %v3936_v37 }
  0x9c   : > { %1288 = vmatmul.bf16.gmra.mxu0 %v1111_v36 }
  0xa7   : > { %3335 = vmatmul.msk.bf16.gmra.mxu1 %vm409_vm2, %v1116_v46  ;;  %v1080_v46 = vunpack.c.h.b16 %v3938_v38 }
  0xa9   : > { %v1122_v51 = vpack.c.b16 %v1080_v46, %v1078_v45  ;;  %v1079_v45 = vunpack.c.l.b16 %v3938_v38 }
  0xac   : > { %1293 = vmatmul.bf16.gmra.mxu0 %v1113_v50 }
  0xb4   : > { %v1353_v4 = vpop.f32.mrf.mxu1 }
  0xb7   : > { %3336 = vmatmul.msk.bf16.gmra.mxu1 %vm409_vm2, %v1118_v62  ;;  %v293_v62 = vld [vmem:[%s3753_s25 + $0x160] sm:$0xff] }
  0xb8   : > { %v3957_v18 = vpack.c.bf16 %v294_v3, %v293_v62 }
  0xba   : > { %v1082_v23 = vunpack.c.h.b16 %v3957_v18 }
  0xbc   : > { %1298 = vmatmul.bf16.gmra.mxu0 %v1115_v7  ;;  %v1355_v17 = vpop.f32.mrf.mxu1 }
  0xc4   : > { %v1358_v24 = vpop.f32.mrf.mxu1 }
  0xc7   : > { %3337 = vmatmul.msk.bf16.gmra.mxu1 %vm409_vm2, %v1120_v21 }
  0xc9   : > { %v1264_v35 = vpop.f32.mrf.mxu0 }
  0xca   : > { %v1265_v36 = vadd.f32 %v1264_v35, %v3928_v27 }
  0xcc   : > { %1303 = vmatmul.bf16.gmra.mxu0 %v1117_v31  ;;  %v1360_v39 = vpop.f32.mrf.mxu1  ;;  %v1354_v44 = vadd.f32 %v1353_v4, %v1265_v36  ;;  %v295_v4 = vld [vmem:[%s3753_s25 + $0x170] sm:$0xff] }
  0xcd   : > { %v3959_v19 = vpack.c.bf16 %v296_v5, %v295_v4 }
  0xce   : > { %v1433_v48 = vmax.f32 %v1354_v44, 0.0  ;;  %v1077_v44 = vunpack.c.l.b16 %v3936_v37 }
  0xcf   : > { %v1084_v30 = vunpack.c.h.b16 %v3959_v19 }
  0xd0   : > { %v1466_v60 = vadd.f32 %v3942_v49, %v1433_v48 }
  0xd1   : > { %v1266_v47 = vpop.f32.mrf.mxu0  ;;  %v1124_v35 = vpack.c.b16 %v1084_v30, %v1082_v23 }
  0xd2   : > { %v1267_v50 = vadd.f32 %v1266_v47, %v3928_v27  ;;  %v1499_v7 = vsel %vm1498_vm3, %v1466_v60, -inf }
  0xd4   : > { %v1356_v54 = vadd.f32 %v1355_v17, %v1267_v50  ;;  %v1363_v59 = vpop.f32.mrf.mxu1  ;;  %v297_v50 = vld [vmem:[%s3753_s25 + $0x180] sm:$0xff] }
  0xd5   : > { %v3979_v5 = vpack.c.bf16 %v298_v55, %v297_v50 }
  0xd6   : > { %v1434_v61 = vmax.f32 %v1356_v54, 0.0 }
  0xd7   : > { %3338 = vmatmul.msk.bf16.gmra.mxu1 %vm409_vm2, %v1122_v51  ;;  %v1121_v51 = vpack.c.b16 %v1079_v45, %v1077_v44  ;;  %v1083_v44 = vunpack.c.l.b16 %v3959_v19 }
  0xd8   : > { %v1467_v2 = vadd.f32 %v3942_v49, %v1434_v61 }
  0xd9   : > { %v1269_v6 = vpop.f32.mrf.mxu0 }
  0xda   : > { %v1270_v8 = vadd.f32 %v1269_v6, %v3928_v27  ;;  %v1500_v9 = vsel %vm1498_vm3, %v1467_v2, -inf  ;;  %v1643_v10 = vpack.c.bf16 %v1467_v2, %v1466_v60  ;;  %v300_v60 = vld [vmem:[%s3753_s25 + $0x198] sm:$0xff] }
  0xdb   : > { %v1501_v17 = vmax.f32 %v1499_v7, %v1500_v9  ;;  %v3981_v6 = vpack.c.bf16 %v300_v60, %v299_v58  ;;  %v302_v60 = vld [vmem:[%s3753_s25 + $0x1a8] sm:$0xff] }
  0xdc   : > { %1308 = vmatmul.bf16.gmra.mxu0 %v1119_v63  ;;  %3360 = vmatmul.msk.bf16.vlgmr.msra.gmra.mxu2 %vm1498_vm3, %v1643_v10  ;;  %v1365_v20 = vpop.f32.mrf.mxu1  ;;  %v1359_v22 = vadd.f32 %v1358_v24, %v1270_v8 }
  0xdd   : > { %v1502_v21 = vrot.slane %v1501_v17, 4 }
  0xde   : > { %v1435_v33 = vmax.f32 %v1359_v22, 0.0  ;;  %v1088_v22 = vunpack.c.h.b16 %v3981_v6 }
  0xdf   : > { %v1503_v31 = vmax.f32 %v1501_v17, %v1502_v21  ;;  %v1086_v21 = vunpack.c.h.b16 %v3979_v5 }
  0xe0   : > { %v1468_v47 = vadd.f32 %v3942_v49, %v1435_v33 }
  0xe1   : > { %v1271_v32 = vpop.f32.mrf.mxu0  ;;  %v1504_v46 = vrot.slane %v1503_v31, 2 }
  0xe2   : > { %v1272_v34 = vadd.f32 %v1271_v32, %v3928_v27  ;;  %v1508_v62 = vsel %vm1498_vm3, %v1468_v47, -inf }
  0xe4   : > { %v1361_v36 = vadd.f32 %v1360_v39, %v1272_v34  ;;  %v3967_v24 = vpop.f32.mrf.mxu1  ;;  %v1505_v39 = vmax.f32 %v1503_v31, %v1504_v46 }
  0xe6   : > { %v1436_v48 = vmax.f32 %v1361_v36, 0.0  ;;  %v1506_v8 = vrot.slane %v1505_v39, 1 }
  0xe7   : > { %3339 = vmatmul.msk.bf16.gmra.mxu1 %vm409_vm2, %v1124_v35  ;;  %v1126_v35 = vpack.c.b16 %v1088_v22, %v1086_v21 }
  0xe8   : > { %v1469_v54 = vadd.f32 %v3942_v49, %v1436_v48  ;;  %v1507_v23 = vmax.f32 %v1505_v39, %v1506_v8  ;;  %v304_v39 = vld [vmem:[%s3753_s25 + $0x1b8] sm:$0xff] }
  0xe9   : > { %v1274_v61 = vpop.f32.mrf.mxu0 }
  0xea   : > { %v1275_v63 = vadd.f32 %v1274_v61, %v3928_v27  ;;  %v1509_v2 = vsel %vm1498_vm3, %v1469_v54, -inf  ;;  %v1644_v3 = vpack.c.bf16 %v1469_v54, %v1468_v47  ;;  %v1820_v46 = vpack.c.bf16 %v1507_v23, %v1507_v23  ;;  %v301_v54 = vld [vmem:[%s3753_s25 + $0x1a0] sm:$0xff] }
  0xeb   : > { %v1510_v4 = vmax.f32 %v1508_v62, %v1509_v2 }
  0xec   : > { %1313 = vmatmul.bf16.gmra.mxu0 %v1121_v51  ;;  %3361 = vmatmul.msk.bf16.gmra.mxu2 %vm1498_vm3, %v1644_v3  ;;  %v1370_v7 = vpop.f32.mrf.mxu1  ;;  %v1364_v10 = vadd.f32 %v1363_v59, %v1275_v63  ;;  %v1081_v59 = vunpack.c.l.b16 %v3957_v18  ;;  %v1852_v61 = vunpack.c.l.b16 %v1820_v46 }
  0xed   : > { %v1511_v9 = vrot.slane %v1510_v4, 4 }
  0xee   : > { %v1437_v32 = vmax.f32 %v1364_v10, 0.0  ;;  %v1123_v55 = vpack.c.b16 %v1083_v44, %v1081_v59 }
  0xef   : > { %v1512_v17 = vmax.f32 %v1510_v4, %v1511_v9 }
  0xf0   : > { %v1470_v48 = vadd.f32 %v3942_v49, %v1437_v32 }
  0xf1   : > { %v1513_v30 = vrot.slane %v1512_v17, 2  ;;  %v1276_v31 = vpop.f32.mrf.mxu0 }
  0xf2   : > { %v1277_v33 = vadd.f32 %v1276_v31, %v3928_v27  ;;  %v1517_v2 = vsel %vm1498_vm3, %v1470_v48, -inf }
  0xf3   : > { %v1514_v34 = vmax.f32 %v1512_v17, %v1513_v30  ;;  %v4001_v17 = vpack.c.bf16 %v302_v60, %v301_v54 }
  0xf4   : > { %v1366_v36 = vadd.f32 %v1365_v20, %v1277_v33  ;;  %v3989_v45 = vpop.f32.mrf.mxu1  ;;  %v303_v20 = vld [vmem:[%s3753_s25 + $0x1b0] sm:$0xff] }
  0xf5   : > { %v1515_v47 = vrot.slane %v1514_v34, 1  ;;  %v4003_v21 = vpack.c.bf16 %v304_v39, %v303_v20  ;;  %v1090_v33 = vunpack.c.h.b16 %v4001_v17  ;;  %v305_v20 = vld [vmem:[%s3753_s25 + $0x1c0] sm:$0xff] }
  0xf6   : > { %v1438_v50 = vmax.f32 %v1366_v36, 0.0 }
  0xf7   : > { %v1516_v51 = vmax.f32 %v1514_v34, %v1515_v47  ;;  %3340 = vmatmul.msk.bf16.gmra.mxu1 %vm409_vm2, %v1126_v35  ;;  %v1092_v34 = vunpack.c.h.b16 %v4003_v21 }
  0xf8   : > { %v1471_v58 = vadd.f32 %v3942_v49, %v1438_v50  ;;  %v1085_v50 = vunpack.c.l.b16 %v3979_v5 }
  0xf9   : > { %v1821_v62 = vpack.c.bf16 %v1516_v51, %v1516_v51  ;;  %v1279_v63 = vpop.f32.mrf.mxu0  ;;  %v1128_v47 = vpack.c.b16 %v1092_v34, %v1090_v33 }
  0xfa   : > { %v1280_v3 = vadd.f32 %v1279_v63, %v3928_v27  ;;  %v1518_v4 = vsel %vm1498_vm3, %v1471_v58, -inf  ;;  %v1645_v8 = vpack.c.bf16 %v1471_v58, %v1470_v48  ;;  %v307_v63 = vld [vmem:[%s3753_s25 + $0x1d0] sm:$0xff] }
  0xfb   : > { %v1853_v9 = vunpack.c.l.b16 %v1821_v62  ;;  %v1519_v10 = vmax.f32 %v1517_v2, %v1518_v4  ;;  %v306_v62 = vld [vmem:[%s3753_s25 + $0x1c8] sm:$0xff] }
  0xfc   : > { %1318 = vmatmul.bf16.gmra.mxu0 %v1123_v55  ;;  %3362 = vmatmul.msk.bf16.gmra.mxu2 %vm1498_vm3, %v1645_v8  ;;  %v1375_v22 = vpop.f32.mrf.mxu1  ;;  %v1369_v31 = vadd.f32 %v3967_v24, %v1280_v3  ;;  %v1087_v24 = vunpack.c.l.b16 %v3981_v6 }
  0xfd   : > { %v1520_v23 = vrot.slane %v1519_v10, 4  ;;  %v1869_v30 = vsel %vm1868_vm4, %v1853_v9, %v1852_v61 }
  0xfe   : > { %v1439_v59 = vmax.f32 %v1369_v31, 0.0  ;;  %v1125_v39 = vpack.c.b16 %v1087_v24, %v1085_v50 }
  0xff   : > { %v1521_v32 = vmax.f32 %v1519_v10, %v1520_v23 }
 0x100   : > { %v1472_v55 = vadd.f32 %v3942_v49, %v1439_v59 }
 0x101   : > { %v1522_v35 = vrot.slane %v1521_v32, 2  ;;  %v1281_v36 = vpop.f32.mrf.mxu0 }
 0x102   : > { %v1282_v44 = vadd.f32 %v1281_v36, %v3928_v27  ;;  %v1526_v4 = vsel %vm1498_vm3, %v1472_v55, -inf }
 0x103   : > { %v1523_v46 = vmax.f32 %v1521_v32, %v1522_v35  ;;  %v4025_v32 = vpack.c.bf16 %v306_v62, %v305_v20 }
 0x104   : > { %v1371_v48 = vadd.f32 %v1370_v7, %v1282_v44  ;;  %v4013_v51 = vpop.f32.mrf.mxu1  ;;  %v308_v7 = vld [vmem:[%s3753_s25 + $0x1d8] sm:$0xff] }
 0x105   : > { %v1524_v54 = vrot.slane %v1523_v46, 1  ;;  %v4027_v33 = vpack.c.bf16 %v308_v7, %v307_v63  ;;  %v309_v7 = vld [vmem:[%s3753_s25 + $0x1e0] sm:$0xff] }
 0x106   : > { %v1440_v58 = vmax.f32 %v1371_v48, 0.0 }
 0x107   : > { %v1525_v60 = vmax.f32 %v1523_v46, %v1524_v54  ;;  %3341 = vmatmul.msk.bf16.gmra.mxu1 %vm409_vm2, %v1128_v47  ;;  %v1094_v46 = vunpack.c.h.b16 %v4025_v32  ;;  %v1096_v47 = vunpack.c.h.b16 %v4027_v33 }
 0x108   : > { %v1473_v61 = vadd.f32 %v3942_v49, %v1440_v58 }
 0x109   : > { %v1822_v2 = vpack.c.bf16 %v1525_v60, %v1525_v60  ;;  %v1284_v3 = vpop.f32.mrf.mxu0  ;;  %v1130_v58 = vpack.c.b16 %v1096_v47, %v1094_v46 }
 0x10a   : > { %v1285_v8 = vadd.f32 %v1284_v3, %v3928_v27  ;;  %v1527_v9 = vsel %vm1498_vm3, %v1473_v61, -inf  ;;  %v1646_v10 = vpack.c.bf16 %v1473_v61, %v1472_v55 }
 0x10b   : > { %v1854_v23 = vunpack.c.l.b16 %v1822_v2  ;;  %v1528_v31 = vmax.f32 %v1526_v4, %v1527_v9  ;;  %v310_v4 = vld [vmem:[%s3753_s25 + $0x1e8] sm:$0xff] }
 0x10c   : > { %1323 = vmatmul.bf16.gmra.mxu0 %v1125_v39  ;;  %3363 = vmatmul.msk.bf16.gmra.mxu2 %vm1498_vm3, %v1646_v10  ;;  %v1380_v34 = vpop.f32.mrf.mxu1  ;;  %v1374_v59 = vadd.f32 %v3989_v45, %v1285_v8  ;;  %v1091_v45 = vunpack.c.l.b16 %v4003_v21  ;;  %v311_v8 = vld [vmem:[%s3753_s25 + $0x1f0] sm:$0xff]  ;;  %v4049_v47 = vpack.c.bf16 %v310_v4, %v309_v7  ;;  %v1095_v4 = vunpack.c.l.b16 %v4027_v33 }
 0x10d   : > { %v1529_v35 = vrot.slane %v1528_v31, 4  ;;  %v1871_v36 = vsel %vm1870_vm5, %v1854_v23, %v1869_v30  ;;  %v1089_v30 = vunpack.c.l.b16 %v4001_v17 }
 0x10e   : > { %v1441_v24 = vmax.f32 %v1374_v59, 0.0 }
 0x10f   : > { %v1530_v44 = vmax.f32 %v1528_v31, %v1529_v35  ;;  %v1127_v3 = vpack.c.b16 %v1091_v45, %v1089_v30 }
 0x110   : > { %v1474_v61 = vadd.f32 %v3942_v49, %v1441_v24 }
 0x111   : > { %v1531_v48 = vrot.slane %v1530_v44, 2  ;;  %v1286_v50 = vpop.f32.mrf.mxu0 }
 0x112   : > { %v1287_v54 = vadd.f32 %v1286_v50, %v3928_v27  ;;  %v1535_v23 = vsel %vm1498_vm3, %v1474_v61, -inf }
 0x113   : > { %v1532_v55 = vmax.f32 %v1530_v44, %v1531_v48 }
 0x114   : > { %v1376_v60 = vadd.f32 %v1375_v22, %v1287_v54  ;;  %v4037_v20 = vpop.f32.mrf.mxu1  ;;  %v312_v22 = vld [vmem:[%s3753_s25 + $0x1f8] sm:$0xff] }
 0x115   : > { %v1533_v39 = vrot.slane %v1532_v55, 1  ;;  %v4051_v48 = vpack.c.bf16 %v312_v22, %v311_v8 }
 0x116   : > { %v1442_v62 = vmax.f32 %v1376_v60, 0.0  ;;  %v1098_v60 = vunpack.c.h.b16 %v4049_v47 }
 0x117   : > { %v1534_v63 = vmax.f32 %v1532_v55, %v1533_v39  ;;  %3342 = vmatmul.msk.bf16.gmra.mxu1 %vm409_vm2, %v1130_v58  ;;  %v1100_v30 = vunpack.c.h.b16 %v4051_v48 }
 0x118   : > { %v1475_v2 = vadd.f32 %v3942_v49, %v1442_v62 }
 0x119   : > { %v1823_v9 = vpack.c.bf16 %v1534_v63, %v1534_v63  ;;  %v1289_v10 = vpop.f32.mrf.mxu0  ;;  %v1132_v7 = vpack.c.b16 %v1100_v30, %v1098_v60 }
 0x11a   : > { %v1536_v31 = vsel %vm1498_vm3, %v1475_v2, -inf  ;;  %v1290_v35 = vadd.f32 %v1289_v10, %v3928_v27  ;;  %v1647_v59 = vpack.c.bf16 %v1475_v2, %v1474_v61 }
 0x11b   : > { %v1855_v44 = vunpack.c.l.b16 %v1823_v9  ;;  %v1537_v46 = vmax.f32 %v1535_v23, %v1536_v31 }
 0x11c   : > { %1328 = vmatmul.bf16.gmra.mxu0 %v1127_v3  ;;  %3364 = vmatmul.msk.bf16.gmra.mxu2 %vm1498_vm3, %v1647_v59  ;;  %v1385_v50 = vpop.f32.mrf.mxu1  ;;  %v1379_v55 = vadd.f32 %v4013_v51, %v1290_v35  ;;  %v1093_v3 = vunpack.c.l.b16 %v4025_v32 }
 0x11d   : > { %v1538_v24 = vrot.slane %v1537_v46, 4  ;;  %v1873_v54 = vsel %vm1872_vm6, %v1855_v44, %v1871_v36 }
 0x11e   : > { %v1443_v61 = vmax.f32 %v1379_v55, 0.0  ;;  %v1129_v23 = vpack.c.b16 %v1095_v4, %v1093_v3  ;;  %v1097_v4 = vunpack.c.l.b16 %v4049_v47 }
 0x11f   : > { %v1539_v58 = vmax.f32 %v1537_v46, %v1538_v24 }
 0x120   : > { %v1476_v51 = vadd.f32 %v3942_v49, %v1443_v61 }
 0x121   : > { %v1540_v45 = vrot.slane %v1539_v58, 2  ;;  %v1291_v39 = vpop.f32.mrf.mxu0 }
 0x122   : > { %v1292_v62 = vadd.f32 %v1291_v39, %v3928_v27 }
 0x123   : > { %v1541_v63 = vmax.f32 %v1539_v58, %v1540_v45 }
 0x124   : > { %v1381_v2 = vadd.f32 %v1380_v34, %v1292_v62  ;;  %v1388_v36 = vpop.f32.mrf.mxu1  ;;  %v1544_v34 = vsel %vm1498_vm3, %v1476_v51, -inf }
 0x125   : > { %v1542_v8 = vrot.slane %v1541_v63, 1 }
 0x126   : > { %v1444_v22 = vmax.f32 %v1381_v2, 0.0 }
 0x127   : > { %v1543_v9 = vmax.f32 %v1541_v63, %v1542_v8  ;;  %3343 = vmatmul.msk.bf16.gmra.mxu1 %vm409_vm2, %v1132_v7  ;;  %v1099_v8 = vunpack.c.l.b16 %v4051_v48 }
 0x128   : > { %v1477_v10 = vadd.f32 %v3942_v49, %v1444_v22 }
 0x129   : > { %v1824_v31 = vpack.c.bf16 %v1543_v9, %v1543_v9  ;;  %v1294_v35 = vpop.f32.mrf.mxu0 }
 0x12a   : > { %v1545_v59 = vsel %vm1498_vm3, %v1477_v10, -inf  ;;  %v1295_v44 = vadd.f32 %v1294_v35, %v3928_v27  ;;  %v1648_v46 = vpack.c.bf16 %v1477_v10, %v1476_v51 }
 0x12b   : > { %v1856_v24 = vunpack.c.l.b16 %v1824_v31  ;;  %v1546_v55 = vmax.f32 %v1544_v34, %v1545_v59 }
 0x12c   : > { %1333 = vmatmul.bf16.gmra.mxu0 %v1129_v23  ;;  %3365 = vmatmul.msk.bf16.gmra.mxu2 %vm1498_vm3, %v1648_v46  ;;  %v1390_v58 = vpop.f32.mrf.mxu1  ;;  %v1384_v45 = vadd.f32 %v4037_v20, %v1295_v44  ;;  %v1131_v23 = vpack.c.b16 %v1099_v8, %v1097_v4 }
 0x12d   : > { %v1547_v60 = vrot.slane %v1546_v55, 4  ;;  %v1875_v30 = vsel %vm1874_vm7, %v1856_v24, %v1873_v54 }
 0x12e   : > { %v1445_v63 = vmax.f32 %v1384_v45, 0.0 }
 0x12f   : > { %v1548_v39 = vmax.f32 %v1546_v55, %v1547_v60 }
 0x130   : > { %v1478_v9 = vadd.f32 %v3942_v49, %v1445_v63 }
 0x131   : > { %v1549_v61 = vrot.slane %v1548_v39, 2  ;;  %v1296_v62 = vpop.f32.mrf.mxu0 }
 0x132   : > { %v1297_v7 = vadd.f32 %v1296_v62, %v3928_v27  ;;  %v1553_v34 = vsel %vm1498_vm3, %v1478_v9, -inf }
 0x133   : > { %v1550_v2 = vmax.f32 %v1548_v39, %v1549_v61 }
 0x134   : > { %v1386_v3 = vadd.f32 %v1385_v50, %v1297_v7  ;;  %v1393_v51 = vpop.f32.mrf.mxu1 }
 0x135   : > { %v1551_v22 = vrot.slane %v1550_v2, 1 }
 0x136   : > { %v1446_v10 = vmax.f32 %v1386_v3, 0.0 }
 0x137   : > { %v1552_v54 = vmax.f32 %v1550_v2, %v1551_v22 }
 0x138   : > { %v1479_v20 = vadd.f32 %v3942_v49, %v1446_v10 }
 0x139   : > { %v1299_v31 = vpop.f32.mrf.mxu0  ;;  %v1825_v35 = vpack.c.bf16 %v1552_v54, %v1552_v54 }
 0x13a   : > { %v1554_v50 = vsel %vm1498_vm3, %v1479_v20, -inf  ;;  %v1300_v59 = vadd.f32 %v1299_v31, %v3928_v27  ;;  %v1649_v44 = vpack.c.bf16 %v1479_v20, %v1478_v9 }
 0x13b   : > { %v1555_v46 = vmax.f32 %v1553_v34, %v1554_v50  ;;  %v1857_v24 = vunpack.c.l.b16 %v1825_v35 }
 0x13c   : > { %1338 = vmatmul.bf16.gmra.mxu0 %v1131_v23  ;;  %3366 = vmatmul.msk.bf16.gmra.mxu2 %vm1498_vm3, %v1649_v44  ;;  %v1395_v55 = vpop.f32.mrf.mxu1  ;;  %v1389_v39 = vadd.f32 %v1388_v36, %v1300_v59 }
 0x13d   : > { %v1556_v60 = vrot.slane %v1555_v46, 4  ;;  %v1877_v45 = vsel %vm1876_vm8, %v1857_v24, %v1875_v30 }
 0x13e   : > { %v1447_v7 = vmax.f32 %v1389_v39, 0.0 }
 0x13f   : > { %v1557_v61 = vmax.f32 %v1555_v46, %v1556_v60 }
 0x140   : > { %v1480_v9 = vadd.f32 %v3942_v49, %v1447_v7 }
 0x141   : > { %v1558_v62 = vrot.slane %v1557_v61, 2  ;;  %v1301_v63 = vpop.f32.mrf.mxu0 }
 0x142   : > { %v1302_v2 = vadd.f32 %v1301_v63, %v3928_v27  ;;  %v1562_v36 = vsel %vm1498_vm3, %v1480_v9, -inf }
 0x143   : > { %v1559_v3 = vmax.f32 %v1557_v61, %v1558_v62 }
 0x144   : > { %v1391_v4 = vadd.f32 %v1390_v58, %v1302_v2  ;;  %v1398_v8 = vpop.f32.mrf.mxu1 }
 0x145   : > { %v1560_v22 = vrot.slane %v1559_v3, 1 }
 0x146   : > { %v1448_v10 = vmax.f32 %v1391_v4, 0.0 }
 0x147   : > { %v1561_v54 = vmax.f32 %v1559_v3, %v1560_v22 }
 0x148   : > { %v1481_v20 = vadd.f32 %v3942_v49, %v1448_v10 }
 0x149   : > { %v1304_v23 = vpop.f32.mrf.mxu0  ;;  %v1826_v31 = vpack.c.bf16 %v1561_v54, %v1561_v54 }
 0x14a   : > { %v1563_v30 = vsel %vm1498_vm3, %v1481_v20, -inf  ;;  %v1305_v35 = vadd.f32 %v1304_v23, %v3928_v27  ;;  %v1650_v34 = vpack.c.bf16 %v1481_v20, %v1480_v9 }
 0x14b   : > { %v1564_v50 = vmax.f32 %v1562_v36, %v1563_v30  ;;  %v1858_v58 = vunpack.c.l.b16 %v1826_v31 }
 0x14c   : > { %3367 = vmatmul.msk.bf16.gmra.mxu2 %vm1498_vm3, %v1650_v34  ;;  %v1400_v59 = vpop.f32.mrf.mxu1  ;;  %v1394_v24 = vadd.f32 %v1393_v51, %v1305_v35 }
 0x14d   : > { %v1565_v44 = vrot.slane %v1564_v50, 4  ;;  %v1879_v46 = vsel %vm5413_vm9, %v1858_v58, %v1877_v45 }
 0x14e   : > { %v1449_v62 = vmax.f32 %v1394_v24, 0.0 }
 0x14f   : > { %v1566_v60 = vmax.f32 %v1564_v50, %v1565_v44 }
 0x150   : > { %v1482_v22 = vadd.f32 %v3942_v49, %v1449_v62 }
 0x151   : > { %v1567_v39 = vrot.slane %v1566_v60, 2  ;;  %v1306_v61 = vpop.f32.mrf.mxu0 }
 0x152   : > { %v1307_v63 = vadd.f32 %v1306_v61, %v3928_v27  ;;  %v1571_v51 = vsel %vm1498_vm3, %v1482_v22, -inf }
 0x153   : > { %v1568_v7 = vmax.f32 %v1566_v60, %v1567_v39 }
 0x154   : > { %v1396_v2 = vadd.f32 %v1395_v55, %v1307_v63  ;;  %v1403_v3 = vpop.f32.mrf.mxu1 }
 0x155   : > { %v1569_v4 = vrot.slane %v1568_v7, 1 }
 0x156   : > { %v1450_v9 = vmax.f32 %v1396_v2, 0.0 }
 0x157   : > { %v1570_v10 = vmax.f32 %v1568_v7, %v1569_v4 }
 0x158   : > { %v1483_v54 = vadd.f32 %v3942_v49, %v1450_v9 }
 0x159   : > { %v1309_v20 = vpop.f32.mrf.mxu0  ;;  %v1827_v23 = vpack.c.bf16 %v1570_v10, %v1570_v10 }
 0x15a   : > { %v1572_v45 = vsel %vm1498_vm3, %v1483_v54, -inf  ;;  %v1310_v31 = vadd.f32 %v1309_v20, %v3928_v27  ;;  %v1651_v36 = vpack.c.bf16 %v1483_v54, %v1482_v22 }
 0x15b   : > { %v1573_v30 = vmax.f32 %v1571_v51, %v1572_v45  ;;  %v1859_v55 = vunpack.c.l.b16 %v1827_v23 }
 0x15c   : > { %3368 = vmatmul.msk.bf16.gmra.mxu2 %vm1498_vm3, %v1651_v36  ;;  %v1399_v34 = vadd.f32 %v1398_v8, %v1310_v31  ;;  %v1405_v44 = vpop.f32.mrf.mxu1 }
 0x15d   : > { %v4096_v35 = vsel %vm5412_vm10, %v1859_v55, %v1879_v46  ;;  %v1574_v50 = vrot.slane %v1573_v30, 4 }
 0x15e   : > { %v1451_v60 = vmax.f32 %v1399_v34, 0.0 }
 0x15f   : > { %v4098_v58 = vpop.f32.mrf.mxu2  ;;  %v1575_v61 = vmax.f32 %v1573_v30, %v1574_v50 }
 0x160   : > { %5473 = vst [vmem:[#allocation8_spill] sm:$0xff] %v4098_v58  ;;  %v1484_v63 = vadd.f32 %v3942_v49, %v1451_v60 }
 0x161   : > { %v1311_v24 = vpop.f32.mrf.mxu0  ;;  %v1576_v2 = vrot.slane %v1575_v61, 2 }
 0x162   : > { %v1312_v39 = vadd.f32 %v1311_v24, %v3928_v27  ;;  %v1580_v9 = vsel %vm1498_vm3, %v1484_v63, -inf }
 0x163   : > { %v1577_v23 = vmax.f32 %v1575_v61, %v1576_v2 }
 0x164   : > { %v1401_v62 = vadd.f32 %v1400_v59, %v1312_v39  ;;  %v1408_v8 = vpop.f32.mrf.mxu1 }
 0x165   : > { %v1578_v31 = vrot.slane %v1577_v23, 1 }
 0x166   : > { %v1452_v7 = vmax.f32 %v1401_v62, 0.0 }
 0x167   : > { %v4102_v4 = vpop.f32.mrf.mxu2  ;;  %v1579_v60 = vmax.f32 %v1577_v23, %v1578_v31 }
 0x168   : > { %5474 = vst [vmem:[#allocation9_spill] sm:$0xff] %v4102_v4  ;;  %v1485_v46 = vadd.f32 %v3942_v49, %v1452_v7 }
 0x169   : > { %v1314_v22 = vpop.f32.mrf.mxu0 }
 0x16a   : > { %v1581_v10 = vsel %vm1498_vm3, %v1485_v46, -inf  ;;  %v1315_v54 = vadd.f32 %v1314_v22, %v3928_v27  ;;  %v1652_v20 = vpack.c.bf16 %v1485_v46, %v1484_v63  ;;  %v1828_v46 = vpack.c.bf16 %v1579_v60, %v1579_v60 }
 0x16b   : > { %v1582_v51 = vmax.f32 %v1580_v9, %v1581_v10 }
 0x16c   : > { %3369 = vmatmul.msk.bf16.gmra.mxu2 %vm1498_vm3, %v1652_v20  ;;  %v1404_v45 = vadd.f32 %v1403_v3, %v1315_v54  ;;  %v1410_v62 = vpop.f32.mrf.mxu1 }
 0x16d   : > { %v1583_v59 = vrot.slane %v1582_v51, 4 }
 0x16e   : > { %v1453_v50 = vmax.f32 %v1404_v45, 0.0 }
 0x16f   : > { %v1584_v36 = vmax.f32 %v1582_v51, %v1583_v59  ;;  %v4109_v30 = vpop.f32.mrf.mxu2  ;;  %v1860_v59 = vunpack.c.l.b16 %v1828_v46  ;;  %v349_v46 = vunpack.c.l.bf16 %v3792_v25 }
 0x170   : > { %5475 = vst [vmem:[#allocation10_spill] sm:$0xff] %v4109_v30  ;;  %v1486_v61 = vadd.f32 %v3942_v49, %v1453_v50 }
 0x171   : > { %v1585_v55 = vrot.slane %v1584_v36, 2  ;;  %v1316_v34 = vpop.f32.mrf.mxu0 }
 0x172   : > { %v1317_v24 = vadd.f32 %v1316_v34, %v3928_v27  ;;  %v1589_v20 = vsel %vm1498_vm3, %v1486_v61, -inf }
 0x173   : > { %v1586_v39 = vmax.f32 %v1584_v36, %v1585_v55 }
 0x174   : > { %v1406_v7 = vadd.f32 %v1405_v44, %v1317_v24  ;;  %v1413_v55 = vpop.f32.mrf.mxu1 }
 0x175   : > { %v1587_v63 = vrot.slane %v1586_v39, 1 }
 0x176   : > { %v1454_v2 = vmax.f32 %v1406_v7, 0.0 }
 0x177   : > { %v1588_v22 = vmax.f32 %v1586_v39, %v1587_v63  ;;  %v4113_v3 = vpop.f32.mrf.mxu2  ;;  %v350_v63 = vunpack.c.h.bf16 %v3792_v25 }
 0x178   : > { %5476 = vst [vmem:[#allocation11_spill] sm:$0xff] %v4113_v3  ;;  %v1487_v9 = vadd.f32 %v3942_v49, %v1454_v2 }
 0x179   : > { %v1829_v10 = vpack.c.bf16 %v1588_v22, %v1588_v22  ;;  %v1319_v54 = vpop.f32.mrf.mxu0  ;;  %v345_v22 = vunpack.c.l.bf16 %v3772_v11 }
 0x17a   : > { %v1590_v51 = vsel %vm1498_vm3, %v1487_v9, -inf  ;;  %v1653_v23 = vpack.c.bf16 %v1487_v9, %v1486_v61  ;;  %v1320_v31 = vadd.f32 %v1319_v54, %v3928_v27  ;;  %v346_v61 = vunpack.c.h.bf16 %v3772_v11 }
 0x17b   : > { %v1861_v45 = vunpack.c.l.b16 %v1829_v10  ;;  %v1591_v44 = vmax.f32 %v1589_v20, %v1590_v51  ;;  %v418_v10 = vsel %vm409_vm2, %v350_v63, -inf }
 0x17c   : > { %3370 = vmatmul.msk.bf16.gmra.mxu2 %vm1498_vm3, %v1653_v23  ;;  %v1409_v60 = vadd.f32 %v1408_v8, %v1320_v31  ;;  %v410_v54 = vsel %vm409_vm2, %v346_v61, -inf  ;;  %v419_v8 = vmax.f32 %v349_v46, %v418_v10  ;;  %v353_v61 = vunpack.c.l.bf16 %v3814_v40 }
 0x17d   : > { %v1592_v36 = vrot.slane %v1591_v44, 4  ;;  %v1882_v34 = vsel %vm1868_vm4, %v1861_v45, %v1860_v59  ;;  %v411_v23 = vmax.f32 %v345_v22, %v410_v54 }
 0x17e   : > { %v1455_v20 = vmax.f32 %v1409_v60, 0.0  ;;  %420 = vmax.xlane.f32.xlu1 %v419_v8  ;;  %v352_v60 = vunpack.c.h.bf16 %v3794_v26 }
 0x17f   : > { %v1593_v50 = vmax.f32 %v1591_v44, %v1592_v36  ;;  %v4121_v24 = vpop.f32.mrf.mxu2  ;;  %412 = vmax.xlane.f32.xlu0 %v411_v23  ;;  %v1415_v36 = vpop.f32.mrf.mxu1 }
 0x180   : > { %5477 = vst [vmem:[#allocation12_spill] sm:$0xff] %v4121_v24  ;;  %v4133_v25 = vadd.f32 %v3942_v49, %v1455_v20  ;;  %v422_v54 = vsel %vm409_vm2, %v352_v60, -inf  ;;  %v347_v20 = vunpack.c.l.bf16 %v3774_v12  ;;  %v359_v60 = vunpack.c.l.bf16 %v3829_v53 }
 0x181   : > { %v1594_v39 = vrot.slane %v1593_v50, 2  ;;  %v1321_v7 = vpop.f32.mrf.mxu0 }
 0x182   : > { %v1322_v2 = vadd.f32 %v1321_v7, %v3928_v27  ;;  %v348_v7 = vunpack.c.h.bf16 %v3774_v12  ;;  %v358_v12 = vunpack.c.h.bf16 %v3827_v52 }
 0x183   : > { %v1595_v9 = vmax.f32 %v1593_v50, %v1594_v39 }
 0x184   : > { %v1411_v51 = vadd.f32 %v1410_v62, %v1322_v2  ;;  %v354_v62 = vunpack.c.h.bf16 %v3814_v40  ;;  %v414_v8 = vsel %vm409_vm2, %v348_v7, -inf }
 0x185   : > { %v1596_v59 = vrot.slane %v1595_v9, 1  ;;  %v415_v40 = vmax.f32 %v347_v20, %v414_v8  ;;  %v364_v8 = vunpack.c.h.bf16 %v3842_v1 }
 0x186   : > { %v1456_v45 = vmax.f32 %v1411_v51, 0.0  ;;  %v426_v22 = vsel %vm409_vm2, %v354_v62, -inf }
 0x187   : > { %v1597_v44 = vmax.f32 %v1595_v9, %v1596_v59  ;;  %v4130_v31 = vpop.f32.mrf.mxu2  ;;  %v351_v9 = vunpack.c.l.bf16 %v3794_v26  ;;  %v427_v10 = vmax.f32 %v353_v61, %v426_v22  ;;  %416 = vmax.xlane.f32.xlu0 %v415_v40  ;;  %v357_v61 = vunpack.c.l.bf16 %v3827_v52 }
 0x188   : > { %5478 = vst [vmem:[#allocation13_spill] sm:$0xff] %v4130_v31  ;;  %v4136_v11 = vadd.f32 %v3942_v49, %v1456_v45  ;;  %v362_v52 = vunpack.c.h.bf16 %v3840_v0 }
 0x189   : > { %v1830_v50 = vpack.c.bf16 %v1597_v44, %v1597_v44  ;;  %v1324_v39 = vpop.f32.mrf.mxu0  ;;  %v423_v51 = vmax.f32 %v351_v9, %v422_v54  ;;  %428 = vmax.xlane.f32.xlu2 %v427_v10  ;;  %v1418_v44 = vpop.f32.mrf.mxu1  ;;  %v434_v9 = vsel %vm409_vm2, %v358_v12, -inf  ;;  %v365_v12 = vunpack.c.l.bf16 %v3853_v14 }
 0x18a   : > { %v1654_v63 = vpack.c.bf16 %v4136_v11, %v4133_v25  ;;  %v1325_v46 = vadd.f32 %v1324_v39, %v3928_v27  ;;  %v360_v39 = vunpack.c.h.bf16 %v3829_v53  ;;  %v435_v10 = vmax.f32 %v357_v61, %v434_v9 }
 0x18b   : > { %v1862_v2 = vunpack.c.l.b16 %v1830_v50  ;;  %424 = vmax.xlane.f32.xlu1 %v423_v51  ;;  %v356_v50 = vunpack.c.h.bf16 %v3816_v41 }
 0x18c   : > { %3371 = vmatmul.msk.bf16.gmra.mxu2 %vm1498_vm3, %v1654_v63  ;;  %v1414_v59 = vadd.f32 %v1413_v55, %v1325_v46  ;;  %v438_v63 = vsel %vm409_vm2, %v360_v39, -inf  ;;  %v442_v39 = vsel %vm409_vm2, %v362_v52, -inf  ;;  %v369_v52 = vunpack.c.l.bf16 %v3866_v28 }
 0x18d   : > { %v4152_v23 = vsel %vm1870_vm5, %v1862_v2, %v1882_v34  ;;  %v355_v34 = vunpack.c.l.bf16 %v3816_v41  ;;  %v430_v55 = vsel %vm409_vm2, %v356_v50, -inf  ;;  %v439_v22 = vmax.f32 %v359_v60, %v438_v63 }
 0x18e   : > { %v1457_v7 = vmax.f32 %v1414_v59, 0.0  ;;  %v361_v59 = vunpack.c.l.bf16 %v3840_v0  ;;  %v363_v60 = vunpack.c.l.bf16 %v3842_v1  ;;  %v367_v1 = vunpack.c.l.bf16 %v3855_v15 }
 0x18f   : > { %v4154_v45 = vpop.f32.mrf.mxu2  ;;  %v431_v46 = vmax.f32 %v355_v34, %v430_v55  ;;  %436 = vmax.xlane.f32.xlu0 %v435_v10  ;;  %v446_v55 = vsel %vm409_vm2, %v364_v8, -inf  ;;  %v371_v10 = vunpack.c.l.bf16 %v3868_v29 }
 0x190   : > { %v4169_v41 = vadd.f32 %v3942_v49, %v1457_v7  ;;  %v447_v63 = vmax.f32 %v363_v60, %v446_v55  ;;  %v376_v60 = vunpack.c.h.bf16 %v3881_v43 }
 0x191   : > { %v1326_v26 = vpop.f32.mrf.mxu0  ;;  %432 = vmax.xlane.f32.xlu2 %v431_v46  ;;  %v1420_v50 = vpop.f32.mrf.mxu1  ;;  %v372_v46 = vunpack.c.h.bf16 %v3868_v29 }
 0x192   : > { %v1327_v62 = vadd.f32 %v1326_v26, %v3928_v27 }
 0x193   : > { %440 = vmax.xlane.f32.xlu1 %v439_v22  ;;  %v370_v22 = vunpack.c.h.bf16 %v3866_v28  ;;  %v374_v28 = vunpack.c.h.bf16 %v3879_v42 }
 0x194   : > { %v1416_v2 = vadd.f32 %v1415_v36, %v1327_v62  ;;  %v366_v36 = vunpack.c.h.bf16 %v3853_v14  ;;  %v443_v62 = vmax.f32 %v361_v59, %v442_v39  ;;  %v368_v14 = vunpack.c.h.bf16 %v3855_v15 }
 0x195   : > { %v458_v59 = vsel %vm409_vm2, %v370_v22, -inf }
 0x196   : > { %v1458_v54 = vmax.f32 %v1416_v2, 0.0  ;;  %v450_v34 = vsel %vm409_vm2, %v366_v36, -inf  ;;  %v459_v39 = vmax.f32 %v369_v52, %v458_v59  ;;  %v380_v59 = vunpack.c.h.bf16 %v3894_v57 }
 0x197   : > { %v4166_v20 = vpop.f32.mrf.mxu2  ;;  %v451_v7 = vmax.f32 %v365_v12, %v450_v34  ;;  %448 = vmax.xlane.f32.xlu0 %v447_v63  ;;  %v373_v63 = vunpack.c.l.bf16 %v3879_v42  ;;  %v470_v42 = vsel %vm409_vm2, %v376_v60, -inf }
 0x198   : > { %v1491_v53 = vadd.f32 %v3942_v49, %v1458_v54  ;;  %v478_v60 = vsel %vm409_vm2, %v380_v59, -inf }
 0x199   : > { %v1329_v51 = vpop.f32.mrf.mxu0  ;;  %444 = vmax.xlane.f32.xlu2 %v443_v62 }
 0x19a   : > { %v1655_v40 = vpack.c.bf16 %v1491_v53, %v4169_v41  ;;  %v1330_v26 = vadd.f32 %v1329_v51, %v3928_v27  ;;  %v462_v51 = vsel %vm409_vm2, %v372_v46, -inf }
 0x19b   : > { %452 = vmax.xlane.f32.xlu1 %v451_v7 }
 0x19c   : > { %3372 = vmatmul.msk.bf16.gmra.mxu2 %vm1498_vm3, %v1655_v40  ;;  %v1419_v0 = vadd.f32 %v1418_v44, %v1330_v26  ;;  %v454_v44 = vsel %vm409_vm2, %v368_v14, -inf  ;;  %v463_v40 = vmax.f32 %v371_v10, %v462_v51  ;;  %v1423_v26 = vpop.f32.mrf.mxu1  ;;  %v1599_v14 = vsel %vm1498_vm3, %v4136_v11, -inf }
 0x19d   : > { %v455_v8 = vmax.f32 %v367_v1, %v454_v44  ;;  %v1608_v1 = vsel %vm1498_vm3, %v1491_v53, -inf  ;;  %v1607_v11 = vsel %vm1498_vm3, %v4169_v41, -inf  ;;  %v382_v41 = vunpack.c.h.bf16 %v3917_v13 }
 0x19e   : > { %v1459_v54 = vmax.f32 %v1419_v0, 0.0  ;;  %v466_v0 = vsel %vm409_vm2, %v374_v28, -inf  ;;  %v1609_v53 = vmax.f32 %v1607_v11, %v1608_v1  ;;  %v3455_v1 = vld [vmem:[%s5404_s2 + $0x28] sm:$0xff]  ;;  %v388_v11 = vunpack.c.h.bf16 %v3938_v38 }
 0x19f   : > { %v4184_v61 = vpop.f32.mrf.mxu2  ;;  %460 = vmax.xlane.f32.xlu0 %v459_v39  ;;  %v467_v46 = vmax.f32 %v373_v63, %v466_v0 }
 0x1a0   : > { %v1492_v15 = vadd.f32 %v3942_v49, %v1459_v54 }
 0x1a1   : > { %v1331_v2 = vpop.f32.mrf.mxu0  ;;  %456 = vmax.xlane.f32.xlu2 %v455_v8 }
 0x1a2   : > { %v1332_v9 = vadd.f32 %v1331_v2, %v3928_v27  ;;  %v377_v2 = vunpack.c.l.bf16 %v3892_v56 }
 0x1a3   : > { %464 = vmax.xlane.f32.xlu1 %v463_v40 }
 0x1a4   : > { %v1421_v36 = vadd.f32 %v1420_v50, %v1332_v9  ;;  %v378_v50 = vunpack.c.h.bf16 %v3892_v56  ;;  %v375_v9 = vunpack.c.l.bf16 %v3881_v43  ;;  %v1598_v56 = vsel %vm1498_vm3, %v4133_v25, -inf  ;;  %v1425_v51 = vpop.f32.mrf.mxu1  ;;  %v3457_v43 = vld [vmem:[%s5404_s2 + $0x38] sm:$0xff] }
 0x1a5   : > { %v1600_v52 = vmax.f32 %v1598_v56, %v1599_v14  ;;  %1921 = vmatpush.bf16.msra.mxu3 %v3457_v43  ;;  %v384_v25 = vunpack.c.h.bf16 %v3919_v16  ;;  %v387_v56 = vunpack.c.l.bf16 %v3938_v38 }
 0x1a6   : > { %v1460_v12 = vmax.f32 %v1421_v36, 0.0  ;;  %v474_v22 = vsel %vm409_vm2, %v378_v50, -inf  ;;  %v471_v44 = vmax.f32 %v375_v9, %v470_v42  ;;  %v3456_v50 = vld [vmem:[%s5404_s2 + $0x30] sm:$0xff] }
 0x1a7   : > { %v4198_v62 = vpop.f32.mrf.mxu2  ;;  %v475_v54 = vmax.f32 %v377_v2, %v474_v22  ;;  %v482_v2 = vsel %vm409_vm2, %v382_v41, -inf  ;;  %v1601_v14 = vrot.slane %v1600_v52, 4 }
 0x1a8   : > { %v1493_v29 = vadd.f32 %v3942_v49, %v1460_v12  ;;  %472 = vmax.xlane.f32.xlu0 %v471_v44  ;;  %v390_v44 = vunpack.c.h.bf16 %v3957_v18 }
 0x1a9   : > { %v1334_v34 = vpop.f32.mrf.mxu0  ;;  %468 = vmax.xlane.f32.xlu2 %v467_v46  ;;  %1922 = vmatpush.bf16.msra.mxu3 %v3456_v50  ;;  %v1610_v46 = vrot.slane %v1609_v53, 4 }
 0x1aa   : > { %v1656_v7 = vpack.c.bf16 %v1493_v29, %v1492_v15  ;;  %v1335_v55 = vadd.f32 %v1334_v34, %v3928_v27  ;;  %v1617_v36 = vsel %vm1498_vm3, %v1493_v29, -inf  ;;  %v379_v34 = vunpack.c.l.bf16 %v3894_v57 }
 0x1ab   : > { %476 = vmax.xlane.f32.xlu1 %v475_v54  ;;  %v383_v29 = vunpack.c.l.bf16 %v3919_v16  ;;  %v389_v54 = vunpack.c.l.bf16 %v3957_v18 }
 0x1ac   : > { %3373 = vmatmul.msk.bf16.gmra.mxu2 %vm1498_vm3, %v1656_v7  ;;  %v1424_v10 = vadd.f32 %v1423_v26, %v1335_v55  ;;  %v1616_v26 = vsel %vm1498_vm3, %v1492_v15, -inf  ;;  %v486_v7 = vsel %vm409_vm2, %v384_v25, -inf  ;;  %v381_v55 = vunpack.c.l.bf16 %v3917_v13 }
 0x1ad   : > { %v1618_v28 = vmax.f32 %v1616_v26, %v1617_v36  ;;  %v479_v63 = vmax.f32 %v379_v34, %v478_v60  ;;  %v487_v0 = vmax.f32 %v383_v29, %v486_v7  ;;  %v385_v13 = vunpack.c.l.bf16 %v3936_v37  ;;  %v1428_v36 = vpop.f32.mrf.mxu1  ;;  %1923 = vmatpush.bf16.msra.mxu3 %v3455_v1 }
 0x1ae   : > { %v1461_v8 = vmax.f32 %v1424_v10, 0.0  ;;  %v483_v16 = vmax.f32 %v381_v55, %v482_v2  ;;  %v386_v10 = vunpack.c.h.bf16 %v3936_v37  ;;  %v3454_v37 = vld [vmem:[%s5404_s2 + $0x20] sm:$0xff]  ;;  %v1611_v26 = vmax.f32 %v1609_v53, %v1610_v46 }
 0x1af   : > { %v4226_v39 = vpop.f32.mrf.mxu2  ;;  %v1619_v9 = vrot.slane %v1618_v28, 4  ;;  %v391_v2 = vunpack.c.l.bf16 %v3959_v19  ;;  %v396_v46 = vunpack.c.h.bf16 %v3981_v6 }
 0x1b0   : > { %v1494_v57 = vadd.f32 %v3942_v49, %v1461_v8  ;;  %484 = vmax.xlane.f32.xlu0 %v483_v16 }
 0x1b1   : > { %v1336_v40 = vpop.f32.mrf.mxu0  ;;  %480 = vmax.xlane.f32.xlu2 %v479_v63  ;;  %v1620_v34 = vmax.f32 %v1618_v28, %v1619_v9  ;;  %1924 = vmatpush.bf16.msra.mxu3 %v3454_v37  ;;  %v1612_v63 = vrot.slane %v1611_v26, 2  ;;  %v392_v28 = vunpack.c.h.bf16 %v3959_v19  ;;  %v394_v9 = vunpack.c.h.bf16 %v3979_v5 }
 0x1b2   : > { %v1337_v12 = vadd.f32 %v1336_v40, %v3928_v27  ;;  %v1625_v43 = vsel %vm1498_vm3, %v1494_v57, -inf  ;;  %v490_v40 = vsel %vm409_vm2, %v386_v10, -inf  ;;  %v510_v19 = vsel %vm409_vm2, %v396_v46, -inf }
 0x1b3   : > { %488 = vmax.xlane.f32.xlu1 %v487_v0  ;;  %v491_v41 = vmax.f32 %v385_v13, %v490_v40  ;;  %v1621_v53 = vrot.slane %v1620_v34, 2  ;;  %v502_v10 = vsel %vm409_vm2, %v392_v28, -inf  ;;  %v404_v46 = vunpack.c.h.bf16 %v4027_v33 }
 0x1b4   : > { %v1426_v15 = vadd.f32 %v1425_v51, %v1337_v12  ;;  %v1602_v51 = vmax.f32 %v1600_v52, %v1601_v14  ;;  %v498_v52 = vsel %vm409_vm2, %v390_v44, -inf  ;;  %v494_v12 = vsel %vm409_vm2, %v388_v11, -inf }
 0x1b5   : > { %v499_v50 = vmax.f32 %v389_v54, %v498_v52  ;;  %v495_v60 = vmax.f32 %v387_v56, %v494_v12  ;;  %v395_v14 = vunpack.c.l.bf16 %v3981_v6  ;;  %v503_v44 = vmax.f32 %v391_v2, %v502_v10 }
 0x1b6   : > { %v1462_v22 = vmax.f32 %v1426_v15, 0.0  ;;  %v1603_v15 = vrot.slane %v1602_v51, 2  ;;  %v506_v56 = vsel %vm409_vm2, %v394_v9, -inf  ;;  %v1613_v6 = vmax.f32 %v1611_v26, %v1612_v63 }
 0x1b7   : > { %v4258_v29 = vpop.f32.mrf.mxu2  ;;  %v402_v26 = vunpack.c.h.bf16 %v4025_v32  ;;  %v400_v52 = vunpack.c.h.bf16 %v4003_v21  ;;  %v408_v10 = vunpack.c.h.bf16 %v4051_v48 }
 0x1b8   : > { %v1495_v42 = vadd.f32 %v3942_v49, %v1462_v22  ;;  %496 = vmax.xlane.f32.xlu0 %v495_v60  ;;  %v393_v22 = vunpack.c.l.bf16 %v3979_v5  ;;  %v1604_v1 = vmax.f32 %v1602_v51, %v1603_v15  ;;  %v1614_v12 = vrot.slane %v1613_v6, 1 }
 0x1b9   : > { %v1339_v8 = vpop.f32.mrf.mxu0  ;;  %492 = vmax.xlane.f32.xlu2 %v491_v41  ;;  %v522_v15 = vsel %vm409_vm2, %v402_v26, -inf }
 0x1ba   : > { %v1626_v59 = vsel %vm1498_vm3, %v1495_v42, -inf  ;;  %v1657_v25 = vpack.c.bf16 %v1495_v42, %v1494_v57  ;;  %v1340_v18 = vadd.f32 %v1339_v8, %v3928_v27  ;;  %v1430_v42 = vpop.f32.mrf.mxu1  ;;  %v1622_v8 = vmax.f32 %v1620_v34, %v1621_v53 }
 0x1bb   : > { %v1627_v38 = vmax.f32 %v1625_v43, %v1626_v59  ;;  %500 = vmax.xlane.f32.xlu1 %v499_v50  ;;  %v511_v43 = vmax.f32 %v395_v14, %v510_v19  ;;  %v1605_v5 = vrot.slane %v1604_v1, 1  ;;  %v397_v59 = vunpack.c.l.bf16 %v4001_v17 }
 0x1bc   : > { %3374 = vmatmul.msk.bf16.gmra.mxu2 %vm1498_vm3, %v1657_v25  ;;  %v1429_v55 = vadd.f32 %v1428_v36, %v1340_v18  ;;  %v507_v36 = vmax.f32 %v393_v22, %v506_v56  ;;  %v398_v25 = vunpack.c.h.bf16 %v4001_v17  ;;  %v401_v18 = vunpack.c.l.bf16 %v4025_v32 }
 0x1bd   : > { %v1628_v7 = vrot.slane %v1627_v38, 4  ;;  %v1623_v34 = vrot.slane %v1622_v8, 1  ;;  %v518_v32 = vsel %vm409_vm2, %v400_v52, -inf  ;;  %v1606_v53 = vmax.f32 %v1604_v1, %v1605_v5 }
 0x1be   : > { %v1463_v57 = vmax.f32 %v1429_v55, 0.0  ;;  %v514_v60 = vsel %vm409_vm2, %v398_v25, -inf  ;;  %v523_v63 = vmax.f32 %v401_v18, %v522_v15  ;;  %v1615_v28 = vmax.f32 %v1613_v6, %v1614_v12 }
 0x1bf   : > { %v1629_v0 = vmax.f32 %v1627_v38, %v1628_v7  ;;  %v4272_v51 = vpop.f32.mrf.mxu2  ;;  %v399_v38 = vunpack.c.l.bf16 %v4003_v21  ;;  %v515_v55 = vmax.f32 %v397_v59, %v514_v60  ;;  %v1624_v14 = vmax.f32 %v1622_v8, %v1623_v34 }
 0x1c0   : > { %v1496_v37 = vadd.f32 %v3942_v49, %v1463_v57  ;;  %508 = vmax.xlane.f32.xlu0 %v507_v36  ;;  %v407_v22 = vunpack.c.l.bf16 %v4051_v48  ;;  %v405_v1 = vunpack.c.l.bf16 %v4049_v47  ;;  %v526_v19 = vsel %vm409_vm2, %v404_v46, -inf }
 0x1c1   : > { %v1341_v16 = vpop.f32.mrf.mxu0  ;;  %v1630_v54 = vrot.slane %v1629_v0, 2  ;;  %504 = vmax.xlane.f32.xlu2 %v503_v44  ;;  %v519_v21 = vmax.f32 %v399_v38, %v518_v32  ;;  %v1832_v56 = vpack.c.bf16 %v1615_v28, %v1615_v28  ;;  %v1833_v6 = vpack.c.bf16 %v1624_v14, %v1624_v14 }
 0x1c2   : > { %v1342_v13 = vadd.f32 %v1341_v16, %v3928_v27  ;;  %v1634_v50 = vsel %vm1498_vm3, %v1496_v37, -inf  ;;  %v403_v16 = vunpack.c.l.bf16 %v4027_v33  ;;  %v534_v33 = vsel %vm409_vm2, %v408_v10, -inf }
 0x1c3   : > { %v1631_v40 = vmax.f32 %v1629_v0, %v1630_v54  ;;  %512 = vmax.xlane.f32.xlu1 %v511_v43  ;;  %v406_v54 = vunpack.c.h.bf16 %v4049_v47  ;;  %v535_v8 = vmax.f32 %v407_v22, %v534_v33  ;;  %v1865_v59 = vunpack.c.l.b16 %v1833_v6  ;;  %v3465_v6 = vld [vmem:[%s5405_s3 + $0x38] sm:$0xff] }
 0x1c4   : > { %v1431_v11 = vadd.f32 %v1430_v42, %v1342_v13  ;;  %v1831_v42 = vpack.c.bf16 %v1606_v53, %v1606_v53  ;;  %2556 = vmatpush.bf16.msrb.mxu1 %v3465_v6 }
 0x1c5   : > { %v1632_v0 = vrot.slane %v1631_v40, 1  ;;  %v530_v43 = vsel %vm409_vm2, %v406_v54, -inf }
 0x1c6   : > { %v1464_v27 = vmax.f32 %v1431_v11, 0.0  ;;  %v527_v11 = vmax.f32 %v403_v16, %v526_v19  ;;  %v531_v5 = vmax.f32 %v405_v1, %v530_v43  ;;  %v1863_v48 = vunpack.c.l.b16 %v1831_v42 }
 0x1c7   : > { %v4290_v9 = vpop.f32.mrf.mxu2  ;;  %v1633_v13 = vmax.f32 %v1631_v40, %v1632_v0  ;;  %v1864_v40 = vunpack.c.l.b16 %v1832_v56 }
 0x1c8   : > { %v1497_v41 = vadd.f32 %v3942_v49, %v1464_v27  ;;  %520 = vmax.xlane.f32.xlu0 %v519_v21 }
 0x1c9   : > { %516 = vmax.xlane.f32.xlu2 %v515_v55 }
 0x1ca   : > { %v1635_v7 = vsel %vm1498_vm3, %v1497_v41, -inf  ;;  %v1658_v17 = vpack.c.bf16 %v1497_v41, %v1496_v37  ;;  %v1834_v37 = vpack.c.bf16 %v1633_v13, %v1633_v13  ;;  %v1884_v41 = vsel %vm1872_vm6, %v1863_v48, %v4152_v23 }
 0x1cb   : > { %v1636_v49 = vmax.f32 %v1634_v50, %v1635_v7  ;;  %524 = vmax.xlane.f32.xlu1 %v523_v63  ;;  %v1885_v38 = vsel %vm1874_vm7, %v1864_v40, %v1884_v41 }
 0x1cc   : > { %3375 = vmatmul.msk.bf16.gmra.mxu2 %vm1498_vm3, %v1658_v17  ;;  %v1866_v25 = vunpack.c.l.b16 %v1834_v37  ;;  %v1886_v12 = vsel %vm1876_vm8, %v1865_v59, %v1885_v38 }
 0x1cd   : > { %v1637_v2 = vrot.slane %v1636_v49, 4 }
 0x1ce   : > { %v1887_v34 = vsel %vm5413_vm9, %v1866_v25, %v1886_v12 }
 0x1cf   : > { %v1638_v57 = vmax.f32 %v1636_v49, %v1637_v2  ;;  %v4300_v26 = vpop.f32.mrf.mxu2 }
 0x1d0   : > { %532 = vmax.xlane.f32.xlu0 %v531_v5 }
 0x1d1   : > { %v1639_v44 = vrot.slane %v1638_v57, 2  ;;  %528 = vmax.xlane.f32.xlu2 %v527_v11 }
 0x1d3   : > { %v1640_v36 = vmax.f32 %v1638_v57, %v1639_v44  ;;  %536 = vmax.xlane.f32.xlu1 %v535_v8 }
 0x1d5   : > { %v1641_v27 = vrot.slane %v1640_v36, 1 }
 0x1d7   : > { %v1642_v47 = vmax.f32 %v1640_v36, %v1641_v27  ;;  %v4308_v7 = vpop.f32.mrf.mxu2 }
 0x1d9   : > { %v1835_v18 = vpack.c.bf16 %v1642_v47, %v1642_v47 }
 0x1db   : > { %v1867_v52 = vunpack.c.l.b16 %v1835_v18 }
 0x1dd   : > { %v1888_v50 = vsel %vm5412_vm10, %v1867_v52, %v1887_v34  ;;  %v3461_v34 = vld [vmem:[%s5405_s3 + $0x18] sm:$0xff] }
 0x1de   : > { %v1889_v60 = vpack.c.b16 %v1888_v50, %v4096_v35  ;;  %2377 = vmatpush.bf16.msrb.mxu3 %v3461_v34 }
 0x1df   : > { %v4310_v17 = vpop.f32.mrf.mxu2 }
 0x1e0   : > { %3392 = vmatmul.msk.bf16.vlgmr.msra.gmra.mxu3 %vm1498_vm3, %v1889_v60 }
 0x1e7   : > { %v4312_v23 = vpop.f32.mrf.mxu2 }
 0x1ef   : > { %v4314_v49 = vpop.f32.mrf.mxu2 }
 0x1f1   : > { %v421_v55 = vpop.xlane.xlu1 %420 }
 0x1f2   : > { %v413_v15 = vpop.xlane.xlu0 %412  ;;  %v540_v43 = vpack.c.bf16 %v421_v55, %v421_v55 }
 0x1f3   : > { %v538_v36 = vpack.c.bf16 %v413_v15, %v413_v15 }
 0x1f4   : > { %v572_v8 = vunpack.c.l.bf16 %v540_v43 }
 0x1f5   : > { %v570_v37 = vunpack.c.l.bf16 %v538_v36 }
 0x1f6   : > { %v604_v38 = vand.u32 2147483647, %v572_v8 }
 0x1f7   : > { %v4316_v21 = vpop.f32.mrf.mxu2  ;;  %v602_v52 = vand.u32 2147483647, %v570_v37 }
 0x1f8   : > { %vm4356_vm11 = vcmp.gt.f32.partialorder %v604_v38, 1e-08  ;;  %v5414_v38 = vmov 0.0  }
 0x1f9   : > { %vm4360_vm12 = vcmp.gt.f32.partialorder %v602_v52, 1e-08 }
 0x1fa   : > { %v417_v0 = vpop.xlane.xlu0 %416  ;;  %v4379_v52 = vsel %vm4360_vm12, 1.0, %v5414_v38 }
 0x1fb   : > { %v539_v40 = vpack.c.bf16 %v417_v0, %v417_v0  ;;  %5484 = vst [vmem:[#allocation15_spill] sm:$0xff] %v4379_v52 }
 0x1fc   : > { %v429_v63 = vpop.xlane.xlu2 %428 }
 0x1fd   : > { %v542_v48 = vpack.c.bf16 %v429_v63, %v429_v63  ;;  %v571_v55 = vunpack.c.l.bf16 %v539_v40 }
 0x1fe   : > { %v425_v32 = vpop.xlane.xlu1 %424 }
 0x1ff   : > { %v4318_v28 = vpop.f32.mrf.mxu2  ;;  %v541_v27 = vpack.c.bf16 %v425_v32, %v425_v32  ;;  %v574_v50 = vunpack.c.l.bf16 %v542_v48  ;;  %v603_v37 = vand.u32 2147483647, %v571_v55 }
 0x201   : > { %v573_v60 = vunpack.c.l.bf16 %v541_v27  ;;  %v606_v6 = vand.u32 2147483647, %v574_v50  ;;  %vm4391_vm15 = vcmp.gt.f32.partialorder %v603_v37, 1e-08 }
 0x202   : > { %v437_v35 = vpop.xlane.xlu0 %436 }
 0x203   : > { %v544_v25 = vpack.c.bf16 %v437_v35, %v437_v35  ;;  %v605_v8 = vand.u32 2147483647, %v573_v60  ;;  %vm4383_vm13 = vcmp.gt.f32.partialorder %v606_v6, 1e-08 }
 0x204   : > { %v433_v53 = vpop.xlane.xlu2 %432 }
 0x205   : > { %v543_v47 = vpack.c.bf16 %v433_v53, %v433_v53  ;;  %v576_v53 = vunpack.c.l.bf16 %v544_v25  ;;  %vm4387_vm14 = vcmp.gt.f32.partialorder %v605_v8, 1e-08  ;;  %v4422_v8 = vsel %vm4383_vm13, 1.0, %v5414_v38 }
 0x206   : > { %v441_v2 = vpop.xlane.xlu1 %440  ;;  %5501 = vst [vmem:[#allocation16_spill] sm:$0xff] %v4422_v8  ;;  %v4427_v37 = vsel %vm4387_vm14, 1.0, %v5414_v38 }
 0x207   : > { %v4320_v46 = vpop.f32.mrf.mxu2  ;;  %v545_v59 = vpack.c.bf16 %v441_v2, %v441_v2  ;;  %v575_v32 = vunpack.c.l.bf16 %v543_v47  ;;  %v608_v40 = vand.u32 2147483647, %v576_v53  ;;  %5502 = vst [vmem:[#allocation17_spill] sm:$0xff] %v4427_v37 }
 0x209   : > { %v577_v0 = vunpack.c.l.bf16 %v545_v59  ;;  %v607_v48 = vand.u32 2147483647, %v575_v32  ;;  %vm4405_vm2 = vcmp.gt.f32.partialorder %v608_v40, 1e-08  ;;  %v3459_v40 = vld [vmem:[%s5405_s3 + $0x8] sm:$0xff] }
 0x20a   : > { %v449_v16 = vpop.xlane.xlu0 %448 }
 0x20b   : > { %v609_v27 = vand.u32 2147483647, %v577_v0  ;;  %vm4397_vm0 = vcmp.gt.f32.partialorder %v607_v48, 1e-08 }
 0x20c   : > { %v445_v14 = vpop.xlane.xlu2 %444 }
 0x20d   : > { %v546_v18 = vpack.c.bf16 %v445_v14, %v445_v14  ;;  %v547_v14 = vpack.c.bf16 %v449_v16, %v449_v16  ;;  %vm4401_vm1 = vcmp.gt.f32.partialorder %v609_v27, 1e-08 }
 0x20e   : > { %v453_v57 = vpop.xlane.xlu1 %452 }
 0x20f   : > { %v4326_v1 = vpop.f32.mrf.mxu2  ;;  %v548_v41 = vpack.c.bf16 %v453_v57, %v453_v57  ;;  %v578_v2 = vunpack.c.l.bf16 %v546_v18  ;;  %v579_v18 = vunpack.c.l.bf16 %v547_v14 }
 0x211   : > { %v580_v35 = vunpack.c.l.bf16 %v548_v41  ;;  %v610_v16 = vand.u32 2147483647, %v578_v2  ;;  %v3460_v41 = vld [vmem:[%s5405_s3 + $0x10] sm:$0xff]  ;;  %v611_v57 = vand.u32 2147483647, %v579_v18  ;;  %v4450_v18 = vsel %vm4405_vm2, 1.0, %v5414_v38 }
 0x212   : > { %v4324_v10 = vpop.xlane.xlu0 %460  ;;  %2378 = vmatpush.bf16.msrb.mxu3 %v3460_v41  ;;  %5506 = vst [vmem:[#allocation21_spill] sm:$0xff] %v4450_v18 }
 0x213   : > { %v612_v25 = vand.u32 2147483647, %v580_v35  ;;  %v550_v34 = vpack.c.bf16 %v4324_v10, %v4324_v10  ;;  %vm643_vm13 = vcmp.gt.f32.partialorder %v611_v57, 1e-08 }
 0x214   : > { %v457_v22 = vpop.xlane.xlu2 %456  ;;  %v4483_v57 = vsel %vm643_vm13, 1.0, %v5414_v38 }
 0x215   : > { %v549_v36 = vpack.c.bf16 %v457_v22, %v457_v22  ;;  %v4374_v22 = vsel %vm4356_vm11, 1.0, %v5414_v38  ;;  %vm4409_vm11 = vcmp.gt.f32.partialorder %v610_v16, 1e-08  ;;  %vm4413_vm12 = vcmp.gt.f32.partialorder %v612_v25, 1e-08  ;;  %5511 = vst [vmem:[#allocation24_spill] sm:$0xff] %v4483_v57 }
 0x216   : > { %v4322_v13 = vpop.xlane.xlu1 %464  ;;  %5483 = vst [vmem:[#allocation14_spill] sm:$0xff] %v4374_v22  ;;  %v582_v27 = vunpack.c.l.bf16 %v550_v34  ;;  %v4445_v16 = vsel %vm4401_vm1, 1.0, %v5414_v38  ;;  %v4455_v41 = vsel %vm4409_vm11, 1.0, %v5414_v38  ;;  %2379 = vmatpush.bf16.msrb.mxu3 %v3459_v40 }
 0x217   : > { %v4334_v19 = vpop.f32.mrf.mxu2  ;;  %v551_v47 = vpack.c.bf16 %v4322_v13, %v4322_v13  ;;  %v581_v13 = vunpack.c.l.bf16 %v549_v36  ;;  %5505 = vst [vmem:[#allocation20_spill] sm:$0xff] %v4445_v16 }
 0x218   : > { %5507 = vst [vmem:[#allocation22_spill] sm:$0xff] %v4455_v41  ;;  %v614_v0 = vand.u32 2147483647, %v582_v27 }
 0x219   : > { %v583_v2 = vunpack.c.l.bf16 %v551_v47  ;;  %v613_v48 = vand.u32 2147483647, %v581_v13  ;;  %v4440_v47 = vsel %vm4397_vm0, 1.0, %v5414_v38  ;;  %v4460_v13 = vsel %vm4413_vm12, 1.0, %v5414_v38 }
 0x21a   : > { %5504 = vst [vmem:[#allocation19_spill] sm:$0xff] %v4440_v47  ;;  %vm4494_vm0 = vcmp.gt.f32.partialorder %v614_v0, 1e-08 }
 0x21b   : > { %v4332_v44 = vpop.xlane.xlu0 %472  ;;  %5508 = vst [vmem:[#allocation23_spill] sm:$0xff] %v4460_v13  ;;  %v615_v34 = vand.u32 2147483647, %v583_v2  ;;  %vm4466_vm14 = vcmp.gt.f32.partialorder %v613_v48, 1e-08 }
 0x21c   : > { %v4328_v54 = vpop.xlane.xlu2 %468  ;;  %v553_v60 = vpack.c.bf16 %v4332_v44, %v4332_v44 }
 0x21d   : > { %v552_v32 = vpack.c.bf16 %v4328_v54, %v4328_v54 }
 0x21e   : > { %v4330_v42 = vpop.xlane.xlu1 %476  ;;  %v585_v27 = vunpack.c.l.bf16 %v553_v60 }
 0x21f   : > { %v4345_v5 = vpop.f32.mrf.mxu2  ;;  %v554_v43 = vpack.c.bf16 %v4330_v42, %v4330_v42  ;;  %v4435_v42 = vsel %vm4391_vm15, 1.0, %v5414_v38  ;;  %v584_v25 = vunpack.c.l.bf16 %v552_v32  ;;  %vm4485_vm15 = vcmp.gt.f32.partialorder %v615_v34, 1e-08 }
 0x220   : > { %5503 = vst [vmem:[#allocation18_spill] sm:$0xff] %v4435_v42  ;;  %v617_v37 = vand.u32 2147483647, %v585_v27  ;;  %v4593_v42 = vld [vmem:[%s5406_s4] sm:$0xff] }
 0x221   : > { %v586_v50 = vunpack.c.l.bf16 %v554_v43  ;;  %v616_v14 = vand.u32 2147483647, %v584_v25  ;;  %5544 = vst [vmem:[#allocation41_spill] sm:$0xff] %v4593_v42 }
 0x222   : > { %vm649_vm11 = vcmp.gt.f32.partialorder %v617_v37, 1e-08 }
 0x223   : > { %v4340_v33 = vpop.xlane.xlu0 %484  ;;  %v618_v48 = vand.u32 2147483647, %v586_v50  ;;  %vm648_vm1 = vcmp.gt.f32.partialorder %v616_v14, 1e-08 }
 0x224   : > { %v4336_v56 = vpop.xlane.xlu2 %480  ;;  %v556_v53 = vpack.c.bf16 %v4340_v33, %v4340_v33  ;;  %v4509_v14 = vsel %vm648_vm1, 1.0, %v5414_v38 }
 0x225   : > { %v555_v55 = vpack.c.bf16 %v4336_v56, %v4336_v56  ;;  %vm650_vm2 = vcmp.gt.f32.partialorder %v618_v48, 1e-08  ;;  %5519 = vst [vmem:[#allocation28_spill] sm:$0xff] %v4509_v14 }
 0x226   : > { %v4338_v11 = vpop.xlane.xlu1 %488  ;;  %v588_v34 = vunpack.c.l.bf16 %v556_v53  ;;  %v4506_v53 = vsel %vm4494_vm0, 1.0, %v5414_v38 }
 0x227   : > { %v4366_v59 = vpop.f32.mrf.mxu2  ;;  %v557_v10 = vpack.c.bf16 %v4338_v11, %v4338_v11  ;;  %v587_v40 = vunpack.c.l.bf16 %v555_v55  ;;  %5518 = vst [vmem:[#allocation27_spill] sm:$0xff] %v4506_v53 }
 0x229   : > { %v619_v22 = vand.u32 2147483647, %v587_v40 }
 0x22b   : > { %v4354_v63 = vpop.xlane.xlu0 %496  ;;  %vm651_vm12 = vcmp.gt.f32.partialorder %v619_v22, 1e-08 }
 0x22c   : > { %v4347_v12 = vpop.xlane.xlu2 %492  ;;  %v559_v54 = vpack.c.bf16 %v4354_v63, %v4354_v63  ;;  %v589_v63 = vunpack.c.l.bf16 %v557_v10 }
 0x22d   : > { %v558_v44 = vpack.c.bf16 %v4347_v12, %v4347_v12  ;;  %v4492_v12 = vsel %vm4466_vm14, 1.0, %v5414_v38 }
 0x22e   : > { %v4352_v15 = vpop.xlane.xlu1 %500  ;;  %5514 = vst [vmem:[#allocation25_spill] sm:$0xff] %v4492_v12 }
 0x22f   : > { %v4474_v2 = vpop.f32.mrf.mxu2  ;;  %v560_v56 = vpack.c.bf16 %v4352_v15, %v4352_v15  ;;  %v590_v8 = vunpack.c.l.bf16 %v558_v44  ;;  %v621_v44 = vand.u32 2147483647, %v589_v63 }
 0x231   : > { %vm653_vm13 = vcmp.gt.f32.partialorder %v621_v44, 1e-08 }
 0x233   : > { %v509_v6 = vpop.xlane.xlu0 %508 }
 0x234   : > { %v505_v35 = vpop.xlane.xlu2 %504  ;;  %v562_v25 = vpack.c.bf16 %v509_v6, %v509_v6  ;;  %v4501_v6 = vsel %vm4485_vm15, 1.0, %v5414_v38 }
 0x235   : > { %v561_v33 = vpack.c.bf16 %v505_v35, %v505_v35  ;;  %v592_v35 = vunpack.c.l.bf16 %v560_v56  ;;  %5517 = vst [vmem:[#allocation26_spill] sm:$0xff] %v4501_v6  ;;  %v620_v56 = vand.u32 2147483647, %v588_v34 }
 0x236   : > { %v513_v36 = vpop.xlane.xlu1 %512  ;;  %v594_v10 = vunpack.c.l.bf16 %v562_v25 }
 0x237   : > { %v563_v43 = vpack.c.bf16 %v513_v36, %v513_v36  ;;  %v591_v36 = vunpack.c.l.bf16 %v559_v54  ;;  %v593_v55 = vunpack.c.l.bf16 %v561_v33  ;;  %v622_v54 = vand.u32 2147483647, %v590_v8  ;;  %v4514_v27 = vpop.f32.mrf.mxu2 }
 0x238   : > { %v624_v11 = vand.u32 2147483647, %v592_v35  ;;  %v4512_v33 = vsel %vm650_vm2, 1.0, %v5414_v38  ;;  %v626_v40 = vand.u32 2147483647, %v594_v10 }
 0x239   : > { %v595_v32 = vunpack.c.l.bf16 %v563_v43  ;;  %v623_v31 = vand.u32 2147483647, %v591_v36  ;;  %5520 = vst [vmem:[#allocation29_spill] sm:$0xff] %v4512_v33  ;;  %vm4516_vm14 = vcmp.gt.f32.partialorder %v620_v56, 1e-08 }
 0x23a   : > { %vm654_vm15 = vcmp.gt.f32.partialorder %v622_v54, 1e-08  ;;  %vm4520_vm0 = vcmp.gt.f32.partialorder %v624_v11, 1e-08  ;;  %vm658_vm9 = vcmp.gt.f32.partialorder %v626_v40, 1e-08 }
 0x23b   : > { %v521_v60 = vpop.xlane.xlu0 %520  ;;  %v627_v43 = vand.u32 2147483647, %v595_v32  ;;  %vm4524_vm1 = vcmp.gt.f32.partialorder %v623_v31, 1e-08  ;;  %v4543_v31 = vsel %vm653_vm13, 1.0, %v5414_v38  ;;  %v4551_v10 = vsel %vm654_vm15, 1.0, %v5414_v38 }
 0x23c   : > { %v517_v47 = vpop.xlane.xlu2 %516  ;;  %v565_v8 = vpack.c.bf16 %v521_v60, %v521_v60  ;;  %v4540_v60 = vsel %vm651_vm12, 1.0, %v5414_v38  ;;  %5533 = vst [vmem:[#allocation32_spill] sm:$0xff] %v4543_v31  ;;  %v4556_v54 = vsel %vm4520_vm0, 1.0, %v5414_v38  ;;  %v4561_v11 = vsel %vm4524_vm1, 1.0, %v5414_v38 }
 0x23d   : > { %v564_v0 = vpack.c.bf16 %v517_v47, %v517_v47  ;;  %v625_v47 = vand.u32 2147483647, %v593_v55  ;;  %vm4532_vm10 = vcmp.gt.f32.partialorder %v627_v43, 1e-08  ;;  %5532 = vst [vmem:[#allocation31_spill] sm:$0xff] %v4540_v60  ;;  %v4577_v40 = vsel %vm658_vm9, 1.0, %v5414_v38 }
 0x23e   : > { %v525_v50 = vpop.xlane.xlu1 %524  ;;  %5535 = vst [vmem:[#allocation34_spill] sm:$0xff] %v4551_v10  ;;  %v597_v56 = vunpack.c.l.bf16 %v565_v8  ;;  %v4571_v43 = vsel %vm4532_vm10, 1.0, %v5414_v38  ;;  %vm5585_vm15 = vcmask 1046534   ;;  %vm5587_vm1 = vcmask 1047559  }
 0x23f   : > { %v596_v48 = vunpack.c.l.bf16 %v564_v0  ;;  %v566_v15 = vpack.c.bf16 %v525_v50, %v525_v50  ;;  %vm4528_vm2 = vcmp.gt.f32.partialorder %v625_v47, 1e-08  ;;  %v4537_v50 = vsel %vm649_vm11, 1.0, %v5414_v38  ;;  %5536 = vst [vmem:[#allocation35_spill] sm:$0xff] %v4556_v54  ;;  %vm5586_vm0 = vmmov %vm5585_vm15 }
 0x240   : > { %5531 = vst [vmem:[#allocation30_spill] sm:$0xff] %v4537_v50  ;;  %v4548_v0 = vsel %vm4516_vm14, 1.0, %v5414_v38  ;;  %v4566_v47 = vsel %vm4528_vm2, 1.0, %v5414_v38  ;;  %v629_v30 = vand.u32 2147483647, %v597_v56  ;;  %vm5588_vm2 = vmmov %vm5587_vm1 }
 0x241   : > { %v628_v35 = vand.u32 2147483647, %v596_v48  ;;  %5534 = vst [vmem:[#allocation33_spill] sm:$0xff] %v4548_v0  ;;  %v598_v44 = vunpack.c.l.bf16 %v566_v15  ;;  %v3458_v48 = vld [vmem:[%s5405_s3] sm:$0xff] }
 0x242   : > { %5537 = vst [vmem:[#allocation36_spill] sm:$0xff] %v4561_v11  ;;  %2380 = vmatpush.bf16.msrb.mxu3 %v3458_v48  ;;  %vm4630_vm10 = vcmp.gt.f32.partialorder %v629_v30, 1e-08 }
 0x243   : > { %v533_v32 = vpop.xlane.xlu0 %532  ;;  %5538 = vst [vmem:[#allocation37_spill] sm:$0xff] %v4566_v47  ;;  %vm4579_vm11 = vcmp.gt.f32.partialorder %v628_v35, 1e-08  ;;  %v630_v38 = vand.u32 2147483647, %v598_v44 }
 0x244   : > { %v529_v36 = vpop.xlane.xlu2 %528  ;;  %5539 = vst [vmem:[#allocation38_spill] sm:$0xff] %v4571_v43  ;;  %v568_v34 = vpack.c.bf16 %v533_v32, %v533_v32 }
 0x245   : > { %5540 = vst [vmem:[#allocation39_spill] sm:$0xff] %v4577_v40  ;;  %v567_v8 = vpack.c.bf16 %v529_v36, %v529_v36  ;;  %v4596_v36 = vperm.slane %v4593_v42, 2  ;;  %vm4626_vm9 = vcmp.gt.f32.partialorder %v630_v38, 1e-08 }
 0x246   : > { %v537_v55 = vpop.xlane.xlu1 %536  ;;  %v600_v56 = vunpack.c.l.bf16 %v568_v34 }
 0x247   : > { %v569_v63 = vpack.c.bf16 %v537_v55, %v537_v55  ;;  %v4598_v55 = vpop.f32.mrf.mxu2  ;;  %v599_v48 = vunpack.c.l.bf16 %v567_v8 }
 0x249   : > { %v601_v44 = vunpack.c.l.bf16 %v569_v63 }
 0x24f   : > { %v4642_v38 = vpop.f32.mrf.mxu2 }
 0x263   : > { %v4583_v15 = vpop.f32.mrf.mxu3 }
 0x264   : > { %5543 = vst [vmem:[#allocation40_spill] sm:$0xff] %v4583_v15  ;;  %v1935_v37 = vrot.slane %v4583_v15, 3  ;;  %v1936_v22 = vrot.slane %v4583_v15, 4  ;;  %v1937_v24 = vrot.slane %v4583_v15, 5  ;;  %v1938_v3 = vrot.slane %v4583_v15, 6 }
 0x265   : > { %v1939_v35 = vrot.slane %v4583_v15, 7 }
 0x266   : > { %v1950_v32 = vperm.slane %v1935_v37, 0  ;;  %v1951_v52 = vperm.slane %v1936_v22, 0  ;;  %v1952_v4 = vperm.slane %v1937_v24, 0  ;;  %v1953_v58 = vperm.slane %v1938_v3, 0 }
 0x267   : > { %v1954_v43 = vperm.slane %v1939_v35, 0 }
 0x268   : > { %v1985_v15 = vadd.f32 %v1950_v32, %v4154_v45  ;;  %v1986_v40 = vadd.f32 %v1950_v32, %v4166_v20  ;;  %v1987_v47 = vadd.f32 %v1951_v52, %v4184_v61  ;;  %v1988_v54 = vadd.f32 %v1951_v52, %v4198_v62 }
 0x269   : > { %v1989_v11 = vadd.f32 %v1952_v4, %v4226_v39  ;;  %v1990_v10 = vadd.f32 %v1952_v4, %v4258_v29  ;;  %v1991_v37 = vadd.f32 %v1953_v58, %v4272_v51  ;;  %v1992_v3 = vadd.f32 %v1953_v58, %v4290_v9 }
 0x26a   : > { %v1993_v24 = vadd.f32 %v1954_v43, %v4300_v26  ;;  %v1994_v8 = vadd.f32 %v1954_v43, %v4308_v7  ;;  %v2017_v45 = vmul.f32 %v4450_v18, %v1985_v15  ;;  %v2018_v20 = vmul.f32 %v4445_v16, %v1986_v40 }
 0x26b   : > { %v2019_v61 = vmul.f32 %v4455_v41, %v1987_v47  ;;  %v2020_v62 = vmul.f32 %v4483_v57, %v1988_v54  ;;  %v2021_v39 = vmul.f32 %v4460_v13, %v1989_v11  ;;  %v631_v52 = vand.u32 2147483647, %v599_v48 }
 0x26c   : > { %v2022_v4 = vmul.f32 %v4492_v12, %v1990_v10  ;;  %v2023_v29 = vmul.f32 %v4506_v53, %v1991_v37  ;;  %v633_v58 = vand.u32 2147483647, %v601_v44  ;;  %v632_v51 = vand.u32 2147483647, %v600_v56 }
 0x26d   : > { %v2024_v9 = vmul.f32 %v4501_v6, %v1992_v3  ;;  %v2025_v26 = vmul.f32 %v4509_v14, %v1993_v24  ;;  %v2026_v7 = vmul.f32 %v4537_v50, %v1994_v8  ;;  %v2050_v43 = vadd.f32 %v4596_v36, %v2017_v45 }
 0x26e   : > { %v5545_v47 = vmov 0.0   ;;  %v2051_v40 = vadd.f32 %v4596_v36, %v2018_v20  ;;  %v2052_v15 = vadd.f32 %v4596_v36, %v2019_v61  ;;  %v2053_v63 = vadd.f32 %v4596_v36, %v2020_v62 }
 0x26f   : > { %v4624_v54 = vsel %vm4579_vm11, 1.0, %v5545_v47  ;;  %v2054_v34 = vadd.f32 %v4596_v36, %v2021_v39  ;;  %vm4638_vm12 = vcmp.gt.f32.partialorder %v631_v52, 1e-08  ;;  %v2055_v22 = vadd.f32 %v4596_v36, %v2022_v4  ;;  %v1928_v52 = vpop.f32.mrf.mxu3 }
 0x270   : > { %5546 = vst [vmem:[#allocation42_spill] sm:$0xff] %v4624_v54  ;;  %v2056_v30 = vadd.f32 %v4596_v36, %v2023_v29  ;;  %vm4646_vm13 = vcmp.gt.f32.partialorder %v633_v58, 1e-08  ;;  %vm4650_vm14 = vcmp.gt.f32.partialorder %v632_v51, 1e-08  ;;  %v2057_v48 = vadd.f32 %v4596_v36, %v2024_v9 }
 0x271   : > { %v4656_v44 = vadd.f32 %v4596_v36, %v2025_v26  ;;  %v4659_v56 = vadd.f32 %v4596_v36, %v2026_v7  ;;  %v2082_v37 = vmax.f32 %v2050_v43, 0.0  ;;  %v4664_v3 = vsel %vm4626_vm9, 1.0, %v5545_v47 }
 0x272   : > { %5557 = vst [vmem:[#allocation43_spill] sm:$0xff] %v4664_v3  ;;  %v4669_v24 = vsel %vm4630_vm10, 1.0, %v5545_v47  ;;  %v2083_v8 = vmax.f32 %v2051_v40, 0.0  ;;  %v4672_v45 = vperm.slane %v4593_v42, 3  ;;  %v2084_v20 = vmax.f32 %v2052_v15, 0.0 }
 0x273   : > { %5558 = vst [vmem:[#allocation44_spill] sm:$0xff] %v4669_v24  ;;  %v2085_v61 = vmax.f32 %v2053_v63, 0.0  ;;  %v2086_v62 = vmax.f32 %v2054_v34, 0.0  ;;  %v4677_v39 = vsel %vm4638_vm12, 1.0, %v5545_v47  ;;  %v2087_v4 = vmax.f32 %v2055_v22, 0.0 }
 0x274   : > { %5559 = vst [vmem:[#allocation45_spill] sm:$0xff] %v4677_v39  ;;  %v2088_v29 = vmax.f32 %v2056_v30, 0.0  ;;  %v4682_v58 = vsel %vm4646_vm13, 1.0, %v5545_v47  ;;  %v4687_v51 = vsel %vm4650_vm14, 1.0, %v5545_v47  ;;  %v2089_v9 = vmax.f32 %v2057_v48, 0.0 }
 0x275   : > { %5560 = vst [vmem:[#allocation46_spill] sm:$0xff] %v4682_v58  ;;  %v4692_v43 = vadd.f32 %v4672_v45, %v2082_v37  ;;  %v4695_v11 = vadd.f32 %v4672_v45, %v2083_v8  ;;  %v1940_v10 = vrot.slane %v1928_v52, 1  ;;  %v1941_v40 = vrot.slane %v1928_v52, 2 }
 0x276   : > { %5561 = vst [vmem:[#allocation47_spill] sm:$0xff] %v4687_v51  ;;  %v1942_v15 = vrot.slane %v1928_v52, 3  ;;  %v4698_v63 = vadd.f32 %v4672_v45, %v2084_v20  ;;  %v4701_v47 = vadd.f32 %v4672_v45, %v2085_v61  ;;  %v4704_v34 = vadd.f32 %v4672_v45, %v2086_v62  ;;  %v1815_v61 = vpop.f32.mrf.mxu2 }
 0x277   : > { %v1943_v25 = vrot.slane %v1928_v52, 4  ;;  %v4707_v22 = vadd.f32 %v4672_v45, %v2087_v4  ;;  %v4710_v30 = vadd.f32 %v4672_v45, %v2088_v29  ;;  %v1944_v35 = vrot.slane %v1928_v52, 5 }
 0x278   : > { %v1945_v32 = vrot.slane %v1928_v52, 6  ;;  %v4713_v48 = vadd.f32 %v4672_v45, %v2089_v9  ;;  %v1955_v37 = vperm.slane %v1928_v52, 0  ;;  %v1956_v8 = vperm.slane %v1940_v10, 0 }
 0x279   : > { %v1957_v20 = vperm.slane %v1941_v40, 0  ;;  %v2168_v62 = vsel %vm1498_vm3, %v4692_v43, -inf  ;;  %v1958_v7 = vperm.slane %v1942_v15, 0  ;;  %v1959_v26 = vperm.slane %v1943_v25, 0 }
 0x27a   : > { %v1960_v14 = vperm.slane %v1944_v35, 0  ;;  %v2169_v4 = vsel %vm1498_vm3, %v4695_v11, -inf  ;;  %v4721_v29 = vsel %vm1498_vm3, %v4698_v63, -inf  ;;  %v1946_v50 = vrot.slane %v1928_v52, 7 }
 0x27b   : > { %v1961_v9 = vperm.slane %v1945_v32, 0  ;;  %v1995_v6 = vadd.f32 %v1955_v37, %v4310_v17  ;;  %v1996_v10 = vadd.f32 %v1955_v37, %v4312_v23  ;;  %v1997_v40 = vadd.f32 %v1956_v8, %v4314_v49 }
 0x27c   : > { %v1998_v53 = vadd.f32 %v1956_v8, %v4316_v21  ;;  %v4729_v15 = vsel %vm1498_vm3, %v4701_v47, -inf  ;;  %v1999_v25 = vadd.f32 %v1957_v20, %v4318_v28  ;;  %v2000_v35 = vadd.f32 %v1957_v20, %v4320_v46  ;;  %v5566_v20 = vld [vmem:[#allocation39_spill] sm:$0xff] }
 0x27d   : > { %v2001_v13 = vadd.f32 %v1958_v7, %v4326_v1  ;;  %v2002_v52 = vadd.f32 %v1958_v7, %v4334_v19  ;;  %v2003_v17 = vadd.f32 %v1959_v26, %v4345_v5  ;;  %v2004_v23 = vadd.f32 %v1959_v26, %v4366_v59  ;;  %v5562_v59 = vld [vmem:[#allocation34_spill] sm:$0xff]  ;;  %v5564_v7 = vld [vmem:[#allocation35_spill] sm:$0xff] }
 0x27e   : > { %v2005_v49 = vadd.f32 %v1960_v14, %v4474_v2  ;;  %v1962_v32 = vperm.slane %v1946_v50, 0  ;;  %v2006_v21 = vadd.f32 %v1960_v14, %v4514_v27  ;;  %v2007_v37 = vadd.f32 %v1961_v9, %v4598_v55  ;;  %v5563_v2 = vld [vmem:[#allocation36_spill] sm:$0xff]  ;;  %v5565_v27 = vld [vmem:[#allocation37_spill] sm:$0xff] }
 0x27f   : > { %v2008_v8 = vadd.f32 %v1961_v9, %v4642_v38  ;;  %v2027_v28 = vmul.f32 %v4512_v33, %v1995_v6  ;;  %v2028_v46 = vmul.f32 %v4540_v60, %v1996_v10  ;;  %v2029_v1 = vmul.f32 %v4548_v0, %v1997_v40  ;;  %v5567_v9 = vld [vmem:[#allocation38_spill] sm:$0xff]  ;;  %v5580_v0 = vld [vmem:[#allocation17_spill] sm:$0xff]  ;;  %v5582_v33 = vld [vmem:[#allocation19_spill] sm:$0xff] }
 0x280   : > { %v2030_v19 = vmul.f32 %v4543_v31, %v1998_v53  ;;  %v4745_v5 = vmax.f32 %v2168_v62, %v2169_v4  ;;  %v2031_v26 = vmul.f32 %v5562_v59, %v1999_v25  ;;  %v2032_v50 = vmul.f32 %v5563_v2, %v2000_v35  ;;  %v1817_v4 = vpop.f32.mrf.mxu2  ;;  %v5578_v59 = vld [vmem:[#allocation13_spill] sm:$0xff]  ;;  %v5579_v31 = vld [vmem:[#allocation14_spill] sm:$0xff] }
 0x281   : > { %v2033_v14 = vmul.f32 %v5564_v7, %v2001_v13  ;;  %v2034_v55 = vmul.f32 %v5565_v27, %v2002_v52  ;;  %v2035_v38 = vmul.f32 %v5566_v20, %v2003_v17  ;;  %v2036_v6 = vmul.f32 %v5567_v9, %v2004_v23  ;;  %v5575_v20 = vld [vmem:[#allocation10_spill] sm:$0xff]  ;;  %v5576_v27 = vld [vmem:[#allocation11_spill] sm:$0xff] }
 0x282   : > { %v2037_v10 = vmul.f32 %v4624_v54, %v2005_v49  ;;  %v2009_v60 = vadd.f32 %v1962_v32, %v1815_v61  ;;  %v2038_v40 = vmul.f32 %v4669_v24, %v2006_v21  ;;  %v2039_v53 = vmul.f32 %v4664_v3, %v2007_v37  ;;  %v3464_v54 = vld [vmem:[%s5405_s3 + $0x30] sm:$0xff] }
 0x283   : > { %v2040_v62 = vmul.f32 %v4677_v39, %v2008_v8  ;;  %v2060_v25 = vadd.f32 %v4596_v36, %v2027_v28  ;;  %v2061_v13 = vadd.f32 %v4596_v36, %v2028_v46  ;;  %v2062_v35 = vadd.f32 %v4596_v36, %v2029_v1  ;;  %2557 = vmatpush.bf16.msrb.mxu1 %v3464_v54  ;;  %v5581_v54 = vld [vmem:[#allocation16_spill] sm:$0xff] }
 0x284   : > { %v2063_v52 = vadd.f32 %v4596_v36, %v2030_v19  ;;  %v2010_v17 = vadd.f32 %v1962_v32, %v1817_v4  ;;  %v2064_v23 = vadd.f32 %v4596_v36, %v2031_v26  ;;  %v2065_v61 = vadd.f32 %v4596_v36, %v2032_v50 }
 0x285   : > { %v2066_v49 = vadd.f32 %v4596_v36, %v2033_v14  ;;  %v2067_v21 = vadd.f32 %v4596_v36, %v2034_v55  ;;  %v2068_v37 = vadd.f32 %v4596_v36, %v2035_v38  ;;  %v2069_v8 = vadd.f32 %v4596_v36, %v2036_v6 }
 0x286   : > { %v4768_v28 = vadd.f32 %v4596_v36, %v2037_v10  ;;  %v4771_v46 = vadd.f32 %v4596_v36, %v2038_v40  ;;  %v4774_v32 = vadd.f32 %v4596_v36, %v2039_v53  ;;  %v2092_v1 = vmax.f32 %v2060_v25, 0.0 }
 0x287   : > { %v2093_v19 = vmax.f32 %v2061_v13, 0.0  ;;  %v4777_v26 = vadd.f32 %v4596_v36, %v2040_v62  ;;  %v2094_v50 = vmax.f32 %v2062_v35, 0.0  ;;  %v2095_v14 = vmax.f32 %v2063_v52, 0.0 }
 0x288   : > { %v2096_v55 = vmax.f32 %v2064_v23, 0.0  ;;  %v2041_v38 = vmul.f32 %v4687_v51, %v2009_v60  ;;  %v2042_v6 = vmul.f32 %v4682_v58, %v2010_v17  ;;  %v2097_v10 = vmax.f32 %v2065_v61, 0.0 }
 0x289   : > { %v2098_v4 = vmax.f32 %v2066_v49, 0.0  ;;  %v2099_v39 = vmax.f32 %v2067_v21, 0.0  ;;  %v2100_v40 = vmax.f32 %v2068_v37, 0.0  ;;  %v2101_v3 = vmax.f32 %v2069_v8, 0.0 }
 0x28a   : > { %v2102_v53 = vmax.f32 %v4768_v28, 0.0  ;;  %v4783_v25 = vadd.f32 %v4672_v45, %v2092_v1  ;;  %v4786_v62 = vadd.f32 %v4672_v45, %v2093_v19  ;;  %v4789_v13 = vadd.f32 %v4672_v45, %v2094_v50  ;;  %v5568_v50 = vld [vmem:[#allocation40_spill] sm:$0xff] }
 0x28b   : > { %v4792_v60 = vadd.f32 %v4672_v45, %v2095_v14  ;;  %v2103_v35 = vmax.f32 %v4771_v46, 0.0  ;;  %v2104_v52 = vmax.f32 %v4774_v32, 0.0  ;;  %v4798_v23 = vadd.f32 %v4672_v45, %v2096_v55 }
 0x28c   : > { %v4801_v61 = vadd.f32 %v4672_v45, %v2097_v10  ;;  %v4804_v49 = vadd.f32 %v4672_v45, %v2098_v4  ;;  %v2213_v21 = vsel %vm1498_vm3, %v4783_v25, -inf  ;;  %v2214_v37 = vsel %vm1498_vm3, %v4786_v62, -inf }
 0x28d   : > { %v4811_v8 = vadd.f32 %v4672_v45, %v2099_v39  ;;  %v4814_v28 = vadd.f32 %v4672_v45, %v2100_v40  ;;  %v2222_v46 = vsel %vm1498_vm3, %v4789_v13, -inf  ;;  %v2223_v32 = vsel %vm1498_vm3, %v4792_v60, -inf }
 0x28e   : > { %v4821_v1 = vadd.f32 %v4672_v45, %v2101_v3  ;;  %v4823_v19 = vmax.f32 %v2213_v21, %v2214_v37  ;;  %v1947_v14 = vperm.slane %v5568_v50, 0  ;;  %v1933_v55 = vrot.slane %v5568_v50, 1  ;;  %v5569_v3 = vld [vmem:[#allocation8_spill] sm:$0xff]  ;;  %v5570_v37 = vld [vmem:[#allocation9_spill] sm:$0xff] }
 0x28f   : > { %v4829_v39 = vsel %vm1498_vm3, %v4798_v23, -inf  ;;  %v1934_v10 = vrot.slane %v5568_v50, 2  ;;  %v2074_v4 = vadd.f32 %v4596_v36, %v2041_v38  ;;  %v4834_v40 = vadd.f32 %v4596_v36, %v2042_v6 }
 0x290   : > { %v4836_v17 = vmax.f32 %v2222_v46, %v2223_v32  ;;  %v1979_v21 = vadd.f32 %v1947_v14, %v5569_v3  ;;  %v1980_v58 = vadd.f32 %v1947_v14, %v5570_v37  ;;  %v1948_v51 = vperm.slane %v1933_v55, 0  ;;  %v5573_v14 = vld [vmem:[#allocation15_spill] sm:$0xff]  ;;  %v5574_v3 = vld [vmem:[#allocation18_spill] sm:$0xff] }
 0x291   : > { %v4845_v24 = vsel %vm1498_vm3, %v4801_v61, -inf  ;;  %v1949_v50 = vperm.slane %v1934_v10, 0  ;;  %v5571_v38 = vmax.f32 %v4656_v44, 0.0  ;;  %v5572_v46 = vmax.f32 %v4659_v56, 0.0  ;;  %v3463_v44 = vld [vmem:[%s5405_s3 + $0x28] sm:$0xff]  ;;  %v5577_v10 = vld [vmem:[#allocation12_spill] sm:$0xff] }
 0x292   : > { %v2011_v55 = vmul.f32 %v5573_v14, %v1979_v21  ;;  %v2012_v37 = vmul.f32 %v5574_v3, %v1980_v58  ;;  %v1981_v9 = vadd.f32 %v1948_v51, %v5575_v20  ;;  %v1982_v7 = vadd.f32 %v1948_v51, %v5576_v27  ;;  %2558 = vmatpush.bf16.msrb.mxu1 %v3463_v44 }
 0x293   : > { %v4850_v6 = vadd.f32 %v4672_v45, %v5571_v38  ;;  %v4855_v32 = vadd.f32 %v4672_v45, %v5572_v46  ;;  %v1983_v38 = vadd.f32 %v1949_v50, %v5577_v10  ;;  %v1984_v56 = vadd.f32 %v1949_v50, %v5578_v59 }
 0x294   : > { %v2106_v2 = vmax.f32 %v2074_v4, 0.0  ;;  %v2107_v46 = vmax.f32 %v4834_v40, 0.0  ;;  %v2044_v21 = vadd.f32 %v4596_v36, %v2011_v55  ;;  %v2045_v58 = vadd.f32 %v4596_v36, %v2012_v37 }
 0x295   : > { %v2013_v20 = vmul.f32 %v5579_v31, %v1981_v9  ;;  %v2014_v51 = vmul.f32 %v5580_v0, %v1982_v7  ;;  %v2015_v27 = vmul.f32 %v5581_v54, %v1983_v38  ;;  %v2016_v12 = vmul.f32 %v5582_v33, %v1984_v56 }
 0x296   : > { %v4874_v41 = vadd.f32 %v4672_v45, %v2102_v53  ;;  %v4877_v59 = vadd.f32 %v4672_v45, %v2103_v35  ;;  %v2076_v4 = vmax.f32 %v2044_v21, 0.0  ;;  %v2077_v40 = vmax.f32 %v2045_v58, 0.0 }
 0x297   : > { %v2046_v50 = vadd.f32 %v4596_v36, %v2013_v20  ;;  %v2047_v55 = vadd.f32 %v4596_v36, %v2014_v51  ;;  %v2048_v9 = vadd.f32 %v4596_v36, %v2015_v27  ;;  %v2049_v7 = vadd.f32 %v4596_v36, %v2016_v12 }
 0x298   : > { %v4884_v37 = vadd.f32 %v4672_v45, %v2104_v52  ;;  %v2171_v53 = vrot.slane %v4745_v5, 4  ;;  %v2109_v10 = vadd.f32 %v4672_v45, %v2076_v4  ;;  %v2110_v35 = vadd.f32 %v4672_v45, %v2077_v40 }
 0x299   : > { %v2078_v38 = vmax.f32 %v2046_v50, 0.0  ;;  %v2079_v56 = vmax.f32 %v2047_v55, 0.0  ;;  %v2080_v21 = vmax.f32 %v2048_v9, 0.0  ;;  %v2081_v58 = vmax.f32 %v2049_v7, 0.0 }
 0x29a   : > { %v2172_v20 = vmax.f32 %v4745_v5, %v2171_v53  ;;  %v2179_v44 = vmax.f32 %v4721_v29, %v4729_v15  ;;  %v2141_v12 = vsel %vm1498_vm3, %v2109_v10, -inf  ;;  %v2142_v36 = vsel %vm1498_vm3, %v2110_v35, -inf  ;;  %v3462_v15 = vld [vmem:[%s5405_s3 + $0x20] sm:$0xff] }
 0x29b   : > { %v2285_v52 = vpack.c.bf16 %v2110_v35, %v2109_v10  ;;  %v4895_v51 = vadd.f32 %v4672_v45, %v2078_v38  ;;  %v2143_v27 = vmax.f32 %v2141_v12, %v2142_v36  ;;  %v4898_v4 = vadd.f32 %v4672_v45, %v2079_v56  ;;  %2559 = vmatpush.bf16.msrb.mxu1 %v3462_v15 }
 0x29c   : > { %v4901_v40 = vadd.f32 %v4672_v45, %v2080_v21  ;;  %v4904_v5 = vadd.f32 %v4672_v45, %v2081_v58  ;;  %v5583_v50 = vmax.f32 %v4777_v26, 0.0  ;;  %v4918_v9 = vadd.f32 %v4672_v45, %v2106_v2 }
 0x29d   : > { %3409 = vmatmul.msk.bf16.vlgmr.msrb.gmra.mxu3 %vm1498_vm3, %v2285_v52  ;;  %v2150_v29 = vsel %vm1498_vm3, %v4895_v51, -inf  ;;  %v2180_v7 = vrot.slane %v2179_v44, 4  ;;  %v2144_v53 = vrot.slane %v2143_v27, 4  ;;  %v2151_v10 = vsel %vm1498_vm3, %v4898_v4, -inf }
 0x29e   : > { %v4915_v55 = vadd.f32 %v4672_v45, %v5583_v50  ;;  %v2159_v35 = vsel %vm1498_vm3, %v4901_v40, -inf  ;;  %v2186_v38 = vsel %vm1498_vm3, %v4704_v34, -inf  ;;  %v2152_v56 = vmax.f32 %v2150_v29, %v2151_v10 }
 0x29f   : > { %v2160_v26 = vsel %vm1498_vm3, %v4904_v5, -inf  ;;  %v4929_v21 = vadd.f32 %v4672_v45, %v2107_v46  ;;  %v2173_v2 = vrot.slane %v2172_v20, 2  ;;  %v2145_v58 = vmax.f32 %v2143_v27, %v2144_v53 }
 0x2a0   : > { %v2161_v12 = vmax.f32 %v2159_v35, %v2160_v26  ;;  %v2181_v36 = vmax.f32 %v2179_v44, %v2180_v7  ;;  %v2187_v52 = vsel %vm1498_vm3, %v4707_v22, -inf  ;;  %v2153_v50 = vrot.slane %v2152_v56, 4 }
 0x2a1   : > { %v2286_v57 = vpack.c.bf16 %v4898_v4, %v4895_v51  ;;  %v2188_v42 = vmax.f32 %v2186_v38, %v2187_v52  ;;  %v2195_v29 = vsel %vm1498_vm3, %v4710_v30, -inf  ;;  %v2146_v10 = vrot.slane %v2145_v58, 2 }
 0x2a2   : > { %v2162_v15 = vrot.slane %v2161_v12, 4  ;;  %v2182_v18 = vrot.slane %v2181_v36, 2  ;;  %v2196_v45 = vsel %vm1498_vm3, %v4713_v48, -inf  ;;  %v2154_v46 = vmax.f32 %v2152_v56, %v2153_v50 }
 0x2a3   : > { %v2189_v27 = vrot.slane %v2188_v42, 4  ;;  %v2197_v7 = vmax.f32 %v2195_v29, %v2196_v45  ;;  %v2147_v53 = vmax.f32 %v2145_v58, %v2146_v10  ;;  %v2174_v26 = vmax.f32 %v2172_v20, %v2173_v2 }
 0x2a4   : > { %v2163_v35 = vmax.f32 %v2161_v12, %v2162_v15  ;;  %v2204_v51 = vsel %vm1498_vm3, %v4850_v6, -inf  ;;  %v2155_v4 = vrot.slane %v2154_v46, 2  ;;  %v2205_v16 = vsel %vm1498_vm3, %v4855_v32, -inf }
 0x2a5   : > { %v2190_v38 = vmax.f32 %v2188_v42, %v2189_v27  ;;  %v2198_v52 = vrot.slane %v2197_v7, 4  ;;  %v2148_v54 = vrot.slane %v2147_v53, 1  ;;  %v2183_v56 = vmax.f32 %v2181_v36, %v2182_v18 }
 0x2a6   : > { %v2164_v33 = vrot.slane %v2163_v35, 2  ;;  %v2206_v50 = vmax.f32 %v2204_v51, %v2205_v16  ;;  %v2156_v14 = vmax.f32 %v2154_v46, %v2155_v4  ;;  %v2216_v58 = vrot.slane %v4823_v19, 4 }
 0x2a7   : > { %v2191_v44 = vrot.slane %v2190_v38, 2  ;;  %v2199_v3 = vmax.f32 %v2197_v7, %v2198_v52  ;;  %v2149_v12 = vmax.f32 %v2147_v53, %v2148_v54  ;;  %v2175_v2 = vrot.slane %v2174_v26, 1 }
 0x2a8   : > { %v2165_v20 = vmax.f32 %v2163_v35, %v2164_v33  ;;  %v2207_v29 = vrot.slane %v2206_v50, 4  ;;  %v2157_v10 = vrot.slane %v2156_v14, 1  ;;  %v2217_v45 = vmax.f32 %v4823_v19, %v2216_v58 }
 0x2a9   : > { %v2192_v15 = vmax.f32 %v2190_v38, %v2191_v44  ;;  %v2200_v42 = vrot.slane %v2199_v3, 2  ;;  %v2184_v31 = vrot.slane %v2183_v56, 1  ;;  %v2225_v18 = vrot.slane %v4836_v17, 4 }
 0x2aa   : > { %v2166_v27 = vrot.slane %v2165_v20, 1  ;;  %v2208_v0 = vmax.f32 %v2206_v50, %v2207_v29  ;;  %v2462_v16 = vpack.c.bf16 %v2149_v12, %v2149_v12  ;;  %v2158_v36 = vmax.f32 %v2156_v14, %v2157_v10 }
 0x2ab   : > { %v2201_v46 = vmax.f32 %v2199_v3, %v2200_v42  ;;  %v2218_v7 = vrot.slane %v2217_v45, 2  ;;  %v2193_v4 = vrot.slane %v2192_v15, 1  ;;  %v2226_v33 = vmax.f32 %v4836_v17, %v2225_v18 }
 0x2ac   : > { %v2167_v51 = vmax.f32 %v2165_v20, %v2166_v27  ;;  %v2209_v54 = vrot.slane %v2208_v0, 2  ;;  %v2463_v44 = vpack.c.bf16 %v2158_v36, %v2158_v36  ;;  %v4950_v53 = vmax.f32 %v2174_v26, %v2175_v2 }
 0x2ad   : > { %3410 = vmatmul.msk.bf16.gmra.mxu3 %vm1498_vm3, %v2286_v57  ;;  %v2202_v19 = vrot.slane %v2201_v46, 1  ;;  %v2219_v35 = vmax.f32 %v2217_v45, %v2218_v7  ;;  %v2227_v50 = vrot.slane %v2226_v33, 2  ;;  %v2233_v14 = vmax.f32 %v4829_v39, %v4845_v24 }
 0x2ae   : > { %v2464_v38 = vpack.c.bf16 %v2167_v51, %v2167_v51  ;;  %v2210_v52 = vmax.f32 %v2208_v0, %v2209_v54  ;;  %v2494_v3 = vunpack.c.l.b16 %v2462_v16  ;;  %v2495_v58 = vunpack.c.l.b16 %v2463_v44 }
 0x2af   : > { %v4954_v12 = vmax.f32 %v2183_v56, %v2184_v31  ;;  %v2220_v20 = vrot.slane %v2219_v35, 1  ;;  %v4956_v29 = vmax.f32 %v2192_v15, %v2193_v4  ;;  %v2228_v17 = vmax.f32 %v2226_v33, %v2227_v50 }
 0x2b0   : > { %v2234_v57 = vrot.slane %v2233_v14, 4  ;;  %v2240_v26 = vsel %vm1498_vm3, %v4804_v49, -inf  ;;  %v2496_v2 = vunpack.c.l.b16 %v2464_v38  ;;  %v4960_v10 = vmax.f32 %v2201_v46, %v2202_v19 }
 0x2b1   : > { %v2241_v0 = vsel %vm1498_vm3, %v4811_v8, -inf  ;;  %v2249_v24 = vsel %vm1498_vm3, %v4814_v28, -inf  ;;  %v2510_v31 = vsel %vm1868_vm4, %v2495_v58, %v2494_v3  ;;  %v2211_v39 = vrot.slane %v2210_v52, 1 }
 0x2b2   : > { %v2221_v56 = vmax.f32 %v2219_v35, %v2220_v20  ;;  %v2235_v15 = vmax.f32 %v2233_v14, %v2234_v57  ;;  %v2242_v42 = vmax.f32 %v2240_v26, %v2241_v0  ;;  %v2250_v45 = vsel %vm1498_vm3, %v4821_v1, -inf }
 0x2b3   : > { %v2258_v27 = vsel %vm1498_vm3, %v4874_v41, -inf  ;;  %v2259_v18 = vsel %vm1498_vm3, %v4877_v59, -inf  ;;  %v2229_v16 = vrot.slane %v2228_v17, 1  ;;  %v2251_v46 = vmax.f32 %v2249_v24, %v2250_v45 }
 0x2b4   : > { %v2236_v36 = vrot.slane %v2235_v15, 2  ;;  %v2260_v7 = vmax.f32 %v2258_v27, %v2259_v18  ;;  %v2243_v51 = vrot.slane %v2242_v42, 4  ;;  %v2267_v4 = vsel %vm1498_vm3, %v4884_v37, -inf }
 0x2b5   : > { %v2268_v54 = vsel %vm1498_vm3, %v4915_v55, -inf  ;;  %v2276_v33 = vsel %vm1498_vm3, %v4918_v9, -inf  ;;  %v2252_v19 = vrot.slane %v2251_v46, 4  ;;  %v2511_v50 = vsel %vm1870_vm5, %v2496_v2, %v2510_v31 }
 0x2b6   : > { %v2237_v44 = vmax.f32 %v2235_v15, %v2236_v36  ;;  %v2261_v35 = vrot.slane %v2260_v7, 4  ;;  %v2269_v38 = vmax.f32 %v2267_v4, %v2268_v54  ;;  %v2212_v14 = vmax.f32 %v2210_v52, %v2211_v39 }
 0x2b7   : > { %v2244_v3 = vmax.f32 %v2242_v42, %v2243_v51  ;;  %v2277_v58 = vsel %vm1498_vm3, %v4929_v21, -inf  ;;  %v2253_v57 = vmax.f32 %v2251_v46, %v2252_v19  ;;  %v2230_v24 = vmax.f32 %v2228_v17, %v2229_v16 }
 0x2b8   : > { %v2238_v20 = vrot.slane %v2237_v44, 1  ;;  %v2262_v26 = vmax.f32 %v2260_v7, %v2261_v35  ;;  %v2270_v0 = vrot.slane %v2269_v38, 4  ;;  %v2278_v27 = vmax.f32 %v2276_v33, %v2277_v58 }
 0x2b9   : > { %v2245_v45 = vrot.slane %v2244_v3, 2  ;;  %v2465_v15 = vpack.c.bf16 %v4950_v53, %v4950_v53  ;;  %v2254_v36 = vrot.slane %v2253_v57, 2  ;;  %v2466_v31 = vpack.c.bf16 %v4954_v12, %v4954_v12 }
 0x2ba   : > { %v2239_v18 = vmax.f32 %v2237_v44, %v2238_v20  ;;  %v2263_v4 = vrot.slane %v2262_v26, 2  ;;  %v2271_v54 = vmax.f32 %v2269_v38, %v2270_v0  ;;  %v2279_v52 = vrot.slane %v2278_v27, 4 }
 0x2bb   : > { %v2246_v2 = vmax.f32 %v2244_v3, %v2245_v45  ;;  %v2467_v39 = vpack.c.bf16 %v4956_v29, %v4956_v29  ;;  %v2255_v42 = vmax.f32 %v2253_v57, %v2254_v36  ;;  %v2468_v16 = vpack.c.bf16 %v4960_v10, %v4960_v10 }
 0x2bc   : > { %v2264_v46 = vmax.f32 %v2262_v26, %v2263_v4  ;;  %v2272_v17 = vrot.slane %v2271_v54, 2  ;;  %v5584_v53 = vpack.c.bf16 %v4904_v5, %v4901_v40  ;;  %v2280_v51 = vmax.f32 %v2278_v27, %v2279_v52 }
 0x2bd   : > { %v2247_v7 = vrot.slane %v2246_v2, 1  ;;  %v2470_v33 = vpack.c.bf16 %v2221_v56, %v2221_v56  ;;  %v2471_v44 = vpack.c.bf16 %v2230_v24, %v2230_v24  ;;  %v2256_v19 = vrot.slane %v2255_v42, 1 }
 0x2be   : > { %3411 = vmatmul.msk.bf16.gmra.mxu3 %vm1498_vm3, %v5584_v53  ;;  %v2265_v12 = vrot.slane %v2264_v46, 1  ;;  %v2273_v35 = vmax.f32 %v2271_v54, %v2272_v17  ;;  %v2472_v38 = vpack.c.bf16 %v2239_v18, %v2239_v18  ;;  %v2281_v3 = vrot.slane %v2280_v51, 2 }
 0x2bf   : > { %v2248_v29 = vmax.f32 %v2246_v2, %v2247_v7  ;;  %v2469_v58 = vpack.c.bf16 %v2212_v14, %v2212_v14  ;;  %v2497_v20 = vunpack.c.l.b16 %v2465_v15  ;;  %v2257_v57 = vmax.f32 %v2255_v42, %v2256_v19 }
 0x2c0   : > { %v2266_v26 = vmax.f32 %v2264_v46, %v2265_v12  ;;  %v2274_v10 = vrot.slane %v2273_v35, 1  ;;  %v2498_v0 = vunpack.c.l.b16 %v2466_v31  ;;  %v2282_v45 = vmax.f32 %v2280_v51, %v2281_v3 }
 0x2c1   : > { %v2473_v40 = vpack.c.bf16 %v2248_v29, %v2248_v29  ;;  %v2502_v5 = vunpack.c.l.b16 %v2470_v33  ;;  %v2503_v36 = vunpack.c.l.b16 %v2471_v44  ;;  %v2474_v27 = vpack.c.bf16 %v2257_v57, %v2257_v57 }
 0x2c2   : > { %v2275_v4 = vmax.f32 %v2273_v35, %v2274_v10  ;;  %v2475_v56 = vpack.c.bf16 %v2266_v26, %v2266_v26  ;;  %v2504_v24 = vunpack.c.l.b16 %v2472_v38  ;;  %v2283_v52 = vrot.slane %v2282_v45, 1 }
 0x2c3   : > { %v2499_v53 = vunpack.c.l.b16 %v2467_v39  ;;  %v2512_v18 = vsel %vm1872_vm6, %v2497_v20, %v2511_v50  ;;  %v2517_v54 = vsel %vm1868_vm4, %v2503_v36, %v2502_v5  ;;  %v2500_v15 = vunpack.c.l.b16 %v2468_v16 }
 0x2c4   : > { %v2476_v14 = vpack.c.bf16 %v2275_v4, %v2275_v4  ;;  %v2505_v2 = vunpack.c.l.b16 %v2473_v40  ;;  %v2513_v42 = vsel %vm1874_vm7, %v2498_v0, %v2512_v18  ;;  %v2284_v31 = vmax.f32 %v2282_v45, %v2283_v52  ;;  %v5589_v0 = vld [vmem:[#allocation17_spill] sm:$0xff] }
 0x2c5   : > { %v2506_v46 = vunpack.c.l.b16 %v2474_v27  ;;  %v2514_v17 = vsel %vm1876_vm8, %v2499_v53, %v2513_v42  ;;  %v2518_v7 = vsel %vm1870_vm5, %v2504_v24, %v2517_v54  ;;  %v2501_v51 = vunpack.c.l.b16 %v2469_v58 }
 0x2c6   : > { %v2507_v33 = vunpack.c.l.b16 %v2475_v56  ;;  %v2519_v44 = vsel %vm1872_vm6, %v2505_v2, %v2518_v7  ;;  %v2477_v39 = vpack.c.bf16 %v2284_v31, %v2284_v31  ;;  %v2508_v19 = vunpack.c.l.b16 %v2476_v14  ;;  %v5593_v14 = vld [vmem:[#allocation19_spill] sm:$0xff] }
 0x2c7   : > { %v2515_v50 = vsel %vm5585_vm15, %v2500_v15, %v2514_v17  ;;  %v2520_v12 = vsel %vm1874_vm7, %v2506_v46, %v2519_v44  ;;  %v2291_v35 = vpack.c.bf16 %v4713_v48, %v4710_v30  ;;  %v2292_v38 = vpack.c.bf16 %v4855_v32, %v4850_v6  ;;  %v5594_v15 = vld [vmem:[#allocation16_spill] sm:$0xff] }
 0x2c8   : > { %v2521_v16 = vsel %vm1876_vm8, %v2507_v33, %v2520_v12  ;;  %v2293_v29 = vpack.c.bf16 %v4786_v62, %v4783_v25  ;;  %v2509_v3 = vunpack.c.l.b16 %v2477_v39  ;;  %v2294_v20 = vpack.c.bf16 %v4792_v60, %v4789_v13 }
 0x2c9   : > { %v2522_v58 = vsel %vm5586_vm0, %v2508_v19, %v2521_v16  ;;  %v2295_v57 = vpack.c.bf16 %v4801_v61, %v4798_v23  ;;  %v2296_v26 = vpack.c.bf16 %v4811_v8, %v4804_v49  ;;  %v2297_v30 = vpack.c.bf16 %v4821_v1, %v4814_v28 }
 0x2ca   : > { %v2298_v48 = vpack.c.bf16 %v4877_v59, %v4874_v41  ;;  %v2299_v25 = vpack.c.bf16 %v4915_v55, %v4884_v37  ;;  %v2516_v62 = vsel %vm5587_vm1, %v2501_v51, %v2515_v50  ;;  %v2523_v6 = vsel %vm5588_vm2, %v2509_v3, %v2522_v58  ;;  %v5596_v3 = vld [vmem:[#allocation21_spill] sm:$0xff]  ;;  %vm5608_vm1 = vmmov %vm5586_vm0 }
 0x2cb   : > { %v2288_v13 = vpack.c.bf16 %v4695_v11, %v4692_v43  ;;  %v2300_v60 = vpack.c.bf16 %v4929_v21, %v4918_v9  ;;  %v2524_v23 = vpack.c.b16 %v2523_v6, %v2516_v62  ;;  %v2289_v61 = vpack.c.bf16 %v4701_v47, %v4698_v63  ;;  %v5590_v63 = vld [vmem:[#allocation14_spill] sm:$0xff]  ;;  %v5605_v9 = vld [vmem:[#allocation28_spill] sm:$0xff] }
 0x2cc   : > { %v2290_v32 = vpack.c.bf16 %v4707_v22, %v4704_v34  ;;  %v737_v47 = vmax.f32 %v5590_v63, %v5589_v0  ;;  %v849_v45 = vmin.f32 %v5590_v63, %v5589_v0  ;;  %v5591_v34 = vld [vmem:[#allocation18_spill] sm:$0xff]  ;;  %v5592_v22 = vld [vmem:[#allocation15_spill] sm:$0xff]  ;;  %v744_v2 = vmax.f32 %v5594_v15, %v5593_v14 }
 0x2cd   : > { %3441 = vmatmul.msk.bf16.vlgmr.msrb.gmra.mxu1 %vm1498_vm3, %v2524_v23  ;;  %v730_v40 = vmax.f32 %v5592_v22, %v5591_v34  ;;  %v842_v5 = vmin.f32 %v5592_v22, %v5591_v34  ;;  %v856_v31 = vmin.f32 %v5594_v15, %v5593_v14 }
 0x2ce   : > { %3412 = vmatmul.msk.bf16.gmra.mxu3 %vm1498_vm3, %v2288_v13  ;;  %v738_v36 = vrot.slane %v737_v47, 4  ;;  %v850_v4 = vrot.slane %v849_v45, 4  ;;  %v745_v51 = vrot.slane %v744_v2, 4 }
 0x2cf   : > { %v731_v27 = vrot.slane %v730_v40, 4  ;;  %v843_v56 = vrot.slane %v842_v5, 4  ;;  %v857_v44 = vrot.slane %v856_v31, 4 }
 0x2d0   : > { %v739_v52 = vmax.f32 %v737_v47, %v738_v36  ;;  %v851_v53 = vmin.f32 %v849_v45, %v850_v4  ;;  %v746_v16 = vmax.f32 %v744_v2, %v745_v51 }
 0x2d1   : > { %v732_v18 = vmax.f32 %v730_v40, %v731_v27  ;;  %v844_v54 = vmin.f32 %v842_v5, %v843_v56 }
 0x2d2   : > { %v740_v42 = vrot.slane %v739_v52, 2  ;;  %v852_v46 = vrot.slane %v851_v53, 2  ;;  %v747_v13 = vrot.slane %v746_v16, 2 }
 0x2d3   : > { %v733_v17 = vrot.slane %v732_v18, 2  ;;  %v845_v7 = vrot.slane %v844_v54, 2 }
 0x2d4   : > { %v741_v33 = vmax.f32 %v739_v52, %v740_v42  ;;  %v853_v39 = vmin.f32 %v851_v53, %v852_v46  ;;  %v5070_v53 = vmax.f32 %v746_v16, %v747_v13 }
 0x2d5   : > { %v734_v50 = vmax.f32 %v732_v18, %v733_v17  ;;  %v846_v12 = vmin.f32 %v844_v54, %v845_v7  ;;  %v5597_v18 = vld [vmem:[#allocation41_spill] sm:$0xff] }
 0x2d6   : > { %v5073_v54 = vperm.slane %v5597_v18, 4  ;;  %v749_v8 = vrot.slane %v5070_v53, 1 }
 0x2d7   : > { %v735_v62 = vrot.slane %v734_v50, 1  ;;  %v847_v6 = vrot.slane %v846_v12, 1 }
 0x2d9   : > { %v5066_v56 = vmax.f32 %v734_v50, %v735_v62  ;;  %v5068_v52 = vmin.f32 %v846_v12, %v847_v6 }
 0x2de   : > { %3413 = vmatmul.msk.bf16.gmra.mxu3 %vm1498_vm3, %v2289_v61 }
 0x2ee   : > { %3414 = vmatmul.msk.bf16.gmra.mxu3 %vm1498_vm3, %v2290_v32 }
 0x2fe   : > { %3415 = vmatmul.msk.bf16.gmra.mxu3 %vm1498_vm3, %v2291_v35  ;;  %v742_v35 = vrot.slane %v741_v33, 1 }
 0x300   : > { %v5057_v23 = vmax.f32 %v741_v33, %v742_v35 }
 0x30e   : > { %3416 = vmatmul.msk.bf16.gmra.mxu3 %vm1498_vm3, %v2292_v38  ;;  %v858_v38 = vmin.f32 %v856_v31, %v857_v44 }
 0x310   : > { %v859_v61 = vrot.slane %v858_v38, 2 }
 0x312   : > { %v5079_v17 = vmin.f32 %v858_v38, %v859_v61 }
 0x31e   : > { %3417 = vmatmul.msk.bf16.gmra.mxu3 %vm1498_vm3, %v2293_v29  ;;  %v5595_v29 = vld [vmem:[#allocation20_spill] sm:$0xff] }
 0x31f   : > { %v751_v58 = vmax.f32 %v5596_v3, %v5595_v29 }
 0x320   : > { %v2382_v43 = vpop.f32.mrf.mxu3 }
 0x321   : > { %v752_v32 = vrot.slane %v751_v58, 4 }
 0x323   : > { %v5081_v7 = vmax.f32 %v751_v58, %v752_v32 }
 0x325   : > { %v754_v61 = vrot.slane %v5081_v7, 2 }
 0x328   : > { %v2384_v11 = vpop.f32.mrf.mxu3 }
 0x32e   : > { %3418 = vmatmul.msk.bf16.gmra.mxu3 %vm1498_vm3, %v2294_v20  ;;  %v863_v20 = vmin.f32 %v5596_v3, %v5595_v29 }
 0x330   : > { %v2387_v10 = vpop.f32.mrf.mxu3  ;;  %v864_v47 = vrot.slane %v863_v20, 4 }
 0x332   : > { %v5083_v51 = vmin.f32 %v863_v20, %v864_v47 }
 0x338   : > { %v2389_v24 = vpop.f32.mrf.mxu3 }
 0x33e   : > { %3419 = vmatmul.msk.bf16.gmra.mxu3 %vm1498_vm3, %v2295_v57  ;;  %v854_v57 = vrot.slane %v853_v39, 1 }
 0x340   : > { %v5061_v40 = vmin.f32 %v853_v39, %v854_v57 }
 0x341   : > { %v2392_v19 = vpop.f32.mrf.mxu3 }
 0x349   : > { %v2394_v27 = vpop.f32.mrf.mxu3 }
 0x34a   : > { %v5059_v45 = vpop.f32.mrf.mxu1 }
 0x34b   : > { %v2568_v5 = vrot.slane %v5059_v45, 1  ;;  %v2582_v36 = vperm.slane %v5059_v45, 0  ;;  %v2569_v4 = vrot.slane %v5059_v45, 2  ;;  %v2570_v33 = vrot.slane %v5059_v45, 3 }
 0x34c   : > { %v2571_v41 = vrot.slane %v5059_v45, 4 }
 0x34d   : > { %v2583_v2 = vperm.slane %v2568_v5, 0  ;;  %v2614_v42 = vadd.f32 %v2582_v36, %v2382_v43  ;;  %v2615_v31 = vadd.f32 %v2582_v36, %v2384_v11  ;;  %v2584_v46 = vperm.slane %v2569_v4, 0 }
 0x34e   : > { %3420 = vmatmul.msk.bf16.gmra.mxu3 %vm1498_vm3, %v2296_v26  ;;  %v5090_v26 = vperm.slane %v5597_v18, 5  ;;  %v2585_v20 = vperm.slane %v2570_v33, 0 }
 0x34f   : > { %v2616_v44 = vadd.f32 %v2583_v2, %v2387_v10  ;;  %v2617_v39 = vadd.f32 %v2583_v2, %v2389_v24  ;;  %v2646_v50 = vmul.f32 %v5592_v22, %v2614_v42  ;;  %v2647_v49 = vmul.f32 %v5591_v34, %v2615_v31 }
 0x350   : > { %v2618_v43 = vadd.f32 %v2584_v46, %v2392_v19  ;;  %v2619_v11 = vadd.f32 %v2584_v46, %v2394_v27  ;;  %v861_v24 = vrot.slane %v5079_v17, 1  ;;  %v866_v2 = vrot.slane %v5083_v51, 2 }
 0x351   : > { %v2648_v12 = vmul.f32 %v5590_v63, %v2616_v44  ;;  %v2649_v16 = vmul.f32 %v5589_v0, %v2617_v39  ;;  %v2679_v35 = vadd.f32 %v5073_v54, %v2646_v50  ;;  %v2680_v10 = vadd.f32 %v5073_v54, %v2647_v49  ;;  %v2397_v13 = vpop.f32.mrf.mxu3 }
 0x352   : > { %v2650_v38 = vmul.f32 %v5594_v15, %v2618_v43  ;;  %v2651_v58 = vmul.f32 %v5593_v14, %v2619_v11  ;;  %v2620_v5 = vadd.f32 %v2585_v20, %v2397_v13 }
 0x353   : > { %v2681_v57 = vadd.f32 %v5073_v54, %v2648_v12  ;;  %v2682_v19 = vadd.f32 %v5073_v54, %v2649_v16  ;;  %v2711_v62 = vmax.f32 %v2679_v35, 0.0  ;;  %v2712_v6 = vmax.f32 %v2680_v10, 0.0 }
 0x354   : > { %v2683_v32 = vadd.f32 %v5073_v54, %v2650_v38  ;;  %v2684_v47 = vadd.f32 %v5073_v54, %v2651_v58  ;;  %v2652_v46 = vmul.f32 %v5596_v3, %v2620_v5 }
 0x355   : > { %v2713_v36 = vmax.f32 %v2681_v57, 0.0  ;;  %v2714_v4 = vmax.f32 %v2682_v19, 0.0  ;;  %v2744_v27 = vadd.f32 %v5090_v26, %v2711_v62  ;;  %v2745_v18 = vadd.f32 %v5090_v26, %v2712_v6 }
 0x356   : > { %v2715_v42 = vmax.f32 %v2683_v32, 0.0  ;;  %v2716_v31 = vmax.f32 %v2684_v47, 0.0  ;;  %v2685_v12 = vadd.f32 %v5073_v54, %v2652_v46 }
 0x357   : > { %v2746_v33 = vadd.f32 %v5090_v26, %v2713_v36  ;;  %v2747_v44 = vadd.f32 %v5090_v26, %v2714_v4  ;;  %v2776_v39 = vmax.f32 %v2744_v27, %v2745_v18  ;;  %v2888_v50 = vmul.f32 %v5592_v22, %v2744_v27 }
 0x358   : > { %v2889_v49 = vmul.f32 %v5591_v34, %v2745_v18  ;;  %v2748_v43 = vadd.f32 %v5090_v26, %v2715_v42  ;;  %v2749_v11 = vadd.f32 %v5090_v26, %v2716_v31  ;;  %v2717_v13 = vmax.f32 %v2685_v12, 0.0 }
 0x359   : > { %v2777_v16 = vrot.slane %v2776_v39, 4  ;;  %v2783_v35 = vmax.f32 %v2746_v33, %v2747_v44  ;;  %v2890_v10 = vmul.f32 %v5590_v63, %v2746_v33  ;;  %v2891_v38 = vmul.f32 %v5589_v0, %v2747_v44  ;;  %v2399_v32 = vpop.f32.mrf.mxu3 }
 0x35a   : > { %v2920_v58 = vmax.f32 %v2888_v50, %v2889_v49  ;;  %v2892_v57 = vmul.f32 %v5594_v15, %v2748_v43  ;;  %v2790_v19 = vmax.f32 %v2748_v43, %v2749_v11  ;;  %v2893_v22 = vmul.f32 %v5593_v14, %v2749_v11 }
 0x35b   : > { %v2778_v62 = vmax.f32 %v2776_v39, %v2777_v16  ;;  %v2784_v34 = vrot.slane %v2783_v35, 4  ;;  %v2927_v6 = vmax.f32 %v2890_v10, %v2891_v38  ;;  %v2621_v4 = vadd.f32 %v2585_v20, %v2399_v32 }
 0x35c   : > { %v2921_v47 = vrot.slane %v2920_v58, 4  ;;  %v2791_v5 = vrot.slane %v2790_v19, 4  ;;  %v2934_v36 = vmax.f32 %v2892_v57, %v2893_v22  ;;  %v750_v0 = vmax.f32 %v5070_v53, %v749_v8 }
 0x35d   : > { %v2779_v63 = vrot.slane %v2778_v62, 2  ;;  %v2785_v15 = vmax.f32 %v2783_v35, %v2784_v34  ;;  %v2928_v27 = vrot.slane %v2927_v6, 4  ;;  %v2653_v31 = vmul.f32 %v5595_v29, %v2621_v4 }
 0x35e   : > { %3421 = vmatmul.msk.bf16.gmra.mxu3 %vm1498_vm3, %v2297_v30  ;;  %v2792_v14 = vmax.f32 %v2790_v19, %v2791_v5  ;;  %v2922_v18 = vmax.f32 %v2920_v58, %v2921_v47  ;;  %v2935_v42 = vrot.slane %v2934_v36, 4  ;;  %v2750_v20 = vadd.f32 %v5090_v26, %v2717_v13 }
 0x35f   : > { %v2780_v46 = vmax.f32 %v2778_v62, %v2779_v63  ;;  %v2786_v33 = vrot.slane %v2785_v15, 2  ;;  %v2929_v44 = vmax.f32 %v2927_v6, %v2928_v27  ;;  %v2686_v1 = vadd.f32 %v5073_v54, %v2653_v31 }
 0x360   : > { %v2793_v39 = vrot.slane %v2792_v14, 2  ;;  %v2923_v50 = vrot.slane %v2922_v18, 2  ;;  %v2936_v28 = vmax.f32 %v2934_v36, %v2935_v42  ;;  %v862_v30 = vmin.f32 %v5079_v17, %v861_v24 }
 0x361   : > { %v2781_v53 = vrot.slane %v2780_v46, 1  ;;  %v2787_v8 = vmax.f32 %v2785_v15, %v2786_v33  ;;  %v2930_v49 = vrot.slane %v2929_v44, 2  ;;  %v2718_v16 = vmax.f32 %v2686_v1, 0.0  ;;  %v5131_v57 = vpop.f32.mrf.mxu3 }
 0x362   : > { %v2794_v43 = vmax.f32 %v2792_v14, %v2793_v39  ;;  %v2924_v11 = vmax.f32 %v2922_v18, %v2923_v50  ;;  %v2937_v12 = vrot.slane %v2936_v28, 2  ;;  %v2894_v58 = vmul.f32 %v5596_v3, %v2750_v20 }
 0x363   : > { %v2782_v35 = vmax.f32 %v2780_v46, %v2781_v53  ;;  %v2788_v10 = vrot.slane %v2787_v8, 1  ;;  %v2931_v38 = vmax.f32 %v2929_v44, %v2930_v49  ;;  %v2751_v34 = vadd.f32 %v5090_v26, %v2718_v16 }
 0x364   : > { %v2795_v19 = vrot.slane %v2794_v43, 1  ;;  %v2925_v22 = vrot.slane %v2924_v11, 1  ;;  %v2938_v62 = vmax.f32 %v2936_v28, %v2937_v12  ;;  %v2572_v16 = vrot.slane %v5059_v45, 5 }
 0x365   : > { %v2789_v17 = vmax.f32 %v2787_v8, %v2788_v10  ;;  %v2932_v24 = vrot.slane %v2931_v38, 1  ;;  %vm3032_vm11 = vcmp.ge.f32.partialorder %v2782_v35, 0.0  ;;  %v3048_v6 = vmul.f32 %v2782_v35, %v5066_v56 }
 0x366   : > { %v2796_v13 = vmax.f32 %v2794_v43, %v2795_v19  ;;  %v2926_v32 = vmax.f32 %v2924_v11, %v2925_v22  ;;  %v2939_v47 = vrot.slane %v2938_v62, 1  ;;  %v3064_v5 = vmul.f32 %v2782_v35, %v5068_v52 }
 0x367   : > { %v2933_v36 = vmax.f32 %v2931_v38, %v2932_v24  ;;  %vm3033_vm9 = vcmp.ge.f32.partialorder %v2789_v17, 0.0  ;;  %v3049_v3 = vmul.f32 %v2789_v17, %v5057_v23  ;;  %v3065_v4 = vmul.f32 %v2789_v17, %v5061_v40  ;;  %v5598_v24 = vld [vmem:[#allocation24_spill] sm:$0xff] }
 0x368   : > { %v2940_v63 = vmax.f32 %v2938_v62, %v2939_v47  ;;  %vm3034_vm10 = vcmp.ge.f32.partialorder %v2796_v13, 0.0  ;;  %v3050_v15 = vmul.f32 %v2796_v13, %v750_v0  ;;  %v3066_v27 = vmul.f32 %v2796_v13, %v862_v30 }
 0x369   : > { %v3080_v14 = vsel %vm3032_vm11, %v3048_v6, %v3064_v5  ;;  %v3081_v18 = vsel %vm3033_vm9, %v3049_v3, %v3065_v4  ;;  %v3112_v42 = vsel %vm1868_vm4, %v2933_v36, %v2926_v32  ;;  %v2797_v56 = vmax.f32 %v2750_v20, %v2751_v34  ;;  %v2404_v40 = vpop.f32.mrf.mxu3  ;;  %v5599_v32 = vld [vmem:[#allocation22_spill] sm:$0xff]  ;;  %v5600_v4 = vld [vmem:[#allocation25_spill] sm:$0xff]  ;;  %vm5611_vm11 = vmmov %vm5588_vm2 }
 0x36a   : > { %v3082_v31 = vsel %vm3034_vm10, %v3050_v15, %v3066_v27  ;;  %v3113_v46 = vsel %vm1870_vm5, %v2940_v63, %v3112_v42  ;;  %v3146_v52 = vsel %vm1868_vm4, %v3081_v18, %v3080_v14  ;;  %v2895_v33 = vmul.f32 %v5595_v29, %v2751_v34  ;;  %v5601_v15 = vld [vmem:[#allocation23_spill] sm:$0xff] }
 0x36b   : > { %v3147_v23 = vsel %vm1870_vm5, %v3082_v31, %v3146_v52  ;;  %v2798_v44 = vrot.slane %v2797_v56, 4  ;;  %v755_v0 = vmax.f32 %v5081_v7, %v754_v61  ;;  %v867_v20 = vmin.f32 %v5083_v51, %v866_v2 }
 0x36c   : > { %v2941_v39 = vmax.f32 %v2894_v58, %v2895_v33  ;;  %v2586_v35 = vperm.slane %v2571_v41, 0  ;;  %v2587_v34 = vperm.slane %v2572_v16, 0  ;;  %v2573_v36 = vrot.slane %v5059_v45, 6 }
 0x36d   : > { %v2799_v50 = vmax.f32 %v2797_v56, %v2798_v44  ;;  %v756_v30 = vrot.slane %v755_v0, 1  ;;  %v868_v53 = vrot.slane %v867_v20, 1  ;;  %v758_v55 = vmax.f32 %v5599_v32, %v5598_v24  ;;  %v5602_v44 = vld [vmem:[#allocation27_spill] sm:$0xff] }
 0x36e   : > { %3422 = vmatmul.msk.bf16.gmra.mxu3 %vm1498_vm3, %v2298_v48  ;;  %v2942_v29 = vrot.slane %v2941_v39, 4  ;;  %v2623_v58 = vadd.f32 %v2586_v35, %v2404_v40  ;;  %v2622_v62 = vadd.f32 %v2586_v35, %v5131_v57  ;;  %v2588_v37 = vperm.slane %v2573_v36, 0 }
 0x36f   : > { %v2800_v28 = vrot.slane %v2799_v50, 2  ;;  %v757_v11 = vmax.f32 %v755_v0, %v756_v30  ;;  %v869_v12 = vmin.f32 %v867_v20, %v868_v53  ;;  %v765_v18 = vmax.f32 %v5601_v15, %v5600_v4 }
 0x370   : > { %v2943_v1 = vmax.f32 %v2941_v39, %v2942_v29  ;;  %v2655_v6 = vmul.f32 %v5598_v24, %v2623_v58  ;;  %v2654_v47 = vmul.f32 %v5599_v32, %v2622_v62 }
 0x371   : > { %v2801_v8 = vmax.f32 %v2799_v50, %v2800_v28  ;;  %v2407_v59 = vpop.f32.mrf.mxu3  ;;  %v766_v0 = vrot.slane %v765_v18, 4  ;;  %v5603_v28 = vld [vmem:[#allocation26_spill] sm:$0xff] }
 0x372   : > { %v2944_v49 = vrot.slane %v2943_v1, 2  ;;  %v2624_v5 = vadd.f32 %v2587_v34, %v2407_v59  ;;  %v2688_v3 = vadd.f32 %v5073_v54, %v2655_v6  ;;  %v2687_v57 = vadd.f32 %v5073_v54, %v2654_v47 }
 0x373   : > { %v2802_v43 = vrot.slane %v2801_v8, 1  ;;  %v884_v35 = vmin.f32 %v5602_v44, %v5603_v28 }
 0x374   : > { %v2945_v48 = vmax.f32 %v2943_v1, %v2944_v49  ;;  %v2656_v27 = vmul.f32 %v5601_v15, %v2624_v5  ;;  %v2720_v42 = vmax.f32 %v2688_v3, 0.0  ;;  %v2719_v52 = vmax.f32 %v2687_v57, 0.0 }
 0x375   : > { %v2803_v7 = vmax.f32 %v2801_v8, %v2802_v43  ;;  %v772_v1 = vmax.f32 %v5602_v44, %v5603_v28  ;;  %v885_v57 = vrot.slane %v884_v35, 4 }
 0x376   : > { %v2946_v61 = vrot.slane %v2945_v48, 1  ;;  %v2689_v33 = vadd.f32 %v5073_v54, %v2656_v27  ;;  %v2753_v20 = vadd.f32 %v5090_v26, %v2720_v42  ;;  %v2752_v30 = vadd.f32 %v5090_v26, %v2719_v52 }
 0x377   : > { %vm3035_vm12 = vcmp.ge.f32.partialorder %v2803_v7, 0.0  ;;  %v3051_v51 = vmul.f32 %v2803_v7, %v757_v11  ;;  %v3067_v2 = vmul.f32 %v2803_v7, %v869_v12 }
 0x378   : > { %v2947_v10 = vmax.f32 %v2945_v48, %v2946_v61  ;;  %v2721_v53 = vmax.f32 %v2689_v33, 0.0  ;;  %v767_v48 = vmax.f32 %v765_v18, %v766_v0  ;;  %v2804_v11 = vmax.f32 %v2752_v30, %v2753_v20 }
 0x379   : > { %v3083_v38 = vsel %vm3035_vm12, %v3051_v51, %v3067_v2  ;;  %v2409_v17 = vpop.f32.mrf.mxu3  ;;  %v2897_v61 = vmul.f32 %v5598_v24, %v2753_v20  ;;  %v2574_v51 = vrot.slane %v5059_v45, 7  ;;  %v773_v2 = vrot.slane %v772_v1, 4 }
 0x37a   : > { %v5156_v19 = vsel %vm1872_vm6, %v2947_v10, %v3113_v46  ;;  %v5159_v22 = vsel %vm1872_vm6, %v3083_v38, %v3147_v23  ;;  %v2625_v13 = vadd.f32 %v2587_v34, %v2409_v17  ;;  %v877_v46 = vmin.f32 %v5601_v15, %v5600_v4  ;;  %v5604_v10 = vld [vmem:[#allocation30_spill] sm:$0xff] }
 0x37b   : > { %v759_v23 = vrot.slane %v758_v55, 4  ;;  %v779_v21 = vmax.f32 %v5605_v9, %v5604_v10  ;;  %v2896_v58 = vmul.f32 %v5599_v32, %v2752_v30  ;;  %v2805_v45 = vrot.slane %v2804_v11, 4 }
 0x37c   : > { %v2657_v63 = vmul.f32 %v5600_v4, %v2625_v13  ;;  %v878_v29 = vrot.slane %v877_v46, 4  ;;  %v2589_v36 = vperm.slane %v2574_v51, 0  ;;  %v768_v3 = vrot.slane %v767_v48, 2 }
 0x37d   : > { %v760_v49 = vmax.f32 %v758_v55, %v759_v23  ;;  %v2948_v13 = vmax.f32 %v2896_v58, %v2897_v61  ;;  %v780_v27 = vrot.slane %v779_v21, 4 }
 0x37e   : > { %3423 = vmatmul.msk.bf16.gmra.mxu3 %vm1498_vm3, %v2299_v25  ;;  %v870_v25 = vmin.f32 %v5599_v32, %v5598_v24  ;;  %v2690_v56 = vadd.f32 %v5073_v54, %v2657_v63  ;;  %v879_v7 = vmin.f32 %v877_v46, %v878_v29  ;;  %v891_v24 = vmin.f32 %v5605_v9, %v5604_v10 }
 0x37f   : > { %v761_v38 = vrot.slane %v760_v49, 2  ;;  %v774_v63 = vmax.f32 %v772_v1, %v773_v2  ;;  %v2949_v46 = vrot.slane %v2948_v13, 4  ;;  %v781_v20 = vmax.f32 %v779_v21, %v780_v27 }
 0x380   : > { %v871_v39 = vrot.slane %v870_v25, 4  ;;  %v2722_v50 = vmax.f32 %v2690_v56, 0.0  ;;  %v880_v18 = vrot.slane %v879_v7, 2  ;;  %v892_v42 = vrot.slane %v891_v24, 4 }
 0x381   : > { %v2412_v14 = vpop.f32.mrf.mxu3  ;;  %v2806_v56 = vmax.f32 %v2804_v11, %v2805_v45  ;;  %v762_v23 = vmax.f32 %v760_v49, %v761_v38  ;;  %v769_v1 = vmax.f32 %v767_v48, %v768_v3  ;;  %v782_v2 = vrot.slane %v781_v20, 2 }
 0x382   : > { %v2626_v31 = vadd.f32 %v2588_v37, %v2412_v14  ;;  %v872_v59 = vmin.f32 %v870_v25, %v871_v39  ;;  %v2755_v12 = vadd.f32 %v5090_v26, %v2722_v50  ;;  %v886_v39 = vmin.f32 %v884_v35, %v885_v57 }
 0x383   : > { %v893_v30 = vmin.f32 %v891_v24, %v892_v42  ;;  %v763_v61 = vrot.slane %v762_v23, 1 }
 0x384   : > { %v2658_v40 = vmul.f32 %v5602_v44, %v2626_v31  ;;  %v873_v17 = vrot.slane %v872_v59, 2  ;;  %v2899_v47 = vmul.f32 %v5600_v4, %v2755_v12  ;;  %v887_v49 = vrot.slane %v886_v39, 2 }
 0x386   : > { %v2691_v43 = vadd.f32 %v5073_v54, %v2658_v40  ;;  %v874_v40 = vmin.f32 %v872_v59, %v873_v17  ;;  %v764_v17 = vmax.f32 %v762_v23, %v763_v61  ;;  %v888_v45 = vmin.f32 %v886_v39, %v887_v49  ;;  %v5607_v61 = vld [vmem:[#allocation31_spill] sm:$0xff] }
 0x388   : > { %v2723_v62 = vmax.f32 %v2691_v43, 0.0  ;;  %v881_v43 = vmin.f32 %v879_v7, %v880_v18 }
 0x389   : > { %v2414_v8 = vpop.f32.mrf.mxu3 }
 0x38a   : > { %v2627_v41 = vadd.f32 %v2588_v37, %v2414_v8  ;;  %v2756_v37 = vadd.f32 %v5090_v26, %v2723_v62  ;;  %v882_v24 = vrot.slane %v881_v43, 1 }
 0x38c   : > { %v2659_v16 = vmul.f32 %v5603_v28, %v2627_v41  ;;  %v2900_v50 = vmul.f32 %v5602_v44, %v2756_v37  ;;  %v2950_v41 = vmax.f32 %v2948_v13, %v2949_v46  ;;  %v770_v44 = vrot.slane %v769_v1, 1 }
 0x38d   : > { %v883_v42 = vmin.f32 %v881_v43, %v882_v24  ;;  %v5606_v43 = vld [vmem:[#allocation29_spill] sm:$0xff] }
 0x38e   : > { %3424 = vmatmul.msk.bf16.gmra.mxu3 %vm1498_vm3, %v2300_v60  ;;  %v2754_v60 = vadd.f32 %v5090_v26, %v2721_v53  ;;  %v2692_v34 = vadd.f32 %v5073_v54, %v2659_v16  ;;  %v2807_v53 = vrot.slane %v2806_v56, 2  ;;  %v2951_v58 = vrot.slane %v2950_v41, 2 }
 0x38f   : > { %v771_v18 = vmax.f32 %v769_v1, %v770_v44 }
 0x390   : > { %v2811_v6 = vmax.f32 %v2754_v60, %v2755_v12  ;;  %v2724_v5 = vmax.f32 %v2692_v34, 0.0  ;;  %v2898_v32 = vmul.f32 %v5601_v15, %v2754_v60  ;;  %v775_v15 = vrot.slane %v774_v63, 2 }
 0x391   : > { %v2417_v14 = vpop.f32.mrf.mxu3  ;;  %v894_v60 = vrot.slane %v893_v30, 2  ;;  %v2808_v48 = vmax.f32 %v2806_v56, %v2807_v53 }
 0x392   : > { %v2757_v55 = vadd.f32 %v5090_v26, %v2724_v5  ;;  %v2628_v25 = vadd.f32 %v2589_v36, %v2417_v14  ;;  %v2812_v31 = vrot.slane %v2811_v6, 4  ;;  %v2955_v4 = vmax.f32 %v2898_v32, %v2899_v47  ;;  %v5215_v5 = vpop.f32.mrf.mxu1 }
 0x393   : > { %v776_v51 = vmax.f32 %v774_v63, %v775_v15  ;;  %v783_v47 = vmax.f32 %v781_v20, %v782_v2  ;;  %v895_v57 = vmin.f32 %v893_v30, %v894_v60  ;;  %v2809_v27 = vrot.slane %v2808_v48, 1 }
 0x394   : > { %v2818_v52 = vmax.f32 %v2756_v37, %v2757_v55  ;;  %v2901_v33 = vmul.f32 %v5603_v28, %v2757_v55  ;;  %v2660_v0 = vmul.f32 %v5605_v9, %v2628_v25  ;;  %v2813_v8 = vmax.f32 %v2811_v6, %v2812_v31 }
 0x395   : > { %v2956_v11 = vrot.slane %v2955_v4, 4  ;;  %v875_v28 = vrot.slane %v874_v40, 1  ;;  %v777_v13 = vrot.slane %v776_v51, 1  ;;  %v2952_v32 = vmax.f32 %v2950_v41, %v2951_v58 }
 0x396   : > { %v2819_v29 = vrot.slane %v2818_v52, 4  ;;  %v2962_v12 = vmax.f32 %v2900_v50, %v2901_v33  ;;  %v2693_v59 = vadd.f32 %v5073_v54, %v2660_v0  ;;  %v2814_v38 = vrot.slane %v2813_v8, 2 }
 0x397   : > { %v2957_v62 = vmax.f32 %v2955_v4, %v2956_v11  ;;  %v876_v63 = vmin.f32 %v874_v40, %v875_v28  ;;  %v2590_v46 = vperm.slane %v5215_v5, 0  ;;  %v778_v4 = vmax.f32 %v776_v51, %v777_v13 }
 0x398   : > { %v2820_v35 = vmax.f32 %v2818_v52, %v2819_v29  ;;  %v2963_v7 = vrot.slane %v2962_v12, 4  ;;  %v2725_v6 = vmax.f32 %v2693_v59, 0.0  ;;  %v2815_v14 = vmax.f32 %v2813_v8, %v2814_v38 }
 0x399   : > { %v2419_v16 = vpop.f32.mrf.mxu3  ;;  %v2958_v37 = vrot.slane %v2957_v62, 2  ;;  %v889_v52 = vrot.slane %v888_v45, 1  ;;  %v784_v33 = vrot.slane %v783_v47, 1  ;;  %v896_v39 = vrot.slane %v895_v57, 1 }
 0x39a   : > { %v2629_v21 = vadd.f32 %v2589_v36, %v2419_v16  ;;  %v2821_v3 = vrot.slane %v2820_v35, 2  ;;  %v2964_v55 = vmax.f32 %v2962_v12, %v2963_v7  ;;  %v2758_v56 = vadd.f32 %v5090_v26, %v2725_v6 }
 0x39b   : > { %v2816_v40 = vrot.slane %v2815_v14, 1  ;;  %v2810_v20 = vmax.f32 %v2808_v48, %v2809_v27  ;;  %v2953_v50 = vrot.slane %v2952_v32, 1  ;;  %v2959_v29 = vmax.f32 %v2957_v62, %v2958_v37 }
 0x39c   : > { %v2661_v34 = vmul.f32 %v5604_v10, %v2629_v21  ;;  %v2822_v23 = vmax.f32 %v2820_v35, %v2821_v3  ;;  %v2965_v30 = vrot.slane %v2964_v55, 2  ;;  %v2902_v1 = vmul.f32 %v5605_v9, %v2758_v56 }
 0x39d   : > { %v890_v11 = vmin.f32 %v888_v45, %v889_v52  ;;  %v785_v12 = vmax.f32 %v783_v47, %v784_v33  ;;  %v5226_v28 = vmax.f32 %v5606_v43, %v5607_v61  ;;  %v897_v59 = vmin.f32 %v895_v57, %v896_v39 }
 0x39e   : > { %v2694_v36 = vadd.f32 %v5073_v54, %v2661_v34  ;;  %v2823_v49 = vrot.slane %v2822_v23, 1  ;;  %v2817_v16 = vmax.f32 %v2815_v14, %v2816_v40  ;;  %v2954_v35 = vmax.f32 %v2952_v32, %v2953_v50 }
 0x39f   : > { %v2966_v21 = vmax.f32 %v2964_v55, %v2965_v30  ;;  %v2575_v44 = vrot.slane %v5215_v5, 1  ;;  %vm3036_vm3 = vcmp.ge.f32.partialorder %v2810_v20, 0.0  ;;  %v3052_v58 = vmul.f32 %v2810_v20, %v764_v17 }
 0x3a0   : > { %v2726_v25 = vmax.f32 %v2694_v36, 0.0  ;;  %v3068_v62 = vmul.f32 %v2810_v20, %v876_v63  ;;  %v2824_v7 = vmax.f32 %v2822_v23, %v2823_v49  ;;  %v3053_v24 = vmul.f32 %v2817_v16, %v771_v18 }
 0x3a1   : > { %v2422_v31 = vpop.f32.mrf.mxu3  ;;  %v3069_v45 = vmul.f32 %v2817_v16, %v883_v42  ;;  %vm3037_vm13 = vcmp.ge.f32.partialorder %v2817_v16, 0.0  ;;  %v2967_v47 = vrot.slane %v2966_v21, 1  ;;  %v2591_v32 = vperm.slane %v2575_v44, 0  ;;  %v5609_v16 = vld [vmem:[#allocation33_spill] sm:$0xff] }
 0x3a2   : > { %v2759_v0 = vadd.f32 %v5090_v26, %v2726_v25  ;;  %v2630_v15 = vadd.f32 %v2590_v46, %v2422_v31  ;;  %v3084_v37 = vsel %vm3036_vm3, %v3052_v58, %v3068_v62  ;;  %v3054_v17 = vmul.f32 %v2824_v7, %v778_v4 }
 0x3a3   : > { %v3070_v63 = vmul.f32 %v2824_v7, %v890_v11  ;;  %v3085_v25 = vsel %vm3037_vm13, %v3053_v24, %v3069_v45  ;;  %vm3038_vm14 = vcmp.ge.f32.partialorder %v2824_v7, 0.0  ;;  %v2968_v31 = vmax.f32 %v2966_v21, %v2967_v47 }
 0x3a4   : > { %v2825_v53 = vmax.f32 %v2758_v56, %v2759_v0  ;;  %v2903_v8 = vmul.f32 %v5604_v10, %v2759_v0  ;;  %v2662_v41 = vmul.f32 %v5606_v43, %v2630_v15  ;;  %v2960_v10 = vrot.slane %v2959_v29, 1 }
 0x3a5   : > { %v3115_v56 = vsel %vm1874_vm7, %v2954_v35, %v5156_v19  ;;  %v3149_v33 = vsel %vm1874_vm7, %v3084_v37, %v5159_v22  ;;  %v3086_v15 = vsel %vm3038_vm14, %v3054_v17, %v3070_v63  ;;  %v5610_v35 = vld [vmem:[#allocation32_spill] sm:$0xff]  ;;  %v787_v44 = vrot.slane %v5226_v28, 4  ;;  %vm5624_vm14 = vmmov %vm5586_vm0 }
 0x3a6   : > { %v2826_v51 = vrot.slane %v2825_v53, 4  ;;  %v2969_v2 = vmax.f32 %v2902_v1, %v2903_v8  ;;  %v2695_v9 = vadd.f32 %v5073_v54, %v2662_v41  ;;  %v2961_v57 = vmax.f32 %v2959_v29, %v2960_v10 }
 0x3a7   : > { %v3150_v0 = vsel %vm1876_vm8, %v3085_v25, %v3149_v33  ;;  %v788_v62 = vmax.f32 %v5226_v28, %v787_v44  ;;  %v2576_v45 = vrot.slane %v5215_v5, 2 }
 0x3a8   : > { %v2827_v60 = vmax.f32 %v2825_v53, %v2826_v51  ;;  %v2970_v48 = vrot.slane %v2969_v2, 4  ;;  %v2727_v3 = vmax.f32 %v2695_v9, 0.0  ;;  %v3116_v4 = vsel %vm1876_vm8, %v2961_v57, %v3115_v56 }
 0x3a9   : > { %v2424_v38 = vpop.f32.mrf.mxu3  ;;  %v3117_v1 = vsel %vm5586_vm0, %v2968_v31, %v3116_v4  ;;  %v3151_v41 = vsel %vm5608_vm1, %v3086_v15, %v3150_v0  ;;  %v905_v9 = vmin.f32 %v5609_v16, %v5610_v35  ;;  %v789_v57 = vrot.slane %v788_v62, 2  ;;  %v5612_v31 = vld [vmem:[#allocation36_spill] sm:$0xff] }
 0x3aa   : > { %v2631_v34 = vadd.f32 %v2590_v46, %v2424_v38  ;;  %v2828_v6 = vrot.slane %v2827_v60, 2  ;;  %v2971_v13 = vmax.f32 %v2969_v2, %v2970_v48  ;;  %v2760_v46 = vadd.f32 %v5090_v26, %v2727_v3 }
 0x3ab   : > { %v898_v2 = vmin.f32 %v5606_v43, %v5607_v61  ;;  %v906_v58 = vrot.slane %v905_v9, 4  ;;  %v2592_v17 = vperm.slane %v2576_v45, 0  ;;  %v790_v56 = vmax.f32 %v788_v62, %v789_v57 }
 0x3ac   : > { %v2663_v36 = vmul.f32 %v5607_v61, %v2631_v34  ;;  %v2829_v27 = vmax.f32 %v2827_v60, %v2828_v6  ;;  %v2972_v14 = vrot.slane %v2971_v13, 2  ;;  %v2904_v53 = vmul.f32 %v5606_v43, %v2760_v46 }
 0x3ad   : > { %v899_v60 = vrot.slane %v898_v2, 4 }
 0x3ae   : > { %v2696_v55 = vadd.f32 %v5073_v54, %v2663_v36  ;;  %v2830_v18 = vrot.slane %v2829_v27, 1  ;;  %v2973_v42 = vmax.f32 %v2971_v13, %v2972_v14  ;;  %v907_v36 = vmin.f32 %v905_v9, %v906_v58 }
 0x3af   : > { %v900_v6 = vmin.f32 %v898_v2, %v899_v60 }
 0x3b0   : > { %v2728_v52 = vmax.f32 %v2696_v55, 0.0  ;;  %v2831_v23 = vmax.f32 %v2829_v27, %v2830_v18  ;;  %v2974_v39 = vrot.slane %v2973_v42, 1  ;;  %v908_v25 = vrot.slane %v907_v36, 2 }
 0x3b1   : > { %v2427_v40 = vpop.f32.mrf.mxu3  ;;  %v901_v28 = vrot.slane %v900_v6, 2 }
 0x3b2   : > { %v2761_v20 = vadd.f32 %v5090_v26, %v2728_v52  ;;  %v2632_v50 = vadd.f32 %v2591_v32, %v2427_v40  ;;  %v2975_v19 = vmax.f32 %v2973_v42, %v2974_v39  ;;  %vm3039_vm15 = vcmp.ge.f32.partialorder %v2831_v23, 0.0 }
 0x3b3   : > { %v3055_v29 = vmul.f32 %v2831_v23, %v785_v12  ;;  %v3071_v30 = vmul.f32 %v2831_v23, %v897_v59  ;;  %v793_v12 = vmax.f32 %v5609_v16, %v5610_v35  ;;  %v902_v0 = vmin.f32 %v900_v6, %v901_v28 }
 0x3b4   : > { %v2832_v22 = vmax.f32 %v2760_v46, %v2761_v20  ;;  %v2905_v8 = vmul.f32 %v5607_v61, %v2761_v20  ;;  %v3118_v49 = vsel %vm5588_vm2, %v2975_v19, %v3117_v1  ;;  %v2664_v51 = vmul.f32 %v5609_v16, %v2632_v50  ;;  %v5613_v46 = vld [vmem:[#allocation34_spill] sm:$0xff] }
 0x3b5   : > { %v3087_v11 = vsel %vm3039_vm15, %v3055_v29, %v3071_v30  ;;  %3128 = vst [vmem:[%s5252_s11] sm:$0xff] %v3118_v49  ;;  %v794_v48 = vrot.slane %v793_v12, 4  ;;  %v800_v52 = vmax.f32 %v5613_v46, %v5612_v31  ;;  %v909_v50 = vmin.f32 %v907_v36, %v908_v25  ;;  %vm5625_vm15 = vmmov %vm5586_vm0 }
 0x3b6   : > { %v3152_v59 = vsel %vm5611_vm11, %v3087_v11, %v3151_v41  ;;  %v2976_v21 = vmax.f32 %v2904_v53, %v2905_v8  ;;  %v2833_v10 = vrot.slane %v2832_v22, 4  ;;  %v2697_v43 = vadd.f32 %v5073_v54, %v2664_v51  ;;  %vm5627_vm0 = vmmov %vm5588_vm2 }
 0x3b7   : > { %3162 = vst [vmem:[%s5252_s11 + $0x8] sm:$0xff] %v3152_v59  ;;  %v795_v13 = vmax.f32 %v793_v12, %v794_v48  ;;  %v912_v19 = vmin.f32 %v5613_v46, %v5612_v31  ;;  %v801_v1 = vrot.slane %v800_v52, 4  ;;  %v910_v12 = vrot.slane %v909_v50, 1 }
 0x3b8   : > { %v2834_v7 = vmax.f32 %v2832_v22, %v2833_v10  ;;  %v2729_v24 = vmax.f32 %v2697_v43, 0.0  ;;  %v2977_v47 = vrot.slane %v2976_v21, 4  ;;  %v791_v22 = vrot.slane %v790_v56, 1 }
 0x3b9   : > { %v2429_v61 = vpop.f32.mrf.mxu3  ;;  %v796_v63 = vrot.slane %v795_v13, 2  ;;  %v913_v59 = vrot.slane %v912_v19, 4  ;;  %v802_v44 = vmax.f32 %v800_v52, %v801_v1  ;;  %v911_v45 = vmin.f32 %v909_v50, %v910_v12  ;;  %v5615_v1 = vld [vmem:[#allocation37_spill] sm:$0xff] }
 0x3ba   : > { %v2633_v38 = vadd.f32 %v2591_v32, %v2429_v61  ;;  %v2835_v27 = vrot.slane %v2834_v7, 2  ;;  %v2762_v32 = vadd.f32 %v5090_v26, %v2729_v24  ;;  %v2978_v55 = vmax.f32 %v2976_v21, %v2977_v47 }
 0x3bb   : > { %v797_v15 = vmax.f32 %v795_v13, %v796_v63  ;;  %v2577_v61 = vrot.slane %v5215_v5, 3  ;;  %v792_v60 = vmax.f32 %v790_v56, %v791_v22  ;;  %v914_v6 = vmin.f32 %v912_v19, %v913_v59 }
 0x3bc   : > { %v2665_v34 = vmul.f32 %v5610_v35, %v2633_v38  ;;  %v2836_v33 = vmax.f32 %v2834_v7, %v2835_v27  ;;  %v2906_v4 = vmul.f32 %v5609_v16, %v2762_v32  ;;  %v2979_v20 = vrot.slane %v2978_v55, 2 }
 0x3bd   : > { %v903_v16 = vrot.slane %v902_v0, 1  ;;  %v798_v51 = vrot.slane %v797_v15, 1  ;;  %v2593_v27 = vperm.slane %v2577_v61, 0  ;;  %v915_v52 = vrot.slane %v914_v6, 2 }
 0x3be   : > { %v2698_v3 = vadd.f32 %v5073_v54, %v2665_v34  ;;  %v2837_v8 = vrot.slane %v2836_v33, 1  ;;  %v2980_v2 = vmax.f32 %v2978_v55, %v2979_v20 }
 0x3bf   : > { %v904_v62 = vmin.f32 %v902_v0, %v903_v16  ;;  %v799_v7 = vmax.f32 %v797_v15, %v798_v51  ;;  %v5614_v15 = vld [vmem:[#allocation35_spill] sm:$0xff]  ;;  %v916_v22 = vmin.f32 %v914_v6, %v915_v52 }
 0x3c0   : > { %v2730_v14 = vmax.f32 %v2698_v3, 0.0  ;;  %v2838_v48 = vmax.f32 %v2836_v33, %v2837_v8  ;;  %v2981_v34 = vrot.slane %v2980_v2, 1  ;;  %v803_v3 = vrot.slane %v802_v44, 2 }
 0x3c1   : > { %v2432_v37 = vpop.f32.mrf.mxu3  ;;  %v917_v59 = vrot.slane %v916_v22, 1 }
 0x3c2   : > { %v2763_v18 = vadd.f32 %v5090_v26, %v2730_v14  ;;  %v2634_v42 = vadd.f32 %v2592_v17, %v2432_v37  ;;  %v3056_v14 = vmul.f32 %v2838_v48, %v792_v60  ;;  %v2982_v63 = vmax.f32 %v2980_v2, %v2981_v34 }
 0x3c3   : > { %vm3040_vm9 = vcmp.ge.f32.partialorder %v2838_v48, 0.0 }
 0x3c4   : > { %v2839_v23 = vmax.f32 %v2762_v32, %v2763_v18  ;;  %v2907_v39 = vmul.f32 %v5610_v35, %v2763_v18  ;;  %v2666_v40 = vmul.f32 %v5613_v46, %v2634_v42  ;;  %v3072_v32 = vmul.f32 %v2838_v48, %v904_v62 }
 0x3c5   : > { %v918_v62 = vmin.f32 %v916_v22, %v917_v59 }
 0x3c6   : > { %v2840_v29 = vrot.slane %v2839_v23, 4  ;;  %v2983_v30 = vmax.f32 %v2906_v4, %v2907_v39  ;;  %v2699_v53 = vadd.f32 %v5073_v54, %v2666_v40  ;;  %v3088_v39 = vsel %vm3040_vm9, %v3056_v14, %v3072_v32 }
 0x3c8   : > { %v2841_v41 = vmax.f32 %v2839_v23, %v2840_v29  ;;  %v2984_v11 = vrot.slane %v2983_v30, 4  ;;  %v2731_v10 = vmax.f32 %v2699_v53, 0.0  ;;  %v807_v53 = vmax.f32 %v5614_v15, %v5615_v1 }
 0x3c9   : > { %v2434_v49 = vpop.f32.mrf.mxu3 }
 0x3ca   : > { %v2635_v35 = vadd.f32 %v2592_v17, %v2434_v49  ;;  %v2842_v21 = vrot.slane %v2841_v41, 2  ;;  %v2985_v9 = vmax.f32 %v2983_v30, %v2984_v11  ;;  %v2764_v36 = vadd.f32 %v5090_v26, %v2731_v10 }
 0x3cb   : > { %v804_v30 = vmax.f32 %v802_v44, %v803_v3 }
 0x3cc   : > { %v2667_v43 = vmul.f32 %v5612_v31, %v2635_v35  ;;  %v2843_v38 = vmax.f32 %v2841_v41, %v2842_v21  ;;  %v2986_v58 = vrot.slane %v2985_v9, 2  ;;  %v2908_v33 = vmul.f32 %v5613_v46, %v2764_v36 }
 0x3cd   : > { %v919_v46 = vmin.f32 %v5614_v15, %v5615_v1  ;;  %v805_v2 = vrot.slane %v804_v30, 1  ;;  %v808_v35 = vrot.slane %v807_v53, 4 }
 0x3ce   : > { %v2700_v24 = vadd.f32 %v5073_v54, %v2667_v43  ;;  %v2844_v13 = vrot.slane %v2843_v38, 1  ;;  %v2987_v47 = vmax.f32 %v2985_v9, %v2986_v58 }
 0x3cf   : > { %v920_v12 = vrot.slane %v919_v46, 4  ;;  %v806_v48 = vmax.f32 %v804_v30, %v805_v2 }
 0x3d0   : > { %v2732_v57 = vmax.f32 %v2700_v24, 0.0  ;;  %v2845_v37 = vmax.f32 %v2843_v38, %v2844_v13  ;;  %v2988_v17 = vrot.slane %v2987_v47, 1  ;;  %v809_v38 = vmax.f32 %v807_v53, %v808_v35 }
 0x3d1   : > { %v2437_v28 = vpop.f32.mrf.mxu3  ;;  %v921_v58 = vmin.f32 %v919_v46, %v920_v12 }
 0x3d2   : > { %v2765_v55 = vadd.f32 %v5090_v26, %v2732_v57  ;;  %v2636_v25 = vadd.f32 %v2593_v27, %v2437_v28  ;;  %v2989_v18 = vmax.f32 %v2987_v47, %v2988_v17  ;;  %vm3041_vm10 = vcmp.ge.f32.partialorder %v2845_v37, 0.0 }
 0x3d3   : > { %v3057_v42 = vmul.f32 %v2845_v37, %v799_v7  ;;  %v3073_v56 = vmul.f32 %v2845_v37, %v911_v45  ;;  %v810_v57 = vrot.slane %v809_v38, 2 }
 0x3d4   : > { %v2846_v4 = vmax.f32 %v2764_v36, %v2765_v55  ;;  %v2909_v23 = vmul.f32 %v5612_v31, %v2765_v55  ;;  %v3119_v0 = vsel %vm1868_vm4, %v2989_v18, %v2982_v63  ;;  %v2668_v20 = vmul.f32 %v5614_v15, %v2636_v25 }
 0x3d5   : > { %v3089_v40 = vsel %vm3041_vm10, %v3057_v42, %v3073_v56  ;;  %v811_v18 = vmax.f32 %v809_v38, %v810_v57 }
 0x3d6   : > { %v3153_v50 = vsel %vm1868_vm4, %v3089_v40, %v3088_v39  ;;  %v2847_v19 = vrot.slane %v2846_v4, 4  ;;  %v2990_v29 = vmax.f32 %v2908_v33, %v2909_v23  ;;  %v2701_v41 = vadd.f32 %v5073_v54, %v2668_v20 }
 0x3d7   : > { %v812_v39 = vrot.slane %v811_v18, 1 }
 0x3d8   : > { %v2848_v8 = vmax.f32 %v2846_v4, %v2847_v19  ;;  %v2991_v31 = vrot.slane %v2990_v29, 4  ;;  %v2733_v10 = vmax.f32 %v2701_v41, 0.0 }
 0x3d9   : > { %v2439_v11 = vpop.f32.mrf.mxu3 }
 0x3da   : > { %v2849_v49 = vrot.slane %v2848_v8, 2  ;;  %v2992_v16 = vmax.f32 %v2990_v29, %v2991_v31  ;;  %v2637_v51 = vadd.f32 %v2593_v27, %v2439_v11  ;;  %v2766_v45 = vadd.f32 %v5090_v26, %v2733_v10 }
 0x3db   : > { %v922_v27 = vrot.slane %v921_v58, 2  ;;  %v813_v29 = vmax.f32 %v811_v18, %v812_v39  ;;  %v2578_v11 = vrot.slane %v5215_v5, 4 }
 0x3dc   : > { %v2850_v21 = vmax.f32 %v2848_v8, %v2849_v49  ;;  %v2993_v9 = vrot.slane %v2992_v16, 2  ;;  %v2669_v44 = vmul.f32 %v5615_v1, %v2637_v51  ;;  %v2910_v17 = vmul.f32 %v5614_v15, %v2766_v45 }
 0x3dd   : > { %v923_v42 = vmin.f32 %v921_v58, %v922_v27  ;;  %v2594_v51 = vperm.slane %v2578_v11, 0 }
 0x3de   : > { %v2851_v43 = vrot.slane %v2850_v21, 1  ;;  %v2994_v61 = vmax.f32 %v2992_v16, %v2993_v9  ;;  %v2702_v60 = vadd.f32 %v5073_v54, %v2669_v44  ;;  %v2579_v16 = vrot.slane %v5215_v5, 5  ;;  %v5616_v44 = vld [vmem:[#allocation38_spill] sm:$0xff] }
 0x3df   : > { %v924_v40 = vrot.slane %v923_v42, 1  ;;  %v2580_v9 = vrot.slane %v5215_v5, 6 }
 0x3e0   : > { %v2852_v7 = vmax.f32 %v2850_v21, %v2851_v43  ;;  %v2995_v34 = vrot.slane %v2994_v61, 1  ;;  %v2734_v24 = vmax.f32 %v2702_v60, 0.0  ;;  %v2595_v12 = vperm.slane %v2579_v16, 0 }
 0x3e1   : > { %v2442_v6 = vpop.f32.mrf.mxu3  ;;  %v925_v15 = vmin.f32 %v923_v42, %v924_v40 }
 0x3e2   : > { %v2996_v13 = vmax.f32 %v2994_v61, %v2995_v34  ;;  %vm3042_vm4 = vcmp.ge.f32.partialorder %v2852_v7, 0.0  ;;  %v3058_v47 = vmul.f32 %v2852_v7, %v806_v48  ;;  %v3074_v3 = vmul.f32 %v2852_v7, %v918_v62  ;;  %v5617_v61 = vld [vmem:[#allocation39_spill] sm:$0xff]  ;;  %v5618_v48 = vld [vmem:[#allocation44_spill] sm:$0xff]  ;;  %v5619_v34 = vld [vmem:[#allocation42_spill] sm:$0xff] }
 0x3e3   : > { %v2767_v36 = vadd.f32 %v5090_v26, %v2734_v24  ;;  %v2638_v59 = vadd.f32 %v2594_v51, %v2442_v6  ;;  %v2596_v62 = vperm.slane %v2580_v9, 0  ;;  %v814_v6 = vmax.f32 %v5617_v61, %v5616_v44 }
 0x3e4   : > { %v3090_v14 = vsel %vm3042_vm4, %v3058_v47, %v3074_v3  ;;  %v3120_v32 = vsel %vm1870_vm5, %v2996_v13, %v3119_v0  ;;  %v926_v13 = vmin.f32 %v5617_v61, %v5616_v44 }
 0x3e5   : > { %v3154_v37 = vsel %vm1870_vm5, %v3090_v14, %v3153_v50  ;;  %v2853_v28 = vmax.f32 %v2766_v45, %v2767_v36  ;;  %v2911_v63 = vmul.f32 %v5615_v1, %v2767_v36  ;;  %v2670_v60 = vmul.f32 %v5617_v61, %v2638_v59  ;;  %v5620_v36 = vld [vmem:[#allocation43_spill] sm:$0xff] }
 0x3e7   : > { %v2854_v55 = vrot.slane %v2853_v28, 4  ;;  %v2997_v25 = vmax.f32 %v2910_v17, %v2911_v63  ;;  %v2703_v47 = vadd.f32 %v5073_v54, %v2670_v60 }
 0x3e9   : > { %v2855_v56 = vmax.f32 %v2853_v28, %v2854_v55  ;;  %v2998_v52 = vrot.slane %v2997_v25, 4  ;;  %v2444_v33 = vpop.f32.mrf.mxu3  ;;  %v2735_v17 = vmax.f32 %v2703_v47, 0.0 }
 0x3ea   : > { %v2639_v35 = vadd.f32 %v2594_v51, %v2444_v33 }
 0x3eb   : > { %v2856_v4 = vrot.slane %v2855_v56, 2  ;;  %v2999_v23 = vmax.f32 %v2997_v25, %v2998_v52  ;;  %v5621_v52 = vld [vmem:[#allocation45_spill] sm:$0xff]  ;;  %v2768_v39 = vadd.f32 %v5090_v26, %v2735_v17 }
 0x3ec   : > { %v2671_v10 = vmul.f32 %v5616_v44, %v2639_v35 }
 0x3ed   : > { %v2857_v20 = vmax.f32 %v2855_v56, %v2856_v4  ;;  %v3000_v0 = vrot.slane %v2999_v23, 2  ;;  %v2581_v4 = vrot.slane %v5215_v5, 7 }
 0x3ee   : > { %v2704_v7 = vadd.f32 %v5073_v54, %v2671_v10 }
 0x3ef   : > { %v2858_v19 = vrot.slane %v2857_v20, 1  ;;  %v3001_v50 = vmax.f32 %v2999_v23, %v3000_v0 }
 0x3f0   : > { %v2736_v27 = vmax.f32 %v2704_v7, 0.0  ;;  %v5622_v7 = vld [vmem:[#allocation47_spill] sm:$0xff] }
 0x3f1   : > { %v2859_v30 = vmax.f32 %v2857_v20, %v2858_v19  ;;  %v3002_v53 = vrot.slane %v3001_v50, 1  ;;  %v2447_v1 = vpop.f32.mrf.mxu3  ;;  %v821_v20 = vmax.f32 %v5619_v34, %v5618_v48 }
 0x3f2   : > { %v2640_v43 = vadd.f32 %v2595_v12, %v2447_v1  ;;  %v2769_v18 = vadd.f32 %v5090_v26, %v2736_v27 }
 0x3f3   : > { %v3003_v46 = vmax.f32 %v3001_v50, %v3002_v53  ;;  %vm3043_vm5 = vcmp.ge.f32.partialorder %v2859_v30, 0.0  ;;  %v3059_v22 = vmul.f32 %v2859_v30, %v813_v29  ;;  %v3075_v8 = vmul.f32 %v2859_v30, %v925_v15 }
 0x3f4   : > { %v2672_v24 = vmul.f32 %v5619_v34, %v2640_v43  ;;  %v933_v50 = vmin.f32 %v5619_v34, %v5618_v48  ;;  %v828_v29 = vmax.f32 %v5620_v36, %v5621_v52  ;;  %v2860_v15 = vmax.f32 %v2768_v39, %v2769_v18 }
 0x3f5   : > { %v3091_v31 = vsel %vm3043_vm5, %v3059_v22, %v3075_v8  ;;  %v5299_v41 = vsel %vm1872_vm6, %v3003_v46, %v3120_v32  ;;  %v815_v32 = vrot.slane %v814_v6, 4  ;;  %v2913_v53 = vmul.f32 %v5616_v44, %v2769_v18 }
 0x3f6   : > { %v5303_v49 = vsel %vm1872_vm6, %v3091_v31, %v3154_v37  ;;  %v2705_v14 = vadd.f32 %v5073_v54, %v2672_v24  ;;  %v927_v37 = vrot.slane %v926_v13, 4  ;;  %v2597_v46 = vperm.slane %v2581_v4, 0  ;;  %v5623_v24 = vld [vmem:[#allocation46_spill] sm:$0xff] }
 0x3f7   : > { %v816_v56 = vmax.f32 %v814_v6, %v815_v32  ;;  %v940_v8 = vmin.f32 %v5620_v36, %v5621_v52  ;;  %v2912_v31 = vmul.f32 %v5617_v61, %v2768_v39  ;;  %v822_v59 = vrot.slane %v821_v20, 4 }
 0x3f8   : > { %v2737_v42 = vmax.f32 %v2705_v14, 0.0  ;;  %v928_v23 = vmin.f32 %v926_v13, %v927_v37  ;;  %v829_v9 = vrot.slane %v828_v29, 4  ;;  %v2861_v44 = vrot.slane %v2860_v15, 4 }
 0x3f9   : > { %v2449_v2 = vpop.f32.mrf.mxu3  ;;  %v817_v30 = vrot.slane %v816_v56, 2  ;;  %v3004_v10 = vmax.f32 %v2912_v31, %v2913_v53  ;;  %v947_v32 = vmin.f32 %v5622_v7, %v5623_v24 }
 0x3fa   : > { %v2641_v21 = vadd.f32 %v2595_v12, %v2449_v2  ;;  %v2770_v5 = vadd.f32 %v5090_v26, %v2737_v42  ;;  %v929_v22 = vrot.slane %v928_v23, 2  ;;  %v830_v27 = vmax.f32 %v828_v29, %v829_v9 }
 0x3fb   : > { %v818_v61 = vmax.f32 %v816_v56, %v817_v30  ;;  %v2862_v14 = vmax.f32 %v2860_v15, %v2861_v44  ;;  %v3005_v37 = vrot.slane %v3004_v10, 4 }
 0x3fc   : > { %v2673_v38 = vmul.f32 %v5618_v48, %v2641_v21  ;;  %v934_v21 = vrot.slane %v933_v50, 4  ;;  %v2914_v43 = vmul.f32 %v5619_v34, %v2770_v5  ;;  %v930_v34 = vmin.f32 %v928_v23, %v929_v22 }
 0x3fd   : > { %v831_v39 = vrot.slane %v830_v27, 2  ;;  %v948_v23 = vrot.slane %v947_v32, 4 }
 0x3fe   : > { %v2706_v3 = vadd.f32 %v5073_v54, %v2673_v38 }
 0x3ff   : > { %v832_v31 = vmax.f32 %v830_v27, %v831_v39 }
 0x400   : > { %v2738_v28 = vmax.f32 %v2706_v3, 0.0  ;;  %v823_v3 = vmax.f32 %v821_v20, %v822_v59  ;;  %v3006_v20 = vmax.f32 %v3004_v10, %v3005_v37 }
 0x401   : > { %v2452_v58 = vpop.f32.mrf.mxu3 }
 0x402   : > { %v2642_v45 = vadd.f32 %v2596_v62, %v2452_v58  ;;  %v2771_v40 = vadd.f32 %v5090_v26, %v2738_v28  ;;  %v941_v58 = vrot.slane %v940_v8, 4  ;;  %v819_v28 = vrot.slane %v818_v61, 1 }
 0x404   : > { %v2674_v57 = vmul.f32 %v5620_v36, %v2642_v45  ;;  %v2867_v11 = vmax.f32 %v2770_v5, %v2771_v40  ;;  %v2915_v51 = vmul.f32 %v5618_v48, %v2771_v40  ;;  %v835_v45 = vmax.f32 %v5622_v7, %v5623_v24 }
 0x405   : > { %v2863_v40 = vrot.slane %v2862_v14, 2 }
 0x406   : > { %v2707_v55 = vadd.f32 %v5073_v54, %v2674_v57  ;;  %v3011_v6 = vmax.f32 %v2914_v43, %v2915_v51  ;;  %v935_v57 = vmin.f32 %v933_v50, %v934_v21  ;;  %v836_v42 = vrot.slane %v835_v45, 4 }
 0x407   : > { %v931_v50 = vrot.slane %v930_v34, 1  ;;  %v3007_v51 = vrot.slane %v3006_v20, 2 }
 0x408   : > { %v2739_v0 = vmax.f32 %v2707_v55, 0.0  ;;  %v3012_v56 = vrot.slane %v3011_v6, 4  ;;  %v936_v4 = vrot.slane %v935_v57, 2  ;;  %v837_v30 = vmax.f32 %v835_v45, %v836_v42 }
 0x409   : > { %v2454_v63 = vpop.f32.mrf.mxu3  ;;  %v932_v59 = vmin.f32 %v930_v34, %v931_v50 }
 0x40a   : > { %v2643_v25 = vadd.f32 %v2596_v62, %v2454_v63  ;;  %v2772_v2 = vadd.f32 %v5090_v26, %v2739_v0  ;;  %v2868_v62 = vrot.slane %v2867_v11, 4  ;;  %v942_v63 = vmin.f32 %v940_v8, %v941_v58 }
 0x40b   : > { %v3013_v53 = vmax.f32 %v3011_v6, %v3012_v56  ;;  %v838_v10 = vrot.slane %v837_v30, 2  ;;  %v3008_v6 = vmax.f32 %v3006_v20, %v3007_v51 }
 0x40c   : > { %v2675_v33 = vmul.f32 %v5621_v52, %v2643_v25  ;;  %v2916_v13 = vmul.f32 %v5620_v36, %v2772_v2  ;;  %v2869_v55 = vmax.f32 %v2867_v11, %v2868_v62  ;;  %v943_v29 = vrot.slane %v942_v63, 2 }
 0x40d   : > { %v2864_v11 = vmax.f32 %v2862_v14, %v2863_v40  ;;  %v3014_v43 = vrot.slane %v3013_v53, 2  ;;  %v839_v14 = vmax.f32 %v837_v30, %v838_v10 }
 0x40e   : > { %v2708_v19 = vadd.f32 %v5073_v54, %v2675_v33  ;;  %v824_v33 = vrot.slane %v823_v3, 2  ;;  %v2870_v15 = vrot.slane %v2869_v55, 2  ;;  %v944_v44 = vmin.f32 %v942_v63, %v943_v29 }
 0x40f   : > { %v3015_v34 = vmax.f32 %v3013_v53, %v3014_v43 }
 0x410   : > { %v2740_v1 = vmax.f32 %v2708_v19, 0.0  ;;  %v825_v8 = vmax.f32 %v823_v3, %v824_v33  ;;  %v2871_v21 = vmax.f32 %v2869_v55, %v2870_v15  ;;  %v945_v27 = vrot.slane %v944_v44, 1 }
 0x411   : > { %v2457_v16 = vpop.f32.mrf.mxu3  ;;  %v840_v33 = vrot.slane %v839_v14, 1 }
 0x412   : > { %v2773_v35 = vadd.f32 %v5090_v26, %v2740_v1  ;;  %v2644_v12 = vadd.f32 %v2597_v46, %v2457_v16  ;;  %v949_v16 = vmin.f32 %v947_v32, %v948_v23 }
 0x414   : > { %v2874_v60 = vmax.f32 %v2772_v2, %v2773_v35  ;;  %v2917_v38 = vmul.f32 %v5621_v52, %v2773_v35  ;;  %v2676_v48 = vmul.f32 %v5622_v7, %v2644_v12  ;;  %v820_v12 = vmax.f32 %v818_v61, %v819_v28 }
 0x415   : > { %v950_v45 = vrot.slane %v949_v16, 2 }
 0x416   : > { %v2875_v47 = vrot.slane %v2874_v60, 4  ;;  %v3018_v17 = vmax.f32 %v2916_v13, %v2917_v38  ;;  %v2709_v25 = vadd.f32 %v5073_v54, %v2676_v48  ;;  %v826_v38 = vrot.slane %v825_v8, 1 }
 0x417   : > { %v833_v48 = vrot.slane %v832_v31, 1 }
 0x418   : > { %v2876_v36 = vmax.f32 %v2874_v60, %v2875_v47  ;;  %v3019_v0 = vrot.slane %v3018_v17, 4  ;;  %v2741_v5 = vmax.f32 %v2709_v25, 0.0  ;;  %v2872_v47 = vrot.slane %v2871_v21, 1 }
 0x419   : > { %v2459_v18 = vpop.f32.mrf.mxu3  ;;  %v827_v37 = vmax.f32 %v825_v8, %v826_v38  ;;  %v3009_v25 = vrot.slane %v3008_v6, 1  ;;  %v834_v42 = vmax.f32 %v832_v31, %v833_v48 }
 0x41a   : > { %v2645_v52 = vadd.f32 %v2597_v46, %v2459_v18  ;;  %v2877_v1 = vrot.slane %v2876_v36, 2  ;;  %v937_v46 = vmin.f32 %v935_v57, %v936_v4  ;;  %v3020_v2 = vmax.f32 %v3018_v17, %v3019_v0 }
 0x41b   : > { %v2774_v9 = vadd.f32 %v5090_v26, %v2741_v5  ;;  %v2873_v56 = vmax.f32 %v2871_v21, %v2872_v47 }
 0x41c   : > { %v2677_v19 = vmul.f32 %v5623_v24, %v2645_v52  ;;  %v2878_v60 = vmax.f32 %v2876_v36, %v2877_v1  ;;  %v938_v58 = vrot.slane %v937_v46, 1  ;;  %v3021_v13 = vrot.slane %v3020_v2, 2 }
 0x41d   : > { %v2918_v61 = vmul.f32 %v5622_v7, %v2774_v9  ;;  %v946_v52 = vmin.f32 %v944_v44, %v945_v27  ;;  %v3061_v29 = vmul.f32 %v2873_v56, %v827_v37  ;;  %vm3045_vm12 = vcmp.ge.f32.partialorder %v2873_v56, 0.0 }
 0x41e   : > { %v2710_v22 = vadd.f32 %v5073_v54, %v2677_v19  ;;  %v2865_v54 = vrot.slane %v2864_v11, 1  ;;  %v2879_v32 = vrot.slane %v2878_v60, 1  ;;  %v939_v55 = vmin.f32 %v937_v46, %v938_v58 }
 0x41f   : > { %v3022_v18 = vmax.f32 %v3020_v2, %v3021_v13  ;;  %v3010_v19 = vmax.f32 %v3008_v6, %v3009_v25 }
 0x420   : > { %v2742_v35 = vmax.f32 %v2710_v22, 0.0  ;;  %v2866_v17 = vmax.f32 %v2864_v11, %v2865_v54  ;;  %v2880_v4 = vmax.f32 %v2878_v60, %v2879_v32  ;;  %v3077_v15 = vmul.f32 %v2873_v56, %v939_v55 }
 0x421   : > { %v3023_v50 = vrot.slane %v3022_v18, 1  ;;  %v841_v11 = vmax.f32 %v839_v14, %v840_v33  ;;  %v3122_v2 = vsel %vm1874_vm7, %v3010_v19, %v5299_v41 }
 0x422   : > { %v2775_v62 = vadd.f32 %v5090_v26, %v2742_v35  ;;  %v951_v26 = vmin.f32 %v949_v16, %v950_v45  ;;  %v3060_v39 = vmul.f32 %v2866_v17, %v820_v12  ;;  %v3076_v40 = vmul.f32 %v2866_v17, %v932_v59 }
 0x423   : > { %vm3044_vm6 = vcmp.ge.f32.partialorder %v2866_v17, 0.0  ;;  %v3062_v1 = vmul.f32 %v2880_v4, %v834_v42  ;;  %v3078_v22 = vmul.f32 %v2880_v4, %v946_v52  ;;  %vm3046_vm3 = vcmp.ge.f32.partialorder %v2880_v4, 0.0 }
 0x424   : > { %v2881_v3 = vmax.f32 %v2774_v9, %v2775_v62  ;;  %v2919_v57 = vmul.f32 %v5623_v24, %v2775_v62  ;;  %v3016_v24 = vrot.slane %v3015_v34, 1  ;;  %v952_v0 = vrot.slane %v951_v26, 1 }
 0x425   : > { %v3092_v8 = vsel %vm3044_vm6, %v3060_v39, %v3076_v40  ;;  %v3024_v51 = vmax.f32 %v3022_v18, %v3023_v50  ;;  %v3093_v35 = vsel %vm3045_vm12, %v3061_v29, %v3077_v15  ;;  %v3094_v44 = vsel %vm3046_vm3, %v3062_v1, %v3078_v22 }
 0x426   : > { %v2882_v28 = vrot.slane %v2881_v3, 4  ;;  %v3025_v63 = vmax.f32 %v2918_v61, %v2919_v57  ;;  %v3017_v53 = vmax.f32 %v3015_v34, %v3016_v24  ;;  %v953_v16 = vmin.f32 %v951_v26, %v952_v0 }
 0x427   : > { %v3156_v21 = vsel %vm1874_vm7, %v3092_v8, %v5303_v49  ;;  %vm5626_vm7 = vmmov %vm5588_vm2 }
 0x428   : > { %v2883_v36 = vmax.f32 %v2881_v3, %v2882_v28  ;;  %v3026_v7 = vrot.slane %v3025_v63, 4  ;;  %v3123_v9 = vsel %vm1876_vm8, %v3017_v53, %v3122_v2  ;;  %v3157_v41 = vsel %vm1876_vm8, %v3093_v35, %v3156_v21 }
 0x429   : > { %v3124_v38 = vsel %vm5624_vm14, %v3024_v51, %v3123_v9  ;;  %v3158_v58 = vsel %vm5625_vm15, %v3094_v44, %v3157_v41 }
 0x42a   : > { %v2884_v23 = vrot.slane %v2883_v36, 2  ;;  %v3027_v20 = vmax.f32 %v3025_v63, %v3026_v7 }
 0x42c   : > { %v2885_v5 = vmax.f32 %v2883_v36, %v2884_v23  ;;  %v3028_v30 = vrot.slane %v3027_v20, 2 }
 0x42e   : > { %v2886_v46 = vrot.slane %v2885_v5, 1  ;;  %v3029_v31 = vmax.f32 %v3027_v20, %v3028_v30 }
 0x430   : > { %v2887_v12 = vmax.f32 %v2885_v5, %v2886_v46  ;;  %v3030_v59 = vrot.slane %v3029_v31, 1 }
 0x432   : > { %v3031_v10 = vmax.f32 %v3029_v31, %v3030_v59  ;;  %vm3047_vm13 = vcmp.ge.f32.partialorder %v2887_v12, 0.0  ;;  %v3063_v43 = vmul.f32 %v2887_v12, %v841_v11  ;;  %v3079_v60 = vmul.f32 %v2887_v12, %v953_v16 }
 0x434   : > { %v3095_v54 = vsel %vm3047_vm13, %v3063_v43, %v3079_v60  ;;  %v3125_v49 = vsel %vm5626_vm7, %v3031_v10, %v3124_v38 }
 0x435   : > { %3129 = vst [vmem:[%s5252_s11 + $0x10] sm:$0xff] %v3125_v49  ;;  %v3159_v62 = vsel %vm5627_vm0, %v3095_v54, %v3158_v58 }
 0x436   : > { %3163 = vst [vmem:[%s5252_s11 + $0x18] sm:$0xff] %v3159_v62 }
 0x437   : > { %3586 = shalt.err (!%p3583_p4)
}
 0x438   : > { %s3631_s12 = smov 256   ;;  %s3632_s7 = smov 16  }
 0x439   : > { %3478 = dma.vmem_to_hbm [thread:$0]  (%p3713_p11), %s3179_s22, 512, %s3181_s15, %s3165_s16, %s3631_s12, %s3631_s12, %s3632_s7  }
 0x43a PF: > { %s3195_s11 = sand.u32 1, %s3613_s18   ;;  %p5628_p7 = scmp.ge.s32.totalorder %s3625_s21, 2 }
 0x43b   : > { %s3196_s14 = scalar_lea.sflag [#allocation4], %s3195_s11 }
 0x43c   : > { %p3485_p5 = pnand %p5628_p7, %p3717_p12 }
 0x43e   : > { %p3486_p8 = pneg %p3485_p5 }
 0x440   : > { %3608 = dma.done.wait (%p3486_p8), %s3196_s14, 512  }
 0x441   : > { %3610 = vsyncadd (%p3486_p8), %s3196_s14, 4294966784  ;;  %p18_p10 = scmp.ge.s32.totalorder %s3688_s24, 4   ;;  %s5629_s18 = smov %s3617_s19 }
 0x442   : > { %s5630_s19 = smov %s3621_s20  ;;  %s5631_s20 = smov %s3700_s27 }
 0x443   : > { %s5632_s21 = smov %s3688_s24  ;;  %20 = sbr.rel (!%p18_p10) target bundleno = 5 (0x5), region = 85 }
 0x448   :  { %3202 = vsyncpa [#allocation3], 1 }
 0x449   :  { %3204 = vsyncpa [#allocation3 + $0x1], 1 }
 0x44a   :  { %3205 = vsyncpa [#allocation4], 1 }
 0x44b   :  { %3207 = vsyncpa [#allocation4 + $0x1], 1 }

</bundles_post_ra>
